<compile_context>
chip_gen: v7x
topology: tpu7x:2x2x1
jax: 0.10.0
libtpu: 0.0.40
codegen_flags: <defaults>
</compile_context>

<pallas_src>
import jax
import jax.numpy as jnp
import numpy as np
from jax.experimental import pallas as pl
from jax.experimental.pallas import tpu as pltpu

H = W = 32            # LeNet input spatial size
KK = 5                # conv kernel size
C1_HW = 28            # conv1 valid output size (32 - 5 + 1)
P1_HW = 14            # pool1 output size
C2_ROWS = 14 * 9 + 9 + 1   # 136 contiguous rows cover all valid conv2 outputs
LANES = 128
K1 = KK * KK * 3      # 75 im2col K for conv1 (padded to 80)
K1P = 80


# ------------------------------ fused kernel ------------------------------- #

def _lenet_kernel(xcol_ref, w1_ref, b1_ref, w2_ref, b2_ref,
                  wf1_ref, bf1_ref, wf2_ref, bf2_ref, wf3_ref, bf3_ref,
                  out_ref,
                  c1_ref, hm_ref, c2_ref, fcin_ref):
    f32, bf16 = jnp.float32, jnp.bfloat16

    # ---- conv1: one im2col GEMM (bf16 operands, f32 accumulate) ------------
    # Bias and ReLU are folded into the pool1 epilogue (max commutes with +b).
    c1_ref[...] = jnp.dot(xcol_ref[...], w1_ref[...],
                          preferred_element_type=f32)

    # ---- pool1 (2x2 / stride 2) + bias + relu, compacted to 14x14 ----------
    # c1 rows: 28*h + w ; hm rows: 14*hp + wp (channels on lanes 0..5).
    b1 = b1_ref[...]
    for hp in range(P1_HW):
        base = C1_HW * (2 * hp)
        a = c1_ref[pl.ds(base, P1_HW, stride=2), :]
        b = c1_ref[pl.ds(base + 1, P1_HW, stride=2), :]
        c = c1_ref[pl.ds(base + C1_HW, P1_HW, stride=2), :]
        d = c1_ref[pl.ds(base + C1_HW + 1, P1_HW, stride=2), :]
        m = jnp.maximum(jnp.maximum(a, b), jnp.maximum(c, d))
        hm_ref[pl.ds(P1_HW * hp, P1_HW), :] = jnp.maximum(m + b1, 0.0)

    # ---- conv2: 25 taps on the compact grid, register accumulation ---------
    # Output rows r = 14*h + w; only r < 136 is ever consumed by pool2.
    acc = jnp.zeros((C2_ROWS, LANES), f32)
    for kh in range(KK):
        for kw in range(KK):
            hs = hm_ref[pl.ds(P1_HW * kh + kw, C2_ROWS), :8].astype(bf16)
            acc = acc + jnp.dot(hs, w2_ref[kh * KK + kw],
                                preferred_element_type=f32)
    c2_ref[...] = acc                              # single store, no RMW

    # ---- pool2 (2x2 / stride 2) + bias + relu, flattened into fc1 input ----
    # fcin lane layout: pos*16 + c with pos = 5*ph + pw (wf1 rows match it).
    b2 = b2_ref[...]
    for hp in range(5):
        base = P1_HW * (2 * hp)
        a = c2_ref[pl.ds(base, 5, stride=2), :]
        b = c2_ref[pl.ds(base + 1, 5, stride=2), :]
        c = c2_ref[pl.ds(base + P1_HW, 5, stride=2), :]
        d = c2_ref[pl.ds(base + P1_HW + 1, 5, stride=2), :]
        pooled = jnp.maximum(
            jnp.maximum(jnp.maximum(a, b), jnp.maximum(c, d)) + b2, 0.0)
        for pw in range(5):
            pos = 5 * hp + pw
            fcin_ref[0:1, 16 * pos:16 * (pos + 1)] = pooled[pw:pw + 1, :16]

    # ---- fc head: three dots (K=400, 256, 128), bf16 operands --------------
    v = fcin_ref[...].astype(bf16)                                  # (1, 400)
    h1 = jnp.maximum(
        jnp.dot(v, wf1_ref[...], preferred_element_type=f32) + bf1_ref[...],
        0.0)                                                        # fc1+relu3
    h2 = jnp.maximum(
        jnp.dot(h1.astype(bf16), wf2_ref[...], preferred_element_type=f32)
        + bf2_ref[...], 0.0)                                        # fc2+relu4
    out_ref[...] = (jnp.dot(h2.astype(bf16), wf3_ref[...],
                            preferred_element_type=f32)
                    + bf3_ref[...])                                 # fc3


@jax.jit
def _fused_forward(x, pk):
    n = x.shape[0]
    assert x.shape[1:] == (3, H, W)
    num_classes = pk["wf3"].shape[1]

    # conv1 im2col built once per call on the tiny input (plain JAX, fused in
    # this jit): row = 28*h + w, lane = (kh*5 + kw)*3 + c, bf16, padded to 80.
    xt = jnp.transpose(x, (0, 2, 3, 1))                       # (N, 32, 32, 3)
    patches = jnp.stack([xt[:, kh:kh + C1_HW, kw:kw + C1_HW, :]
                         for kh in range(KK) for kw in range(KK)], axis=3)
    xcol = patches.reshape(n, C1_HW * C1_HW, K1).astype(jnp.bfloat16)
    xcol = jnp.pad(xcol, ((0, 0), (0, 0), (0, K1P - K1)))     # (N, 784, 80)

    out = pl.pallas_call(
        _lenet_kernel,
        out_shape=jax.ShapeDtypeStruct((n, 1, num_classes), jnp.float32),
        grid=(n,),
        in_specs=[
            pl.BlockSpec((None, C1_HW * C1_HW, K1P), lambda i: (i, 0, 0)),
            pl.BlockSpec((K1P, LANES), lambda i: (0, 0)),        # w1 (80,128)
            pl.BlockSpec((1, LANES), lambda i: (0, 0)),          # b1
            pl.BlockSpec((25, 8, LANES), lambda i: (0, 0, 0)),   # w2
            pl.BlockSpec((1, LANES), lambda i: (0, 0)),          # b2
            pl.BlockSpec((400, 256), lambda i: (0, 0)),          # wf1
            pl.BlockSpec((1, 256), lambda i: (0, 0)),            # bf1
            pl.BlockSpec((256, 128), lambda i: (0, 0)),          # wf2
            pl.BlockSpec((1, 128), lambda i: (0, 0)),            # bf2
            pl.BlockSpec((128, num_classes), lambda i: (0, 0)),  # wf3
            pl.BlockSpec((1, num_classes), lambda i: (0, 0)),    # bf3
        ],
        out_specs=pl.BlockSpec((None, 1, num_classes), lambda i: (i, 0, 0)),
        scratch_shapes=[
            pltpu.VMEM((C1_HW * C1_HW, LANES), jnp.float32),  # conv1 pre-act
            pltpu.VMEM((200, LANES), jnp.float32),            # pool1 output
            pltpu.VMEM((C2_ROWS, LANES), jnp.float32),        # conv2 pre-act
            pltpu.VMEM((1, 400), jnp.float32),                # flattened fc1 in
        ],
        compiler_params=pltpu.CompilerParams(
            dimension_semantics=("parallel",)),
    )(xcol, pk["w1"], pk["b1"], pk["w2"], pk["b2"],
      pk["wf1"], pk["bf1"], pk["wf2"], pk["bf2"], pk["wf3"], pk["bf3"])
    return out.reshape(n, num_classes)


# ------------------------------- LeNet model ------------------------------- #

def init_params(key, num_classes=100):
    ks = jax.random.split(key, 10)

    def winit(k, shape, fan_in):
        return jax.random.normal(k, shape, jnp.float32) / np.sqrt(fan_in)

    # fc weights stored as (in_features, out_features) == torch weight.T
    return {
        "conv1_w": winit(ks[0], (6, 3, 5, 5), 3 * 5 * 5),
        "conv1_b": winit(ks[1], (6,), 3 * 5 * 5),
        "conv2_w": winit(ks[2], (16, 6, 5, 5), 6 * 5 * 5),
        "conv2_b": winit(ks[3], (16,), 6 * 5 * 5),
        "fc1_w": winit(ks[4], (16 * 5 * 5, 256), 16 * 5 * 5),
        "fc1_b": winit(ks[5], (256,), 16 * 5 * 5),
        "fc2_w": winit(ks[6], (256, 128), 256),
        "fc2_b": winit(ks[7], (128,), 256),
        "fc3_w": winit(ks[8], (128, num_classes), 128),
        "fc3_b": winit(ks[9], (100,), 128) if num_classes == 100
        else winit(ks[9], (num_classes,), 128),
    }


def pack_params(p):
    """One-time host-side repack: bf16 MXU weights, biases kept f32."""
    bf16 = jnp.bfloat16
    # conv1 weights in im2col row order (kh*5 + kw)*3 + c, padded to (80, 128)
    w1 = jnp.transpose(p["conv1_w"], (2, 3, 1, 0)).reshape(K1, 6)
    w1 = jnp.pad(w1, ((0, K1P - K1), (0, LANES - 6))).astype(bf16)
    b1 = jnp.pad(p["conv1_b"].reshape(1, 6), ((0, 0), (0, LANES - 6)))
    # conv2 weights tap-major: (25, 8, 128) — K padded 6->8 only (no 128 pad)
    w2 = jnp.transpose(p["conv2_w"], (2, 3, 1, 0)).reshape(25, 6, 16)
    w2 = jnp.pad(w2, ((0, 0), (0, 2), (0, LANES - 16))).astype(bf16)
    b2 = jnp.pad(p["conv2_b"].reshape(1, 16), ((0, 0), (0, LANES - 16)))
    # fc1 rows reordered from torch-flatten order (c*25 + pos) to (pos*16 + c)
    # so the in-kernel flattened pool2 row needs no lane shuffling.
    wf1 = jnp.transpose(p["fc1_w"].reshape(16, 25, 256), (1, 0, 2))
    wf1 = wf1.reshape(400, 256).astype(bf16)
    return {
        "w1": w1, "b1": b1, "w2": w2, "b2": b2,
        "wf1": wf1, "bf1": p["fc1_b"].reshape(1, 256),
        "wf2": p["fc2_w"].astype(bf16), "bf2": p["fc2_b"].reshape(1, 128),
        "wf3": p["fc3_w"].astype(bf16), "bf3": p["fc3_b"].reshape(1, -1),
    }


def lenet_forward(x, packed):
    out = _fused_forward(x, packed)
    n = x.shape[0]
    num_classes = packed["wf3"].shape[1]
    shape_dict = {1: (n, 6, 14, 14), 2: (n, 16, 5, 5), 3: (n, 400),
                  4: (n, 256), 5: (n, 128), 6: (n, num_classes)}
    return out, shape_dict


# ---------------------------- pure-JAX reference --------------------------- #

def lenet_reference(x, p):
    def conv(xx, w, b):
        y = jax.lax.conv_general_dilated(
            xx, w, (1, 1), "VALID",
            dimension_numbers=("NCHW", "OIHW", "NCHW"))
        return jax.nn.relu(y + b.reshape(1, -1, 1, 1))

    def pool(xx):
        return jax.lax.reduce_window(xx, -jnp.inf, jax.lax.max,
                                     (1, 1, 2, 2), (1, 1, 2, 2), "VALID")

    t = pool(conv(x, p["conv1_w"], p["conv1_b"]))
    t = pool(conv(t, p["conv2_w"], p["conv2_b"]))
    t = t.reshape(t.shape[0], -1)
    t = jax.nn.relu(t @ p["fc1_w"] + p["fc1_b"])
    t = jax.nn.relu(t @ p["fc2_w"] + p["fc2_b"])
    return t @ p["fc3_w"] + p["fc3_b"]


if __name__ == "__main__":
    key = jax.random.PRNGKey(0)
    kx, kp = jax.random.split(key)
    x = jax.random.normal(kx, (2, 3, 32, 32), jnp.float32)   # NCHW LeNet input
    params = init_params(kp, num_classes=100)
    packed = pack_params(params)                             # once, at init

    out, shape_dict = lenet_forward(x, packed)
    out = jax.block_until_ready(out)

    expected_shapes = {1: (2, 6, 14, 14), 2: (2, 16, 5, 5), 3: (2, 400),
                       4: (2, 256), 5: (2, 128), 6: (2, 100)}
    assert shape_dict == expected_shapes, shape_dict
    assert out.shape == (2, 100) and out.dtype == jnp.float32

    ref = jax.block_until_ready(lenet_reference(x, params))
    assert np.allclose(np.asarray(out), np.asarray(ref), atol=5e-2, rtol=5e-2), (
        float(np.max(np.abs(np.asarray(out) - np.asarray(ref)))))

    print("KERNEL_OK")
</pallas_src>

<mosaic_0001>
module attributes {stable_mosaic.version = 11 : i64} {
  func.func @_lenet_kernel(%arg0: i32, %arg1: memref<1x784x80xbf16, #tpu.memory_space<vmem>>, %arg2: memref<80x128xbf16, #tpu.memory_space<vmem>>, %arg3: memref<1x128xf32, #tpu.memory_space<vmem>>, %arg4: memref<25x8x128xbf16, #tpu.memory_space<vmem>>, %arg5: memref<1x128xf32, #tpu.memory_space<vmem>>, %arg6: memref<400x256xbf16, #tpu.memory_space<vmem>>, %arg7: memref<1x256xf32, #tpu.memory_space<vmem>>, %arg8: memref<256x128xbf16, #tpu.memory_space<vmem>>, %arg9: memref<1x128xf32, #tpu.memory_space<vmem>>, %arg10: memref<128x100xbf16, #tpu.memory_space<vmem>>, %arg11: memref<1x100xf32, #tpu.memory_space<vmem>>, %arg12: memref<1x1x100xf32, #tpu.memory_space<vmem>>, %arg13: memref<784x128xf32, #tpu.memory_space<vmem>>, %arg14: memref<200x128xf32, #tpu.memory_space<vmem>>, %arg15: memref<136x128xf32, #tpu.memory_space<vmem>>, %arg16: memref<1x400xf32, #tpu.memory_space<vmem>>) attributes {dimension_semantics = [#tpu.dimension_semantics<parallel>], iteration_bounds = array<i64: 2>, scalar_prefetch = 0 : i64, scratch_operands = 4 : i64, tpu.core_type = #tpu.core_type<tc>, window_params = [{transform_indices = @transform_0, window_bounds = array<i64: 1, 784, 80>}, {pipeline_mode = #tpu.pipeline_mode<synchronous>, transform_indices = @transform_1, window_bounds = array<i64: 80, 128>}, {pipeline_mode = #tpu.pipeline_mode<synchronous>, transform_indices = @transform_2, window_bounds = array<i64: 1, 128>}, {pipeline_mode = #tpu.pipeline_mode<synchronous>, transform_indices = @transform_3, window_bounds = array<i64: 25, 8, 128>}, {pipeline_mode = #tpu.pipeline_mode<synchronous>, transform_indices = @transform_4, window_bounds = array<i64: 1, 128>}, {pipeline_mode = #tpu.pipeline_mode<synchronous>, transform_indices = @transform_5, window_bounds = array<i64: 400, 256>}, {pipeline_mode = #tpu.pipeline_mode<synchronous>, transform_indices = @transform_6, window_bounds = array<i64: 1, 256>}, {pipeline_mode = #tpu.pipeline_mode<synchronous>, transform_indices = @transform_7, window_bounds = array<i64: 256, 128>}, {pipeline_mode = #tpu.pipeline_mode<synchronous>, transform_indices = @transform_8, window_bounds = array<i64: 1, 128>}, {pipeline_mode = #tpu.pipeline_mode<synchronous>, transform_indices = @transform_9, window_bounds = array<i64: 128, 100>}, {pipeline_mode = #tpu.pipeline_mode<synchronous>, transform_indices = @transform_10, window_bounds = array<i64: 1, 100>}, {transform_indices = @transform_11, window_bounds = array<i64: 1, 1, 100>}]} {
    %c0 = arith.constant 0 : index
    %c0_0 = arith.constant 0 : index
    %c0_1 = arith.constant 0 : index
    %0 = vector.load %arg1[%c0, %c0_0, %c0_1] : memref<1x784x80xbf16, #tpu.memory_space<vmem>>, vector<1x784x80xbf16>
    %1 = vector.shape_cast %0 : vector<1x784x80xbf16> to vector<784x80xbf16>
    %c0_2 = arith.constant 0 : index
    %c0_3 = arith.constant 0 : index
    %2 = vector.load %arg2[%c0_2, %c0_3] : memref<80x128xbf16, #tpu.memory_space<vmem>>, vector<80x128xbf16>
    %cst = arith.constant dense<0.000000e+00> : vector<784x128xf32>
    %3 = tpu.matmul %1, %2, %cst {dimension_numbers = #tpu.dot_dimension_numbers<[1], [0], [0], [1], [0, 0, 1, 1], [], []>} : vector<784x80xbf16>, vector<80x128xbf16>, vector<784x128xf32> -> vector<784x128xf32>
    %c0_4 = arith.constant 0 : index
    %c0_5 = arith.constant 0 : index
    %4 = vector.load %arg13[%c0_4, %c0_5] : memref<784x128xf32, #tpu.memory_space<vmem>>, vector<784x128xf32>
    tpu.vector_store %arg13[%c0_4, %c0_5], %3 {strides = array<i32>} : memref<784x128xf32, #tpu.memory_space<vmem>>, vector<784x128xf32>,
    %c0_6 = arith.constant 0 : index
    %c0_7 = arith.constant 0 : index
    %5 = vector.load %arg3[%c0_6, %c0_7] : memref<1x128xf32, #tpu.memory_space<vmem>>, vector<1x128xf32>
    %c0_8 = arith.constant 0 : index
    %c0_9 = arith.constant 0 : index
    %6 = tpu.strided_load %arg13[%c0_8, %c0_9] {strides = array<i32: 2, 1>} : memref<784x128xf32, #tpu.memory_space<vmem>>, vector<14x128xf32>
    %c1 = arith.constant 1 : index
    %c0_10 = arith.constant 0 : index
    %7 = tpu.strided_load %arg13[%c1, %c0_10] {strides = array<i32: 2, 1>} : memref<784x128xf32, #tpu.memory_space<vmem>>, vector<14x128xf32>
    %c28 = arith.constant 28 : index
    %c0_11 = arith.constant 0 : index
    %8 = tpu.strided_load %arg13[%c28, %c0_11] {strides = array<i32: 2, 1>} : memref<784x128xf32, #tpu.memory_space<vmem>>, vector<14x128xf32>
    %c29 = arith.constant 29 : index
    %c0_12 = arith.constant 0 : index
    %9 = tpu.strided_load %arg13[%c29, %c0_12] {strides = array<i32: 2, 1>} : memref<784x128xf32, #tpu.memory_space<vmem>>, vector<14x128xf32>
    %10 = arith.maximumf %6, %7 : vector<14x128xf32>
    %11 = arith.maximumf %8, %9 : vector<14x128xf32>
    %12 = arith.maximumf %10, %11 : vector<14x128xf32>
    %13 = vector.broadcast %5 : vector<1x128xf32> to vector<14x128xf32>
    %14 = arith.addf %12, %13 : vector<14x128xf32>
    %cst_13 = arith.constant 0.000000e+00 : f32
    %15 = vector.broadcast %cst_13 : f32 to vector<14x128xf32>
    %16 = arith.maximumf %14, %15 : vector<14x128xf32>
    %c0_14 = arith.constant 0 : index
    %c0_15 = arith.constant 0 : index
    %17 = vector.load %arg14[%c0_14, %c0_15] : memref<200x128xf32, #tpu.memory_space<vmem>>, vector<14x128xf32>
    tpu.vector_store %arg14[%c0_14, %c0_15], %16 {strides = array<i32>} : memref<200x128xf32, #tpu.memory_space<vmem>>, vector<14x128xf32>,
    %c56 = arith.constant 56 : index
    %c0_16 = arith.constant 0 : index
    %18 = tpu.strided_load %arg13[%c56, %c0_16] {strides = array<i32: 2, 1>} : memref<784x128xf32, #tpu.memory_space<vmem>>, vector<14x128xf32>
    %c57 = arith.constant 57 : index
    %c0_17 = arith.constant 0 : index
    %19 = tpu.strided_load %arg13[%c57, %c0_17] {strides = array<i32: 2, 1>} : memref<784x128xf32, #tpu.memory_space<vmem>>, vector<14x128xf32>
    %c84 = arith.constant 84 : index
    %c0_18 = arith.constant 0 : index
    %20 = tpu.strided_load %arg13[%c84, %c0_18] {strides = array<i32: 2, 1>} : memref<784x128xf32, #tpu.memory_space<vmem>>, vector<14x128xf32>
    %c85 = arith.constant 85 : index
    %c0_19 = arith.constant 0 : index
    %21 = tpu.strided_load %arg13[%c85, %c0_19] {strides = array<i32: 2, 1>} : memref<784x128xf32, #tpu.memory_space<vmem>>, vector<14x128xf32>
    %22 = arith.maximumf %18, %19 : vector<14x128xf32>
    %23 = arith.maximumf %20, %21 : vector<14x128xf32>
    %24 = arith.maximumf %22, %23 : vector<14x128xf32>
    %25 = vector.broadcast %5 : vector<1x128xf32> to vector<14x128xf32>
    %26 = arith.addf %24, %25 : vector<14x128xf32>
    %cst_20 = arith.constant 0.000000e+00 : f32
    %27 = vector.broadcast %cst_20 : f32 to vector<14x128xf32>
    %28 = arith.maximumf %26, %27 : vector<14x128xf32>
    %c14 = arith.constant 14 : index
    %c0_21 = arith.constant 0 : index
    %29 = vector.load %arg14[%c14, %c0_21] : memref<200x128xf32, #tpu.memory_space<vmem>>, vector<14x128xf32>
    tpu.vector_store %arg14[%c14, %c0_21], %28 {strides = array<i32>} : memref<200x128xf32, #tpu.memory_space<vmem>>, vector<14x128xf32>,
    %c112 = arith.constant 112 : index
    %c0_22 = arith.constant 0 : index
    %30 = tpu.strided_load %arg13[%c112, %c0_22] {strides = array<i32: 2, 1>} : memref<784x128xf32, #tpu.memory_space<vmem>>, vector<14x128xf32>
    %c113 = arith.constant 113 : index
    %c0_23 = arith.constant 0 : index
    %31 = tpu.strided_load %arg13[%c113, %c0_23] {strides = array<i32: 2, 1>} : memref<784x128xf32, #tpu.memory_space<vmem>>, vector<14x128xf32>
    %c140 = arith.constant 140 : index
    %c0_24 = arith.constant 0 : index
    %32 = tpu.strided_load %arg13[%c140, %c0_24] {strides = array<i32: 2, 1>} : memref<784x128xf32, #tpu.memory_space<vmem>>, vector<14x128xf32>
    %c141 = arith.constant 141 : index
    %c0_25 = arith.constant 0 : index
    %33 = tpu.strided_load %arg13[%c141, %c0_25] {strides = array<i32: 2, 1>} : memref<784x128xf32, #tpu.memory_space<vmem>>, vector<14x128xf32>
    %34 = arith.maximumf %30, %31 : vector<14x128xf32>
    %35 = arith.maximumf %32, %33 : vector<14x128xf32>
    %36 = arith.maximumf %34, %35 : vector<14x128xf32>
    %37 = vector.broadcast %5 : vector<1x128xf32> to vector<14x128xf32>
    %38 = arith.addf %36, %37 : vector<14x128xf32>
    %cst_26 = arith.constant 0.000000e+00 : f32
    %39 = vector.broadcast %cst_26 : f32 to vector<14x128xf32>
    %40 = arith.maximumf %38, %39 : vector<14x128xf32>
    %c28_27 = arith.constant 28 : index
    %c0_28 = arith.constant 0 : index
    %41 = vector.load %arg14[%c28_27, %c0_28] : memref<200x128xf32, #tpu.memory_space<vmem>>, vector<14x128xf32>
    tpu.vector_store %arg14[%c28_27, %c0_28], %40 {strides = array<i32>} : memref<200x128xf32, #tpu.memory_space<vmem>>, vector<14x128xf32>,
    %c168 = arith.constant 168 : index
    %c0_29 = arith.constant 0 : index
    %42 = tpu.strided_load %arg13[%c168, %c0_29] {strides = array<i32: 2, 1>} : memref<784x128xf32, #tpu.memory_space<vmem>>, vector<14x128xf32>
    %c169 = arith.constant 169 : index
    %c0_30 = arith.constant 0 : index
    %43 = tpu.strided_load %arg13[%c169, %c0_30] {strides = array<i32: 2, 1>} : memref<784x128xf32, #tpu.memory_space<vmem>>, vector<14x128xf32>
    %c196 = arith.constant 196 : index
    %c0_31 = arith.constant 0 : index
    %44 = tpu.strided_load %arg13[%c196, %c0_31] {strides = array<i32: 2, 1>} : memref<784x128xf32, #tpu.memory_space<vmem>>, vector<14x128xf32>
    %c197 = arith.constant 197 : index
    %c0_32 = arith.constant 0 : index
    %45 = tpu.strided_load %arg13[%c197, %c0_32] {strides = array<i32: 2, 1>} : memref<784x128xf32, #tpu.memory_space<vmem>>, vector<14x128xf32>
    %46 = arith.maximumf %42, %43 : vector<14x128xf32>
    %47 = arith.maximumf %44, %45 : vector<14x128xf32>
    %48 = arith.maximumf %46, %47 : vector<14x128xf32>
    %49 = vector.broadcast %5 : vector<1x128xf32> to vector<14x128xf32>
    %50 = arith.addf %48, %49 : vector<14x128xf32>
    %cst_33 = arith.constant 0.000000e+00 : f32
    %51 = vector.broadcast %cst_33 : f32 to vector<14x128xf32>
    %52 = arith.maximumf %50, %51 : vector<14x128xf32>
    %c42 = arith.constant 42 : index
    %c0_34 = arith.constant 0 : index
    %53 = vector.load %arg14[%c42, %c0_34] : memref<200x128xf32, #tpu.memory_space<vmem>>, vector<14x128xf32>
    tpu.vector_store %arg14[%c42, %c0_34], %52 {strides = array<i32>} : memref<200x128xf32, #tpu.memory_space<vmem>>, vector<14x128xf32>,
    %c224 = arith.constant 224 : index
    %c0_35 = arith.constant 0 : index
    %54 = tpu.strided_load %arg13[%c224, %c0_35] {strides = array<i32: 2, 1>} : memref<784x128xf32, #tpu.memory_space<vmem>>, vector<14x128xf32>
    %c225 = arith.constant 225 : index
    %c0_36 = arith.constant 0 : index
    %55 = tpu.strided_load %arg13[%c225, %c0_36] {strides = array<i32: 2, 1>} : memref<784x128xf32, #tpu.memory_space<vmem>>, vector<14x128xf32>
    %c252 = arith.constant 252 : index
    %c0_37 = arith.constant 0 : index
    %56 = tpu.strided_load %arg13[%c252, %c0_37] {strides = array<i32: 2, 1>} : memref<784x128xf32, #tpu.memory_space<vmem>>, vector<14x128xf32>
    %c253 = arith.constant 253 : index
    %c0_38 = arith.constant 0 : index
    %57 = tpu.strided_load %arg13[%c253, %c0_38] {strides = array<i32: 2, 1>} : memref<784x128xf32, #tpu.memory_space<vmem>>, vector<14x128xf32>
    %58 = arith.maximumf %54, %55 : vector<14x128xf32>
    %59 = arith.maximumf %56, %57 : vector<14x128xf32>
    %60 = arith.maximumf %58, %59 : vector<14x128xf32>
    %61 = vector.broadcast %5 : vector<1x128xf32> to vector<14x128xf32>
    %62 = arith.addf %60, %61 : vector<14x128xf32>
    %cst_39 = arith.constant 0.000000e+00 : f32
    %63 = vector.broadcast %cst_39 : f32 to vector<14x128xf32>
    %64 = arith.maximumf %62, %63 : vector<14x128xf32>
    %c56_40 = arith.constant 56 : index
    %c0_41 = arith.constant 0 : index
    %65 = vector.load %arg14[%c56_40, %c0_41] : memref<200x128xf32, #tpu.memory_space<vmem>>, vector<14x128xf32>
    tpu.vector_store %arg14[%c56_40, %c0_41], %64 {strides = array<i32>} : memref<200x128xf32, #tpu.memory_space<vmem>>, vector<14x128xf32>,
    %c280 = arith.constant 280 : index
    %c0_42 = arith.constant 0 : index
    %66 = tpu.strided_load %arg13[%c280, %c0_42] {strides = array<i32: 2, 1>} : memref<784x128xf32, #tpu.memory_space<vmem>>, vector<14x128xf32>
    %c281 = arith.constant 281 : index
    %c0_43 = arith.constant 0 : index
    %67 = tpu.strided_load %arg13[%c281, %c0_43] {strides = array<i32: 2, 1>} : memref<784x128xf32, #tpu.memory_space<vmem>>, vector<14x128xf32>
    %c308 = arith.constant 308 : index
    %c0_44 = arith.constant 0 : index
    %68 = tpu.strided_load %arg13[%c308, %c0_44] {strides = array<i32: 2, 1>} : memref<784x128xf32, #tpu.memory_space<vmem>>, vector<14x128xf32>
    %c309 = arith.constant 309 : index
    %c0_45 = arith.constant 0 : index
    %69 = tpu.strided_load %arg13[%c309, %c0_45] {strides = array<i32: 2, 1>} : memref<784x128xf32, #tpu.memory_space<vmem>>, vector<14x128xf32>
    %70 = arith.maximumf %66, %67 : vector<14x128xf32>
    %71 = arith.maximumf %68, %69 : vector<14x128xf32>
    %72 = arith.maximumf %70, %71 : vector<14x128xf32>
    %73 = vector.broadcast %5 : vector<1x128xf32> to vector<14x128xf32>
    %74 = arith.addf %72, %73 : vector<14x128xf32>
    %cst_46 = arith.constant 0.000000e+00 : f32
    %75 = vector.broadcast %cst_46 : f32 to vector<14x128xf32>
    %76 = arith.maximumf %74, %75 : vector<14x128xf32>
    %c70 = arith.constant 70 : index
    %c0_47 = arith.constant 0 : index
    %77 = vector.load %arg14[%c70, %c0_47] : memref<200x128xf32, #tpu.memory_space<vmem>>, vector<14x128xf32>
    tpu.vector_store %arg14[%c70, %c0_47], %76 {strides = array<i32>} : memref<200x128xf32, #tpu.memory_space<vmem>>, vector<14x128xf32>,
    %c336 = arith.constant 336 : index
    %c0_48 = arith.constant 0 : index
    %78 = tpu.strided_load %arg13[%c336, %c0_48] {strides = array<i32: 2, 1>} : memref<784x128xf32, #tpu.memory_space<vmem>>, vector<14x128xf32>
    %c337 = arith.constant 337 : index
    %c0_49 = arith.constant 0 : index
    %79 = tpu.strided_load %arg13[%c337, %c0_49] {strides = array<i32: 2, 1>} : memref<784x128xf32, #tpu.memory_space<vmem>>, vector<14x128xf32>
    %c364 = arith.constant 364 : index
    %c0_50 = arith.constant 0 : index
    %80 = tpu.strided_load %arg13[%c364, %c0_50] {strides = array<i32: 2, 1>} : memref<784x128xf32, #tpu.memory_space<vmem>>, vector<14x128xf32>
    %c365 = arith.constant 365 : index
    %c0_51 = arith.constant 0 : index
    %81 = tpu.strided_load %arg13[%c365, %c0_51] {strides = array<i32: 2, 1>} : memref<784x128xf32, #tpu.memory_space<vmem>>, vector<14x128xf32>
    %82 = arith.maximumf %78, %79 : vector<14x128xf32>
    %83 = arith.maximumf %80, %81 : vector<14x128xf32>
    %84 = arith.maximumf %82, %83 : vector<14x128xf32>
    %85 = vector.broadcast %5 : vector<1x128xf32> to vector<14x128xf32>
    %86 = arith.addf %84, %85 : vector<14x128xf32>
    %cst_52 = arith.constant 0.000000e+00 : f32
    %87 = vector.broadcast %cst_52 : f32 to vector<14x128xf32>
    %88 = arith.maximumf %86, %87 : vector<14x128xf32>
    %c84_53 = arith.constant 84 : index
    %c0_54 = arith.constant 0 : index
    %89 = vector.load %arg14[%c84_53, %c0_54] : memref<200x128xf32, #tpu.memory_space<vmem>>, vector<14x128xf32>
    tpu.vector_store %arg14[%c84_53, %c0_54], %88 {strides = array<i32>} : memref<200x128xf32, #tpu.memory_space<vmem>>, vector<14x128xf32>,
    %c392 = arith.constant 392 : index
    %c0_55 = arith.constant 0 : index
    %90 = tpu.strided_load %arg13[%c392, %c0_55] {strides = array<i32: 2, 1>} : memref<784x128xf32, #tpu.memory_space<vmem>>, vector<14x128xf32>
    %c393 = arith.constant 393 : index
    %c0_56 = arith.constant 0 : index
    %91 = tpu.strided_load %arg13[%c393, %c0_56] {strides = array<i32: 2, 1>} : memref<784x128xf32, #tpu.memory_space<vmem>>, vector<14x128xf32>
    %c420 = arith.constant 420 : index
    %c0_57 = arith.constant 0 : index
    %92 = tpu.strided_load %arg13[%c420, %c0_57] {strides = array<i32: 2, 1>} : memref<784x128xf32, #tpu.memory_space<vmem>>, vector<14x128xf32>
    %c421 = arith.constant 421 : index
    %c0_58 = arith.constant 0 : index
    %93 = tpu.strided_load %arg13[%c421, %c0_58] {strides = array<i32: 2, 1>} : memref<784x128xf32, #tpu.memory_space<vmem>>, vector<14x128xf32>
    %94 = arith.maximumf %90, %91 : vector<14x128xf32>
    %95 = arith.maximumf %92, %93 : vector<14x128xf32>
    %96 = arith.maximumf %94, %95 : vector<14x128xf32>
    %97 = vector.broadcast %5 : vector<1x128xf32> to vector<14x128xf32>
    %98 = arith.addf %96, %97 : vector<14x128xf32>
    %cst_59 = arith.constant 0.000000e+00 : f32
    %99 = vector.broadcast %cst_59 : f32 to vector<14x128xf32>
    %100 = arith.maximumf %98, %99 : vector<14x128xf32>
    %c98 = arith.constant 98 : index
    %c0_60 = arith.constant 0 : index
    %101 = vector.load %arg14[%c98, %c0_60] : memref<200x128xf32, #tpu.memory_space<vmem>>, vector<14x128xf32>
    tpu.vector_store %arg14[%c98, %c0_60], %100 {strides = array<i32>} : memref<200x128xf32, #tpu.memory_space<vmem>>, vector<14x128xf32>,
    %c448 = arith.constant 448 : index
    %c0_61 = arith.constant 0 : index
    %102 = tpu.strided_load %arg13[%c448, %c0_61] {strides = array<i32: 2, 1>} : memref<784x128xf32, #tpu.memory_space<vmem>>, vector<14x128xf32>
    %c449 = arith.constant 449 : index
    %c0_62 = arith.constant 0 : index
    %103 = tpu.strided_load %arg13[%c449, %c0_62] {strides = array<i32: 2, 1>} : memref<784x128xf32, #tpu.memory_space<vmem>>, vector<14x128xf32>
    %c476 = arith.constant 476 : index
    %c0_63 = arith.constant 0 : index
    %104 = tpu.strided_load %arg13[%c476, %c0_63] {strides = array<i32: 2, 1>} : memref<784x128xf32, #tpu.memory_space<vmem>>, vector<14x128xf32>
    %c477 = arith.constant 477 : index
    %c0_64 = arith.constant 0 : index
    %105 = tpu.strided_load %arg13[%c477, %c0_64] {strides = array<i32: 2, 1>} : memref<784x128xf32, #tpu.memory_space<vmem>>, vector<14x128xf32>
    %106 = arith.maximumf %102, %103 : vector<14x128xf32>
    %107 = arith.maximumf %104, %105 : vector<14x128xf32>
    %108 = arith.maximumf %106, %107 : vector<14x128xf32>
    %109 = vector.broadcast %5 : vector<1x128xf32> to vector<14x128xf32>
    %110 = arith.addf %108, %109 : vector<14x128xf32>
    %cst_65 = arith.constant 0.000000e+00 : f32
    %111 = vector.broadcast %cst_65 : f32 to vector<14x128xf32>
    %112 = arith.maximumf %110, %111 : vector<14x128xf32>
    %c112_66 = arith.constant 112 : index
    %c0_67 = arith.constant 0 : index
    %113 = vector.load %arg14[%c112_66, %c0_67] : memref<200x128xf32, #tpu.memory_space<vmem>>, vector<14x128xf32>
    tpu.vector_store %arg14[%c112_66, %c0_67], %112 {strides = array<i32>} : memref<200x128xf32, #tpu.memory_space<vmem>>, vector<14x128xf32>,
    %c504 = arith.constant 504 : index
    %c0_68 = arith.constant 0 : index
    %114 = tpu.strided_load %arg13[%c504, %c0_68] {strides = array<i32: 2, 1>} : memref<784x128xf32, #tpu.memory_space<vmem>>, vector<14x128xf32>
    %c505 = arith.constant 505 : index
    %c0_69 = arith.constant 0 : index
    %115 = tpu.strided_load %arg13[%c505, %c0_69] {strides = array<i32: 2, 1>} : memref<784x128xf32, #tpu.memory_space<vmem>>, vector<14x128xf32>
    %c532 = arith.constant 532 : index
    %c0_70 = arith.constant 0 : index
    %116 = tpu.strided_load %arg13[%c532, %c0_70] {strides = array<i32: 2, 1>} : memref<784x128xf32, #tpu.memory_space<vmem>>, vector<14x128xf32>
    %c533 = arith.constant 533 : index
    %c0_71 = arith.constant 0 : index
    %117 = tpu.strided_load %arg13[%c533, %c0_71] {strides = array<i32: 2, 1>} : memref<784x128xf32, #tpu.memory_space<vmem>>, vector<14x128xf32>
    %118 = arith.maximumf %114, %115 : vector<14x128xf32>
    %119 = arith.maximumf %116, %117 : vector<14x128xf32>
    %120 = arith.maximumf %118, %119 : vector<14x128xf32>
    %121 = vector.broadcast %5 : vector<1x128xf32> to vector<14x128xf32>
    %122 = arith.addf %120, %121 : vector<14x128xf32>
    %cst_72 = arith.constant 0.000000e+00 : f32
    %123 = vector.broadcast %cst_72 : f32 to vector<14x128xf32>
    %124 = arith.maximumf %122, %123 : vector<14x128xf32>
    %c126 = arith.constant 126 : index
    %c0_73 = arith.constant 0 : index
    %125 = vector.load %arg14[%c126, %c0_73] : memref<200x128xf32, #tpu.memory_space<vmem>>, vector<14x128xf32>
    tpu.vector_store %arg14[%c126, %c0_73], %124 {strides = array<i32>} : memref<200x128xf32, #tpu.memory_space<vmem>>, vector<14x128xf32>,
    %c560 = arith.constant 560 : index
    %c0_74 = arith.constant 0 : index
    %126 = tpu.strided_load %arg13[%c560, %c0_74] {strides = array<i32: 2, 1>} : memref<784x128xf32, #tpu.memory_space<vmem>>, vector<14x128xf32>
    %c561 = arith.constant 561 : index
    %c0_75 = arith.constant 0 : index
    %127 = tpu.strided_load %arg13[%c561, %c0_75] {strides = array<i32: 2, 1>} : memref<784x128xf32, #tpu.memory_space<vmem>>, vector<14x128xf32>
    %c588 = arith.constant 588 : index
    %c0_76 = arith.constant 0 : index
    %128 = tpu.strided_load %arg13[%c588, %c0_76] {strides = array<i32: 2, 1>} : memref<784x128xf32, #tpu.memory_space<vmem>>, vector<14x128xf32>
    %c589 = arith.constant 589 : index
    %c0_77 = arith.constant 0 : index
    %129 = tpu.strided_load %arg13[%c589, %c0_77] {strides = array<i32: 2, 1>} : memref<784x128xf32, #tpu.memory_space<vmem>>, vector<14x128xf32>
    %130 = arith.maximumf %126, %127 : vector<14x128xf32>
    %131 = arith.maximumf %128, %129 : vector<14x128xf32>
    %132 = arith.maximumf %130, %131 : vector<14x128xf32>
    %133 = vector.broadcast %5 : vector<1x128xf32> to vector<14x128xf32>
    %134 = arith.addf %132, %133 : vector<14x128xf32>
    %cst_78 = arith.constant 0.000000e+00 : f32
    %135 = vector.broadcast %cst_78 : f32 to vector<14x128xf32>
    %136 = arith.maximumf %134, %135 : vector<14x128xf32>
    %c140_79 = arith.constant 140 : index
    %c0_80 = arith.constant 0 : index
    %137 = vector.load %arg14[%c140_79, %c0_80] : memref<200x128xf32, #tpu.memory_space<vmem>>, vector<14x128xf32>
    tpu.vector_store %arg14[%c140_79, %c0_80], %136 {strides = array<i32>} : memref<200x128xf32, #tpu.memory_space<vmem>>, vector<14x128xf32>,
    %c616 = arith.constant 616 : index
    %c0_81 = arith.constant 0 : index
    %138 = tpu.strided_load %arg13[%c616, %c0_81] {strides = array<i32: 2, 1>} : memref<784x128xf32, #tpu.memory_space<vmem>>, vector<14x128xf32>
    %c617 = arith.constant 617 : index
    %c0_82 = arith.constant 0 : index
    %139 = tpu.strided_load %arg13[%c617, %c0_82] {strides = array<i32: 2, 1>} : memref<784x128xf32, #tpu.memory_space<vmem>>, vector<14x128xf32>
    %c644 = arith.constant 644 : index
    %c0_83 = arith.constant 0 : index
    %140 = tpu.strided_load %arg13[%c644, %c0_83] {strides = array<i32: 2, 1>} : memref<784x128xf32, #tpu.memory_space<vmem>>, vector<14x128xf32>
    %c645 = arith.constant 645 : index
    %c0_84 = arith.constant 0 : index
    %141 = tpu.strided_load %arg13[%c645, %c0_84] {strides = array<i32: 2, 1>} : memref<784x128xf32, #tpu.memory_space<vmem>>, vector<14x128xf32>
    %142 = arith.maximumf %138, %139 : vector<14x128xf32>
    %143 = arith.maximumf %140, %141 : vector<14x128xf32>
    %144 = arith.maximumf %142, %143 : vector<14x128xf32>
    %145 = vector.broadcast %5 : vector<1x128xf32> to vector<14x128xf32>
    %146 = arith.addf %144, %145 : vector<14x128xf32>
    %cst_85 = arith.constant 0.000000e+00 : f32
    %147 = vector.broadcast %cst_85 : f32 to vector<14x128xf32>
    %148 = arith.maximumf %146, %147 : vector<14x128xf32>
    %c154 = arith.constant 154 : index
    %c0_86 = arith.constant 0 : index
    %149 = vector.load %arg14[%c154, %c0_86] : memref<200x128xf32, #tpu.memory_space<vmem>>, vector<14x128xf32>
    tpu.vector_store %arg14[%c154, %c0_86], %148 {strides = array<i32>} : memref<200x128xf32, #tpu.memory_space<vmem>>, vector<14x128xf32>,
    %c672 = arith.constant 672 : index
    %c0_87 = arith.constant 0 : index
    %150 = tpu.strided_load %arg13[%c672, %c0_87] {strides = array<i32: 2, 1>} : memref<784x128xf32, #tpu.memory_space<vmem>>, vector<14x128xf32>
    %c673 = arith.constant 673 : index
    %c0_88 = arith.constant 0 : index
    %151 = tpu.strided_load %arg13[%c673, %c0_88] {strides = array<i32: 2, 1>} : memref<784x128xf32, #tpu.memory_space<vmem>>, vector<14x128xf32>
    %c700 = arith.constant 700 : index
    %c0_89 = arith.constant 0 : index
    %152 = tpu.strided_load %arg13[%c700, %c0_89] {strides = array<i32: 2, 1>} : memref<784x128xf32, #tpu.memory_space<vmem>>, vector<14x128xf32>
    %c701 = arith.constant 701 : index
    %c0_90 = arith.constant 0 : index
    %153 = tpu.strided_load %arg13[%c701, %c0_90] {strides = array<i32: 2, 1>} : memref<784x128xf32, #tpu.memory_space<vmem>>, vector<14x128xf32>
    %154 = arith.maximumf %150, %151 : vector<14x128xf32>
    %155 = arith.maximumf %152, %153 : vector<14x128xf32>
    %156 = arith.maximumf %154, %155 : vector<14x128xf32>
    %157 = vector.broadcast %5 : vector<1x128xf32> to vector<14x128xf32>
    %158 = arith.addf %156, %157 : vector<14x128xf32>
    %cst_91 = arith.constant 0.000000e+00 : f32
    %159 = vector.broadcast %cst_91 : f32 to vector<14x128xf32>
    %160 = arith.maximumf %158, %159 : vector<14x128xf32>
    %c168_92 = arith.constant 168 : index
    %c0_93 = arith.constant 0 : index
    %161 = vector.load %arg14[%c168_92, %c0_93] : memref<200x128xf32, #tpu.memory_space<vmem>>, vector<14x128xf32>
    tpu.vector_store %arg14[%c168_92, %c0_93], %160 {strides = array<i32>} : memref<200x128xf32, #tpu.memory_space<vmem>>, vector<14x128xf32>,
    %c728 = arith.constant 728 : index
    %c0_94 = arith.constant 0 : index
    %162 = tpu.strided_load %arg13[%c728, %c0_94] {strides = array<i32: 2, 1>} : memref<784x128xf32, #tpu.memory_space<vmem>>, vector<14x128xf32>
    %c729 = arith.constant 729 : index
    %c0_95 = arith.constant 0 : index
    %163 = tpu.strided_load %arg13[%c729, %c0_95] {strides = array<i32: 2, 1>} : memref<784x128xf32, #tpu.memory_space<vmem>>, vector<14x128xf32>
    %c756 = arith.constant 756 : index
    %c0_96 = arith.constant 0 : index
    %164 = tpu.strided_load %arg13[%c756, %c0_96] {strides = array<i32: 2, 1>} : memref<784x128xf32, #tpu.memory_space<vmem>>, vector<14x128xf32>
    %c757 = arith.constant 757 : index
    %c0_97 = arith.constant 0 : index
    %165 = tpu.strided_load %arg13[%c757, %c0_97] {strides = array<i32: 2, 1>} : memref<784x128xf32, #tpu.memory_space<vmem>>, vector<14x128xf32>
    %166 = arith.maximumf %162, %163 : vector<14x128xf32>
    %167 = arith.maximumf %164, %165 : vector<14x128xf32>
    %168 = arith.maximumf %166, %167 : vector<14x128xf32>
    %169 = vector.broadcast %5 : vector<1x128xf32> to vector<14x128xf32>
    %170 = arith.addf %168, %169 : vector<14x128xf32>
    %cst_98 = arith.constant 0.000000e+00 : f32
    %171 = vector.broadcast %cst_98 : f32 to vector<14x128xf32>
    %172 = arith.maximumf %170, %171 : vector<14x128xf32>
    %c182 = arith.constant 182 : index
    %c0_99 = arith.constant 0 : index
    %173 = vector.load %arg14[%c182, %c0_99] : memref<200x128xf32, #tpu.memory_space<vmem>>, vector<14x128xf32>
    tpu.vector_store %arg14[%c182, %c0_99], %172 {strides = array<i32>} : memref<200x128xf32, #tpu.memory_space<vmem>>, vector<14x128xf32>,
    %cst_100 = arith.constant 0.000000e+00 : f32
    %174 = vector.broadcast %cst_100 : f32 to vector<136x128xf32>
    %c0_101 = arith.constant 0 : index
    %c0_102 = arith.constant 0 : index
    %175 = vector.load %arg14[%c0_101, %c0_102] : memref<200x128xf32, #tpu.memory_space<vmem>>, vector<136x8xf32>
    %176 = arith.truncf %175 : vector<136x8xf32> to vector<136x8xbf16>
    %c0_103 = arith.constant 0 : index
    %c0_104 = arith.constant 0 : index
    %c0_105 = arith.constant 0 : index
    %177 = vector.load %arg4[%c0_103, %c0_104, %c0_105] : memref<25x8x128xbf16, #tpu.memory_space<vmem>>, vector<1x8x128xbf16>
    %178 = vector.shape_cast %177 : vector<1x8x128xbf16> to vector<8x128xbf16>
    %cst_106 = arith.constant dense<0.000000e+00> : vector<136x128xf32>
    %179 = tpu.matmul %176, %178, %cst_106 {dimension_numbers = #tpu.dot_dimension_numbers<[1], [0], [0], [1], [0, 0, 1, 1], [], []>} : vector<136x8xbf16>, vector<8x128xbf16>, vector<136x128xf32> -> vector<136x128xf32>
    %180 = arith.addf %174, %179 : vector<136x128xf32>
    %c1_107 = arith.constant 1 : index
    %c0_108 = arith.constant 0 : index
    %181 = vector.load %arg14[%c1_107, %c0_108] : memref<200x128xf32, #tpu.memory_space<vmem>>, vector<136x8xf32>
    %182 = arith.truncf %181 : vector<136x8xf32> to vector<136x8xbf16>
    %c1_109 = arith.constant 1 : index
    %c0_110 = arith.constant 0 : index
    %c0_111 = arith.constant 0 : index
    %183 = vector.load %arg4[%c1_109, %c0_110, %c0_111] : memref<25x8x128xbf16, #tpu.memory_space<vmem>>, vector<1x8x128xbf16>
    %184 = vector.shape_cast %183 : vector<1x8x128xbf16> to vector<8x128xbf16>
    %cst_112 = arith.constant dense<0.000000e+00> : vector<136x128xf32>
    %185 = tpu.matmul %182, %184, %cst_112 {dimension_numbers = #tpu.dot_dimension_numbers<[1], [0], [0], [1], [0, 0, 1, 1], [], []>} : vector<136x8xbf16>, vector<8x128xbf16>, vector<136x128xf32> -> vector<136x128xf32>
    %186 = arith.addf %180, %185 : vector<136x128xf32>
    %c2 = arith.constant 2 : index
    %c0_113 = arith.constant 0 : index
    %187 = vector.load %arg14[%c2, %c0_113] : memref<200x128xf32, #tpu.memory_space<vmem>>, vector<136x8xf32>
    %188 = arith.truncf %187 : vector<136x8xf32> to vector<136x8xbf16>
    %c2_114 = arith.constant 2 : index
    %c0_115 = arith.constant 0 : index
    %c0_116 = arith.constant 0 : index
    %189 = vector.load %arg4[%c2_114, %c0_115, %c0_116] : memref<25x8x128xbf16, #tpu.memory_space<vmem>>, vector<1x8x128xbf16>
    %190 = vector.shape_cast %189 : vector<1x8x128xbf16> to vector<8x128xbf16>
    %cst_117 = arith.constant dense<0.000000e+00> : vector<136x128xf32>
    %191 = tpu.matmul %188, %190, %cst_117 {dimension_numbers = #tpu.dot_dimension_numbers<[1], [0], [0], [1], [0, 0, 1, 1], [], []>} : vector<136x8xbf16>, vector<8x128xbf16>, vector<136x128xf32> -> vector<136x128xf32>
    %192 = arith.addf %186, %191 : vector<136x128xf32>
    %c3 = arith.constant 3 : index
    %c0_118 = arith.constant 0 : index
    %193 = vector.load %arg14[%c3, %c0_118] : memref<200x128xf32, #tpu.memory_space<vmem>>, vector<136x8xf32>
    %194 = arith.truncf %193 : vector<136x8xf32> to vector<136x8xbf16>
    %c3_119 = arith.constant 3 : index
    %c0_120 = arith.constant 0 : index
    %c0_121 = arith.constant 0 : index
    %195 = vector.load %arg4[%c3_119, %c0_120, %c0_121] : memref<25x8x128xbf16, #tpu.memory_space<vmem>>, vector<1x8x128xbf16>
    %196 = vector.shape_cast %195 : vector<1x8x128xbf16> to vector<8x128xbf16>
    %cst_122 = arith.constant dense<0.000000e+00> : vector<136x128xf32>
    %197 = tpu.matmul %194, %196, %cst_122 {dimension_numbers = #tpu.dot_dimension_numbers<[1], [0], [0], [1], [0, 0, 1, 1], [], []>} : vector<136x8xbf16>, vector<8x128xbf16>, vector<136x128xf32> -> vector<136x128xf32>
    %198 = arith.addf %192, %197 : vector<136x128xf32>
    %c4 = arith.constant 4 : index
    %c0_123 = arith.constant 0 : index
    %199 = vector.load %arg14[%c4, %c0_123] : memref<200x128xf32, #tpu.memory_space<vmem>>, vector<136x8xf32>
    %200 = arith.truncf %199 : vector<136x8xf32> to vector<136x8xbf16>
    %c4_124 = arith.constant 4 : index
    %c0_125 = arith.constant 0 : index
    %c0_126 = arith.constant 0 : index
    %201 = vector.load %arg4[%c4_124, %c0_125, %c0_126] : memref<25x8x128xbf16, #tpu.memory_space<vmem>>, vector<1x8x128xbf16>
    %202 = vector.shape_cast %201 : vector<1x8x128xbf16> to vector<8x128xbf16>
    %cst_127 = arith.constant dense<0.000000e+00> : vector<136x128xf32>
    %203 = tpu.matmul %200, %202, %cst_127 {dimension_numbers = #tpu.dot_dimension_numbers<[1], [0], [0], [1], [0, 0, 1, 1], [], []>} : vector<136x8xbf16>, vector<8x128xbf16>, vector<136x128xf32> -> vector<136x128xf32>
    %204 = arith.addf %198, %203 : vector<136x128xf32>
    %c14_128 = arith.constant 14 : index
    %c0_129 = arith.constant 0 : index
    %205 = vector.load %arg14[%c14_128, %c0_129] : memref<200x128xf32, #tpu.memory_space<vmem>>, vector<136x8xf32>
    %206 = arith.truncf %205 : vector<136x8xf32> to vector<136x8xbf16>
    %c5 = arith.constant 5 : index
    %c0_130 = arith.constant 0 : index
    %c0_131 = arith.constant 0 : index
    %207 = vector.load %arg4[%c5, %c0_130, %c0_131] : memref<25x8x128xbf16, #tpu.memory_space<vmem>>, vector<1x8x128xbf16>
    %208 = vector.shape_cast %207 : vector<1x8x128xbf16> to vector<8x128xbf16>
    %cst_132 = arith.constant dense<0.000000e+00> : vector<136x128xf32>
    %209 = tpu.matmul %206, %208, %cst_132 {dimension_numbers = #tpu.dot_dimension_numbers<[1], [0], [0], [1], [0, 0, 1, 1], [], []>} : vector<136x8xbf16>, vector<8x128xbf16>, vector<136x128xf32> -> vector<136x128xf32>
    %210 = arith.addf %204, %209 : vector<136x128xf32>
    %c15 = arith.constant 15 : index
    %c0_133 = arith.constant 0 : index
    %211 = vector.load %arg14[%c15, %c0_133] : memref<200x128xf32, #tpu.memory_space<vmem>>, vector<136x8xf32>
    %212 = arith.truncf %211 : vector<136x8xf32> to vector<136x8xbf16>
    %c6 = arith.constant 6 : index
    %c0_134 = arith.constant 0 : index
    %c0_135 = arith.constant 0 : index
    %213 = vector.load %arg4[%c6, %c0_134, %c0_135] : memref<25x8x128xbf16, #tpu.memory_space<vmem>>, vector<1x8x128xbf16>
    %214 = vector.shape_cast %213 : vector<1x8x128xbf16> to vector<8x128xbf16>
    %cst_136 = arith.constant dense<0.000000e+00> : vector<136x128xf32>
    %215 = tpu.matmul %212, %214, %cst_136 {dimension_numbers = #tpu.dot_dimension_numbers<[1], [0], [0], [1], [0, 0, 1, 1], [], []>} : vector<136x8xbf16>, vector<8x128xbf16>, vector<136x128xf32> -> vector<136x128xf32>
    %216 = arith.addf %210, %215 : vector<136x128xf32>
    %c16 = arith.constant 16 : index
    %c0_137 = arith.constant 0 : index
    %217 = vector.load %arg14[%c16, %c0_137] : memref<200x128xf32, #tpu.memory_space<vmem>>, vector<136x8xf32>
    %218 = arith.truncf %217 : vector<136x8xf32> to vector<136x8xbf16>
    %c7 = arith.constant 7 : index
    %c0_138 = arith.constant 0 : index
    %c0_139 = arith.constant 0 : index
    %219 = vector.load %arg4[%c7, %c0_138, %c0_139] : memref<25x8x128xbf16, #tpu.memory_space<vmem>>, vector<1x8x128xbf16>
    %220 = vector.shape_cast %219 : vector<1x8x128xbf16> to vector<8x128xbf16>
    %cst_140 = arith.constant dense<0.000000e+00> : vector<136x128xf32>
    %221 = tpu.matmul %218, %220, %cst_140 {dimension_numbers = #tpu.dot_dimension_numbers<[1], [0], [0], [1], [0, 0, 1, 1], [], []>} : vector<136x8xbf16>, vector<8x128xbf16>, vector<136x128xf32> -> vector<136x128xf32>
    %222 = arith.addf %216, %221 : vector<136x128xf32>
    %c17 = arith.constant 17 : index
    %c0_141 = arith.constant 0 : index
    %223 = vector.load %arg14[%c17, %c0_141] : memref<200x128xf32, #tpu.memory_space<vmem>>, vector<136x8xf32>
    %224 = arith.truncf %223 : vector<136x8xf32> to vector<136x8xbf16>
    %c8 = arith.constant 8 : index
    %c0_142 = arith.constant 0 : index
    %c0_143 = arith.constant 0 : index
    %225 = vector.load %arg4[%c8, %c0_142, %c0_143] : memref<25x8x128xbf16, #tpu.memory_space<vmem>>, vector<1x8x128xbf16>
    %226 = vector.shape_cast %225 : vector<1x8x128xbf16> to vector<8x128xbf16>
    %cst_144 = arith.constant dense<0.000000e+00> : vector<136x128xf32>
    %227 = tpu.matmul %224, %226, %cst_144 {dimension_numbers = #tpu.dot_dimension_numbers<[1], [0], [0], [1], [0, 0, 1, 1], [], []>} : vector<136x8xbf16>, vector<8x128xbf16>, vector<136x128xf32> -> vector<136x128xf32>
    %228 = arith.addf %222, %227 : vector<136x128xf32>
    %c18 = arith.constant 18 : index
    %c0_145 = arith.constant 0 : index
    %229 = vector.load %arg14[%c18, %c0_145] : memref<200x128xf32, #tpu.memory_space<vmem>>, vector<136x8xf32>
    %230 = arith.truncf %229 : vector<136x8xf32> to vector<136x8xbf16>
    %c9 = arith.constant 9 : index
    %c0_146 = arith.constant 0 : index
    %c0_147 = arith.constant 0 : index
    %231 = vector.load %arg4[%c9, %c0_146, %c0_147] : memref<25x8x128xbf16, #tpu.memory_space<vmem>>, vector<1x8x128xbf16>
    %232 = vector.shape_cast %231 : vector<1x8x128xbf16> to vector<8x128xbf16>
    %cst_148 = arith.constant dense<0.000000e+00> : vector<136x128xf32>
    %233 = tpu.matmul %230, %232, %cst_148 {dimension_numbers = #tpu.dot_dimension_numbers<[1], [0], [0], [1], [0, 0, 1, 1], [], []>} : vector<136x8xbf16>, vector<8x128xbf16>, vector<136x128xf32> -> vector<136x128xf32>
    %234 = arith.addf %228, %233 : vector<136x128xf32>
    %c28_149 = arith.constant 28 : index
    %c0_150 = arith.constant 0 : index
    %235 = vector.load %arg14[%c28_149, %c0_150] : memref<200x128xf32, #tpu.memory_space<vmem>>, vector<136x8xf32>
    %236 = arith.truncf %235 : vector<136x8xf32> to vector<136x8xbf16>
    %c10 = arith.constant 10 : index
    %c0_151 = arith.constant 0 : index
    %c0_152 = arith.constant 0 : index
    %237 = vector.load %arg4[%c10, %c0_151, %c0_152] : memref<25x8x128xbf16, #tpu.memory_space<vmem>>, vector<1x8x128xbf16>
    %238 = vector.shape_cast %237 : vector<1x8x128xbf16> to vector<8x128xbf16>
    %cst_153 = arith.constant dense<0.000000e+00> : vector<136x128xf32>
    %239 = tpu.matmul %236, %238, %cst_153 {dimension_numbers = #tpu.dot_dimension_numbers<[1], [0], [0], [1], [0, 0, 1, 1], [], []>} : vector<136x8xbf16>, vector<8x128xbf16>, vector<136x128xf32> -> vector<136x128xf32>
    %240 = arith.addf %234, %239 : vector<136x128xf32>
    %c29_154 = arith.constant 29 : index
    %c0_155 = arith.constant 0 : index
    %241 = vector.load %arg14[%c29_154, %c0_155] : memref<200x128xf32, #tpu.memory_space<vmem>>, vector<136x8xf32>
    %242 = arith.truncf %241 : vector<136x8xf32> to vector<136x8xbf16>
    %c11 = arith.constant 11 : index
    %c0_156 = arith.constant 0 : index
    %c0_157 = arith.constant 0 : index
    %243 = vector.load %arg4[%c11, %c0_156, %c0_157] : memref<25x8x128xbf16, #tpu.memory_space<vmem>>, vector<1x8x128xbf16>
    %244 = vector.shape_cast %243 : vector<1x8x128xbf16> to vector<8x128xbf16>
    %cst_158 = arith.constant dense<0.000000e+00> : vector<136x128xf32>
    %245 = tpu.matmul %242, %244, %cst_158 {dimension_numbers = #tpu.dot_dimension_numbers<[1], [0], [0], [1], [0, 0, 1, 1], [], []>} : vector<136x8xbf16>, vector<8x128xbf16>, vector<136x128xf32> -> vector<136x128xf32>
    %246 = arith.addf %240, %245 : vector<136x128xf32>
    %c30 = arith.constant 30 : index
    %c0_159 = arith.constant 0 : index
    %247 = vector.load %arg14[%c30, %c0_159] : memref<200x128xf32, #tpu.memory_space<vmem>>, vector<136x8xf32>
    %248 = arith.truncf %247 : vector<136x8xf32> to vector<136x8xbf16>
    %c12 = arith.constant 12 : index
    %c0_160 = arith.constant 0 : index
    %c0_161 = arith.constant 0 : index
    %249 = vector.load %arg4[%c12, %c0_160, %c0_161] : memref<25x8x128xbf16, #tpu.memory_space<vmem>>, vector<1x8x128xbf16>
    %250 = vector.shape_cast %249 : vector<1x8x128xbf16> to vector<8x128xbf16>
    %cst_162 = arith.constant dense<0.000000e+00> : vector<136x128xf32>
    %251 = tpu.matmul %248, %250, %cst_162 {dimension_numbers = #tpu.dot_dimension_numbers<[1], [0], [0], [1], [0, 0, 1, 1], [], []>} : vector<136x8xbf16>, vector<8x128xbf16>, vector<136x128xf32> -> vector<136x128xf32>
    %252 = arith.addf %246, %251 : vector<136x128xf32>
    %c31 = arith.constant 31 : index
    %c0_163 = arith.constant 0 : index
    %253 = vector.load %arg14[%c31, %c0_163] : memref<200x128xf32, #tpu.memory_space<vmem>>, vector<136x8xf32>
    %254 = arith.truncf %253 : vector<136x8xf32> to vector<136x8xbf16>
    %c13 = arith.constant 13 : index
    %c0_164 = arith.constant 0 : index
    %c0_165 = arith.constant 0 : index
    %255 = vector.load %arg4[%c13, %c0_164, %c0_165] : memref<25x8x128xbf16, #tpu.memory_space<vmem>>, vector<1x8x128xbf16>
    %256 = vector.shape_cast %255 : vector<1x8x128xbf16> to vector<8x128xbf16>
    %cst_166 = arith.constant dense<0.000000e+00> : vector<136x128xf32>
    %257 = tpu.matmul %254, %256, %cst_166 {dimension_numbers = #tpu.dot_dimension_numbers<[1], [0], [0], [1], [0, 0, 1, 1], [], []>} : vector<136x8xbf16>, vector<8x128xbf16>, vector<136x128xf32> -> vector<136x128xf32>
    %258 = arith.addf %252, %257 : vector<136x128xf32>
    %c32 = arith.constant 32 : index
    %c0_167 = arith.constant 0 : index
    %259 = vector.load %arg14[%c32, %c0_167] : memref<200x128xf32, #tpu.memory_space<vmem>>, vector<136x8xf32>
    %260 = arith.truncf %259 : vector<136x8xf32> to vector<136x8xbf16>
    %c14_168 = arith.constant 14 : index
    %c0_169 = arith.constant 0 : index
    %c0_170 = arith.constant 0 : index
    %261 = vector.load %arg4[%c14_168, %c0_169, %c0_170] : memref<25x8x128xbf16, #tpu.memory_space<vmem>>, vector<1x8x128xbf16>
    %262 = vector.shape_cast %261 : vector<1x8x128xbf16> to vector<8x128xbf16>
    %cst_171 = arith.constant dense<0.000000e+00> : vector<136x128xf32>
    %263 = tpu.matmul %260, %262, %cst_171 {dimension_numbers = #tpu.dot_dimension_numbers<[1], [0], [0], [1], [0, 0, 1, 1], [], []>} : vector<136x8xbf16>, vector<8x128xbf16>, vector<136x128xf32> -> vector<136x128xf32>
    %264 = arith.addf %258, %263 : vector<136x128xf32>
    %c42_172 = arith.constant 42 : index
    %c0_173 = arith.constant 0 : index
    %265 = vector.load %arg14[%c42_172, %c0_173] : memref<200x128xf32, #tpu.memory_space<vmem>>, vector<136x8xf32>
    %266 = arith.truncf %265 : vector<136x8xf32> to vector<136x8xbf16>
    %c15_174 = arith.constant 15 : index
    %c0_175 = arith.constant 0 : index
    %c0_176 = arith.constant 0 : index
    %267 = vector.load %arg4[%c15_174, %c0_175, %c0_176] : memref<25x8x128xbf16, #tpu.memory_space<vmem>>, vector<1x8x128xbf16>
    %268 = vector.shape_cast %267 : vector<1x8x128xbf16> to vector<8x128xbf16>
    %cst_177 = arith.constant dense<0.000000e+00> : vector<136x128xf32>
    %269 = tpu.matmul %266, %268, %cst_177 {dimension_numbers = #tpu.dot_dimension_numbers<[1], [0], [0], [1], [0, 0, 1, 1], [], []>} : vector<136x8xbf16>, vector<8x128xbf16>, vector<136x128xf32> -> vector<136x128xf32>
    %270 = arith.addf %264, %269 : vector<136x128xf32>
    %c43 = arith.constant 43 : index
    %c0_178 = arith.constant 0 : index
    %271 = vector.load %arg14[%c43, %c0_178] : memref<200x128xf32, #tpu.memory_space<vmem>>, vector<136x8xf32>
    %272 = arith.truncf %271 : vector<136x8xf32> to vector<136x8xbf16>
    %c16_179 = arith.constant 16 : index
    %c0_180 = arith.constant 0 : index
    %c0_181 = arith.constant 0 : index
    %273 = vector.load %arg4[%c16_179, %c0_180, %c0_181] : memref<25x8x128xbf16, #tpu.memory_space<vmem>>, vector<1x8x128xbf16>
    %274 = vector.shape_cast %273 : vector<1x8x128xbf16> to vector<8x128xbf16>
    %cst_182 = arith.constant dense<0.000000e+00> : vector<136x128xf32>
    %275 = tpu.matmul %272, %274, %cst_182 {dimension_numbers = #tpu.dot_dimension_numbers<[1], [0], [0], [1], [0, 0, 1, 1], [], []>} : vector<136x8xbf16>, vector<8x128xbf16>, vector<136x128xf32> -> vector<136x128xf32>
    %276 = arith.addf %270, %275 : vector<136x128xf32>
    %c44 = arith.constant 44 : index
    %c0_183 = arith.constant 0 : index
    %277 = vector.load %arg14[%c44, %c0_183] : memref<200x128xf32, #tpu.memory_space<vmem>>, vector<136x8xf32>
    %278 = arith.truncf %277 : vector<136x8xf32> to vector<136x8xbf16>
    %c17_184 = arith.constant 17 : index
    %c0_185 = arith.constant 0 : index
    %c0_186 = arith.constant 0 : index
    %279 = vector.load %arg4[%c17_184, %c0_185, %c0_186] : memref<25x8x128xbf16, #tpu.memory_space<vmem>>, vector<1x8x128xbf16>
    %280 = vector.shape_cast %279 : vector<1x8x128xbf16> to vector<8x128xbf16>
    %cst_187 = arith.constant dense<0.000000e+00> : vector<136x128xf32>
    %281 = tpu.matmul %278, %280, %cst_187 {dimension_numbers = #tpu.dot_dimension_numbers<[1], [0], [0], [1], [0, 0, 1, 1], [], []>} : vector<136x8xbf16>, vector<8x128xbf16>, vector<136x128xf32> -> vector<136x128xf32>
    %282 = arith.addf %276, %281 : vector<136x128xf32>
    %c45 = arith.constant 45 : index
    %c0_188 = arith.constant 0 : index
    %283 = vector.load %arg14[%c45, %c0_188] : memref<200x128xf32, #tpu.memory_space<vmem>>, vector<136x8xf32>
    %284 = arith.truncf %283 : vector<136x8xf32> to vector<136x8xbf16>
    %c18_189 = arith.constant 18 : index
    %c0_190 = arith.constant 0 : index
    %c0_191 = arith.constant 0 : index
    %285 = vector.load %arg4[%c18_189, %c0_190, %c0_191] : memref<25x8x128xbf16, #tpu.memory_space<vmem>>, vector<1x8x128xbf16>
    %286 = vector.shape_cast %285 : vector<1x8x128xbf16> to vector<8x128xbf16>
    %cst_192 = arith.constant dense<0.000000e+00> : vector<136x128xf32>
    %287 = tpu.matmul %284, %286, %cst_192 {dimension_numbers = #tpu.dot_dimension_numbers<[1], [0], [0], [1], [0, 0, 1, 1], [], []>} : vector<136x8xbf16>, vector<8x128xbf16>, vector<136x128xf32> -> vector<136x128xf32>
    %288 = arith.addf %282, %287 : vector<136x128xf32>
    %c46 = arith.constant 46 : index
    %c0_193 = arith.constant 0 : index
    %289 = vector.load %arg14[%c46, %c0_193] : memref<200x128xf32, #tpu.memory_space<vmem>>, vector<136x8xf32>
    %290 = arith.truncf %289 : vector<136x8xf32> to vector<136x8xbf16>
    %c19 = arith.constant 19 : index
    %c0_194 = arith.constant 0 : index
    %c0_195 = arith.constant 0 : index
    %291 = vector.load %arg4[%c19, %c0_194, %c0_195] : memref<25x8x128xbf16, #tpu.memory_space<vmem>>, vector<1x8x128xbf16>
    %292 = vector.shape_cast %291 : vector<1x8x128xbf16> to vector<8x128xbf16>
    %cst_196 = arith.constant dense<0.000000e+00> : vector<136x128xf32>
    %293 = tpu.matmul %290, %292, %cst_196 {dimension_numbers = #tpu.dot_dimension_numbers<[1], [0], [0], [1], [0, 0, 1, 1], [], []>} : vector<136x8xbf16>, vector<8x128xbf16>, vector<136x128xf32> -> vector<136x128xf32>
    %294 = arith.addf %288, %293 : vector<136x128xf32>
    %c56_197 = arith.constant 56 : index
    %c0_198 = arith.constant 0 : index
    %295 = vector.load %arg14[%c56_197, %c0_198] : memref<200x128xf32, #tpu.memory_space<vmem>>, vector<136x8xf32>
    %296 = arith.truncf %295 : vector<136x8xf32> to vector<136x8xbf16>
    %c20 = arith.constant 20 : index
    %c0_199 = arith.constant 0 : index
    %c0_200 = arith.constant 0 : index
    %297 = vector.load %arg4[%c20, %c0_199, %c0_200] : memref<25x8x128xbf16, #tpu.memory_space<vmem>>, vector<1x8x128xbf16>
    %298 = vector.shape_cast %297 : vector<1x8x128xbf16> to vector<8x128xbf16>
    %cst_201 = arith.constant dense<0.000000e+00> : vector<136x128xf32>
    %299 = tpu.matmul %296, %298, %cst_201 {dimension_numbers = #tpu.dot_dimension_numbers<[1], [0], [0], [1], [0, 0, 1, 1], [], []>} : vector<136x8xbf16>, vector<8x128xbf16>, vector<136x128xf32> -> vector<136x128xf32>
    %300 = arith.addf %294, %299 : vector<136x128xf32>
    %c57_202 = arith.constant 57 : index
    %c0_203 = arith.constant 0 : index
    %301 = vector.load %arg14[%c57_202, %c0_203] : memref<200x128xf32, #tpu.memory_space<vmem>>, vector<136x8xf32>
    %302 = arith.truncf %301 : vector<136x8xf32> to vector<136x8xbf16>
    %c21 = arith.constant 21 : index
    %c0_204 = arith.constant 0 : index
    %c0_205 = arith.constant 0 : index
    %303 = vector.load %arg4[%c21, %c0_204, %c0_205] : memref<25x8x128xbf16, #tpu.memory_space<vmem>>, vector<1x8x128xbf16>
    %304 = vector.shape_cast %303 : vector<1x8x128xbf16> to vector<8x128xbf16>
    %cst_206 = arith.constant dense<0.000000e+00> : vector<136x128xf32>
    %305 = tpu.matmul %302, %304, %cst_206 {dimension_numbers = #tpu.dot_dimension_numbers<[1], [0], [0], [1], [0, 0, 1, 1], [], []>} : vector<136x8xbf16>, vector<8x128xbf16>, vector<136x128xf32> -> vector<136x128xf32>
    %306 = arith.addf %300, %305 : vector<136x128xf32>
    %c58 = arith.constant 58 : index
    %c0_207 = arith.constant 0 : index
    %307 = vector.load %arg14[%c58, %c0_207] : memref<200x128xf32, #tpu.memory_space<vmem>>, vector<136x8xf32>
    %308 = arith.truncf %307 : vector<136x8xf32> to vector<136x8xbf16>
    %c22 = arith.constant 22 : index
    %c0_208 = arith.constant 0 : index
    %c0_209 = arith.constant 0 : index
    %309 = vector.load %arg4[%c22, %c0_208, %c0_209] : memref<25x8x128xbf16, #tpu.memory_space<vmem>>, vector<1x8x128xbf16>
    %310 = vector.shape_cast %309 : vector<1x8x128xbf16> to vector<8x128xbf16>
    %cst_210 = arith.constant dense<0.000000e+00> : vector<136x128xf32>
    %311 = tpu.matmul %308, %310, %cst_210 {dimension_numbers = #tpu.dot_dimension_numbers<[1], [0], [0], [1], [0, 0, 1, 1], [], []>} : vector<136x8xbf16>, vector<8x128xbf16>, vector<136x128xf32> -> vector<136x128xf32>
    %312 = arith.addf %306, %311 : vector<136x128xf32>
    %c59 = arith.constant 59 : index
    %c0_211 = arith.constant 0 : index
    %313 = vector.load %arg14[%c59, %c0_211] : memref<200x128xf32, #tpu.memory_space<vmem>>, vector<136x8xf32>
    %314 = arith.truncf %313 : vector<136x8xf32> to vector<136x8xbf16>
    %c23 = arith.constant 23 : index
    %c0_212 = arith.constant 0 : index
    %c0_213 = arith.constant 0 : index
    %315 = vector.load %arg4[%c23, %c0_212, %c0_213] : memref<25x8x128xbf16, #tpu.memory_space<vmem>>, vector<1x8x128xbf16>
    %316 = vector.shape_cast %315 : vector<1x8x128xbf16> to vector<8x128xbf16>
    %cst_214 = arith.constant dense<0.000000e+00> : vector<136x128xf32>
    %317 = tpu.matmul %314, %316, %cst_214 {dimension_numbers = #tpu.dot_dimension_numbers<[1], [0], [0], [1], [0, 0, 1, 1], [], []>} : vector<136x8xbf16>, vector<8x128xbf16>, vector<136x128xf32> -> vector<136x128xf32>
    %318 = arith.addf %312, %317 : vector<136x128xf32>
    %c60 = arith.constant 60 : index
    %c0_215 = arith.constant 0 : index
    %319 = vector.load %arg14[%c60, %c0_215] : memref<200x128xf32, #tpu.memory_space<vmem>>, vector<136x8xf32>
    %320 = arith.truncf %319 : vector<136x8xf32> to vector<136x8xbf16>
    %c24 = arith.constant 24 : index
    %c0_216 = arith.constant 0 : index
    %c0_217 = arith.constant 0 : index
    %321 = vector.load %arg4[%c24, %c0_216, %c0_217] : memref<25x8x128xbf16, #tpu.memory_space<vmem>>, vector<1x8x128xbf16>
    %322 = vector.shape_cast %321 : vector<1x8x128xbf16> to vector<8x128xbf16>
    %cst_218 = arith.constant dense<0.000000e+00> : vector<136x128xf32>
    %323 = tpu.matmul %320, %322, %cst_218 {dimension_numbers = #tpu.dot_dimension_numbers<[1], [0], [0], [1], [0, 0, 1, 1], [], []>} : vector<136x8xbf16>, vector<8x128xbf16>, vector<136x128xf32> -> vector<136x128xf32>
    %324 = arith.addf %318, %323 : vector<136x128xf32>
    %c0_219 = arith.constant 0 : index
    %c0_220 = arith.constant 0 : index
    %325 = vector.load %arg15[%c0_219, %c0_220] : memref<136x128xf32, #tpu.memory_space<vmem>>, vector<136x128xf32>
    tpu.vector_store %arg15[%c0_219, %c0_220], %324 {strides = array<i32>} : memref<136x128xf32, #tpu.memory_space<vmem>>, vector<136x128xf32>,
    %c0_221 = arith.constant 0 : index
    %c0_222 = arith.constant 0 : index
    %326 = vector.load %arg5[%c0_221, %c0_222] : memref<1x128xf32, #tpu.memory_space<vmem>>, vector<1x128xf32>
    %c0_223 = arith.constant 0 : index
    %c0_224 = arith.constant 0 : index
    %327 = tpu.strided_load %arg15[%c0_223, %c0_224] {strides = array<i32: 2, 1>} : memref<136x128xf32, #tpu.memory_space<vmem>>, vector<5x128xf32>
    %c1_225 = arith.constant 1 : index
    %c0_226 = arith.constant 0 : index
    %328 = tpu.strided_load %arg15[%c1_225, %c0_226] {strides = array<i32: 2, 1>} : memref<136x128xf32, #tpu.memory_space<vmem>>, vector<5x128xf32>
    %c14_227 = arith.constant 14 : index
    %c0_228 = arith.constant 0 : index
    %329 = tpu.strided_load %arg15[%c14_227, %c0_228] {strides = array<i32: 2, 1>} : memref<136x128xf32, #tpu.memory_space<vmem>>, vector<5x128xf32>
    %c15_229 = arith.constant 15 : index
    %c0_230 = arith.constant 0 : index
    %330 = tpu.strided_load %arg15[%c15_229, %c0_230] {strides = array<i32: 2, 1>} : memref<136x128xf32, #tpu.memory_space<vmem>>, vector<5x128xf32>
    %331 = arith.maximumf %327, %328 : vector<5x128xf32>
    %332 = arith.maximumf %329, %330 : vector<5x128xf32>
    %333 = arith.maximumf %331, %332 : vector<5x128xf32>
    %334 = vector.broadcast %326 : vector<1x128xf32> to vector<5x128xf32>
    %335 = arith.addf %333, %334 : vector<5x128xf32>
    %cst_231 = arith.constant 0.000000e+00 : f32
    %336 = vector.broadcast %cst_231 : f32 to vector<5x128xf32>
    %337 = arith.maximumf %335, %336 : vector<5x128xf32>
    %338 = vector.extract_strided_slice %337 {offsets = [0, 0], sizes = [1, 16], strides = [1, 1]} : vector<5x128xf32> to vector<1x16xf32>
    %c0_232 = arith.constant 0 : index
    %c0_233 = arith.constant 0 : index
    %339 = vector.load %arg16[%c0_232, %c0_233] : memref<1x400xf32, #tpu.memory_space<vmem>>, vector<1x16xf32>
    tpu.vector_store %arg16[%c0_232, %c0_233], %338 {strides = array<i32>} : memref<1x400xf32, #tpu.memory_space<vmem>>, vector<1x16xf32>,
    %340 = vector.extract_strided_slice %337 {offsets = [1, 0], sizes = [1, 16], strides = [1, 1]} : vector<5x128xf32> to vector<1x16xf32>
    %c0_234 = arith.constant 0 : index
    %c16_235 = arith.constant 16 : index
    %341 = vector.load %arg16[%c0_234, %c16_235] : memref<1x400xf32, #tpu.memory_space<vmem>>, vector<1x16xf32>
    tpu.vector_store %arg16[%c0_234, %c16_235], %340 {strides = array<i32>} : memref<1x400xf32, #tpu.memory_space<vmem>>, vector<1x16xf32>,
    %342 = vector.extract_strided_slice %337 {offsets = [2, 0], sizes = [1, 16], strides = [1, 1]} : vector<5x128xf32> to vector<1x16xf32>
    %c0_236 = arith.constant 0 : index
    %c32_237 = arith.constant 32 : index
    %343 = vector.load %arg16[%c0_236, %c32_237] : memref<1x400xf32, #tpu.memory_space<vmem>>, vector<1x16xf32>
    tpu.vector_store %arg16[%c0_236, %c32_237], %342 {strides = array<i32>} : memref<1x400xf32, #tpu.memory_space<vmem>>, vector<1x16xf32>,
    %344 = vector.extract_strided_slice %337 {offsets = [3, 0], sizes = [1, 16], strides = [1, 1]} : vector<5x128xf32> to vector<1x16xf32>
    %c0_238 = arith.constant 0 : index
    %c48 = arith.constant 48 : index
    %345 = vector.load %arg16[%c0_238, %c48] : memref<1x400xf32, #tpu.memory_space<vmem>>, vector<1x16xf32>
    tpu.vector_store %arg16[%c0_238, %c48], %344 {strides = array<i32>} : memref<1x400xf32, #tpu.memory_space<vmem>>, vector<1x16xf32>,
    %346 = vector.extract_strided_slice %337 {offsets = [4, 0], sizes = [1, 16], strides = [1, 1]} : vector<5x128xf32> to vector<1x16xf32>
    %c0_239 = arith.constant 0 : index
    %c64 = arith.constant 64 : index
    %347 = vector.load %arg16[%c0_239, %c64] : memref<1x400xf32, #tpu.memory_space<vmem>>, vector<1x16xf32>
    tpu.vector_store %arg16[%c0_239, %c64], %346 {strides = array<i32>} : memref<1x400xf32, #tpu.memory_space<vmem>>, vector<1x16xf32>,
    %c28_240 = arith.constant 28 : index
    %c0_241 = arith.constant 0 : index
    %348 = tpu.strided_load %arg15[%c28_240, %c0_241] {strides = array<i32: 2, 1>} : memref<136x128xf32, #tpu.memory_space<vmem>>, vector<5x128xf32>
    %c29_242 = arith.constant 29 : index
    %c0_243 = arith.constant 0 : index
    %349 = tpu.strided_load %arg15[%c29_242, %c0_243] {strides = array<i32: 2, 1>} : memref<136x128xf32, #tpu.memory_space<vmem>>, vector<5x128xf32>
    %c42_244 = arith.constant 42 : index
    %c0_245 = arith.constant 0 : index
    %350 = tpu.strided_load %arg15[%c42_244, %c0_245] {strides = array<i32: 2, 1>} : memref<136x128xf32, #tpu.memory_space<vmem>>, vector<5x128xf32>
    %c43_246 = arith.constant 43 : index
    %c0_247 = arith.constant 0 : index
    %351 = tpu.strided_load %arg15[%c43_246, %c0_247] {strides = array<i32: 2, 1>} : memref<136x128xf32, #tpu.memory_space<vmem>>, vector<5x128xf32>
    %352 = arith.maximumf %348, %349 : vector<5x128xf32>
    %353 = arith.maximumf %350, %351 : vector<5x128xf32>
    %354 = arith.maximumf %352, %353 : vector<5x128xf32>
    %355 = vector.broadcast %326 : vector<1x128xf32> to vector<5x128xf32>
    %356 = arith.addf %354, %355 : vector<5x128xf32>
    %cst_248 = arith.constant 0.000000e+00 : f32
    %357 = vector.broadcast %cst_248 : f32 to vector<5x128xf32>
    %358 = arith.maximumf %356, %357 : vector<5x128xf32>
    %359 = vector.extract_strided_slice %358 {offsets = [0, 0], sizes = [1, 16], strides = [1, 1]} : vector<5x128xf32> to vector<1x16xf32>
    %c0_249 = arith.constant 0 : index
    %c80 = arith.constant 80 : index
    %360 = vector.load %arg16[%c0_249, %c80] : memref<1x400xf32, #tpu.memory_space<vmem>>, vector<1x16xf32>
    tpu.vector_store %arg16[%c0_249, %c80], %359 {strides = array<i32>} : memref<1x400xf32, #tpu.memory_space<vmem>>, vector<1x16xf32>,
    %361 = vector.extract_strided_slice %358 {offsets = [1, 0], sizes = [1, 16], strides = [1, 1]} : vector<5x128xf32> to vector<1x16xf32>
    %c0_250 = arith.constant 0 : index
    %c96 = arith.constant 96 : index
    %362 = vector.load %arg16[%c0_250, %c96] : memref<1x400xf32, #tpu.memory_space<vmem>>, vector<1x16xf32>
    tpu.vector_store %arg16[%c0_250, %c96], %361 {strides = array<i32>} : memref<1x400xf32, #tpu.memory_space<vmem>>, vector<1x16xf32>,
    %363 = vector.extract_strided_slice %358 {offsets = [2, 0], sizes = [1, 16], strides = [1, 1]} : vector<5x128xf32> to vector<1x16xf32>
    %c0_251 = arith.constant 0 : index
    %c112_252 = arith.constant 112 : index
    %364 = vector.load %arg16[%c0_251, %c112_252] : memref<1x400xf32, #tpu.memory_space<vmem>>, vector<1x16xf32>
    tpu.vector_store %arg16[%c0_251, %c112_252], %363 {strides = array<i32>} : memref<1x400xf32, #tpu.memory_space<vmem>>, vector<1x16xf32>,
    %365 = vector.extract_strided_slice %358 {offsets = [3, 0], sizes = [1, 16], strides = [1, 1]} : vector<5x128xf32> to vector<1x16xf32>
    %c0_253 = arith.constant 0 : index
    %c128 = arith.constant 128 : index
    %366 = vector.load %arg16[%c0_253, %c128] : memref<1x400xf32, #tpu.memory_space<vmem>>, vector<1x16xf32>
    tpu.vector_store %arg16[%c0_253, %c128], %365 {strides = array<i32>} : memref<1x400xf32, #tpu.memory_space<vmem>>, vector<1x16xf32>,
    %367 = vector.extract_strided_slice %358 {offsets = [4, 0], sizes = [1, 16], strides = [1, 1]} : vector<5x128xf32> to vector<1x16xf32>
    %c0_254 = arith.constant 0 : index
    %c144 = arith.constant 144 : index
    %368 = vector.load %arg16[%c0_254, %c144] : memref<1x400xf32, #tpu.memory_space<vmem>>, vector<1x16xf32>
    tpu.vector_store %arg16[%c0_254, %c144], %367 {strides = array<i32>} : memref<1x400xf32, #tpu.memory_space<vmem>>, vector<1x16xf32>,
    %c56_255 = arith.constant 56 : index
    %c0_256 = arith.constant 0 : index
    %369 = tpu.strided_load %arg15[%c56_255, %c0_256] {strides = array<i32: 2, 1>} : memref<136x128xf32, #tpu.memory_space<vmem>>, vector<5x128xf32>
    %c57_257 = arith.constant 57 : index
    %c0_258 = arith.constant 0 : index
    %370 = tpu.strided_load %arg15[%c57_257, %c0_258] {strides = array<i32: 2, 1>} : memref<136x128xf32, #tpu.memory_space<vmem>>, vector<5x128xf32>
    %c70_259 = arith.constant 70 : index
    %c0_260 = arith.constant 0 : index
    %371 = tpu.strided_load %arg15[%c70_259, %c0_260] {strides = array<i32: 2, 1>} : memref<136x128xf32, #tpu.memory_space<vmem>>, vector<5x128xf32>
    %c71 = arith.constant 71 : index
    %c0_261 = arith.constant 0 : index
    %372 = tpu.strided_load %arg15[%c71, %c0_261] {strides = array<i32: 2, 1>} : memref<136x128xf32, #tpu.memory_space<vmem>>, vector<5x128xf32>
    %373 = arith.maximumf %369, %370 : vector<5x128xf32>
    %374 = arith.maximumf %371, %372 : vector<5x128xf32>
    %375 = arith.maximumf %373, %374 : vector<5x128xf32>
    %376 = vector.broadcast %326 : vector<1x128xf32> to vector<5x128xf32>
    %377 = arith.addf %375, %376 : vector<5x128xf32>
    %cst_262 = arith.constant 0.000000e+00 : f32
    %378 = vector.broadcast %cst_262 : f32 to vector<5x128xf32>
    %379 = arith.maximumf %377, %378 : vector<5x128xf32>
    %380 = vector.extract_strided_slice %379 {offsets = [0, 0], sizes = [1, 16], strides = [1, 1]} : vector<5x128xf32> to vector<1x16xf32>
    %c0_263 = arith.constant 0 : index
    %c160 = arith.constant 160 : index
    %381 = vector.load %arg16[%c0_263, %c160] : memref<1x400xf32, #tpu.memory_space<vmem>>, vector<1x16xf32>
    tpu.vector_store %arg16[%c0_263, %c160], %380 {strides = array<i32>} : memref<1x400xf32, #tpu.memory_space<vmem>>, vector<1x16xf32>,
    %382 = vector.extract_strided_slice %379 {offsets = [1, 0], sizes = [1, 16], strides = [1, 1]} : vector<5x128xf32> to vector<1x16xf32>
    %c0_264 = arith.constant 0 : index
    %c176 = arith.constant 176 : index
    %383 = vector.load %arg16[%c0_264, %c176] : memref<1x400xf32, #tpu.memory_space<vmem>>, vector<1x16xf32>
    tpu.vector_store %arg16[%c0_264, %c176], %382 {strides = array<i32>} : memref<1x400xf32, #tpu.memory_space<vmem>>, vector<1x16xf32>,
    %384 = vector.extract_strided_slice %379 {offsets = [2, 0], sizes = [1, 16], strides = [1, 1]} : vector<5x128xf32> to vector<1x16xf32>
    %c0_265 = arith.constant 0 : index
    %c192 = arith.constant 192 : index
    %385 = vector.load %arg16[%c0_265, %c192] : memref<1x400xf32, #tpu.memory_space<vmem>>, vector<1x16xf32>
    tpu.vector_store %arg16[%c0_265, %c192], %384 {strides = array<i32>} : memref<1x400xf32, #tpu.memory_space<vmem>>, vector<1x16xf32>,
    %386 = vector.extract_strided_slice %379 {offsets = [3, 0], sizes = [1, 16], strides = [1, 1]} : vector<5x128xf32> to vector<1x16xf32>
    %c0_266 = arith.constant 0 : index
    %c208 = arith.constant 208 : index
    %387 = vector.load %arg16[%c0_266, %c208] : memref<1x400xf32, #tpu.memory_space<vmem>>, vector<1x16xf32>
    tpu.vector_store %arg16[%c0_266, %c208], %386 {strides = array<i32>} : memref<1x400xf32, #tpu.memory_space<vmem>>, vector<1x16xf32>,
    %388 = vector.extract_strided_slice %379 {offsets = [4, 0], sizes = [1, 16], strides = [1, 1]} : vector<5x128xf32> to vector<1x16xf32>
    %c0_267 = arith.constant 0 : index
    %c224_268 = arith.constant 224 : index
    %389 = vector.load %arg16[%c0_267, %c224_268] : memref<1x400xf32, #tpu.memory_space<vmem>>, vector<1x16xf32>
    tpu.vector_store %arg16[%c0_267, %c224_268], %388 {strides = array<i32>} : memref<1x400xf32, #tpu.memory_space<vmem>>, vector<1x16xf32>,
    %c84_269 = arith.constant 84 : index
    %c0_270 = arith.constant 0 : index
    %390 = tpu.strided_load %arg15[%c84_269, %c0_270] {strides = array<i32: 2, 1>} : memref<136x128xf32, #tpu.memory_space<vmem>>, vector<5x128xf32>
    %c85_271 = arith.constant 85 : index
    %c0_272 = arith.constant 0 : index
    %391 = tpu.strided_load %arg15[%c85_271, %c0_272] {strides = array<i32: 2, 1>} : memref<136x128xf32, #tpu.memory_space<vmem>>, vector<5x128xf32>
    %c98_273 = arith.constant 98 : index
    %c0_274 = arith.constant 0 : index
    %392 = tpu.strided_load %arg15[%c98_273, %c0_274] {strides = array<i32: 2, 1>} : memref<136x128xf32, #tpu.memory_space<vmem>>, vector<5x128xf32>
    %c99 = arith.constant 99 : index
    %c0_275 = arith.constant 0 : index
    %393 = tpu.strided_load %arg15[%c99, %c0_275] {strides = array<i32: 2, 1>} : memref<136x128xf32, #tpu.memory_space<vmem>>, vector<5x128xf32>
    %394 = arith.maximumf %390, %391 : vector<5x128xf32>
    %395 = arith.maximumf %392, %393 : vector<5x128xf32>
    %396 = arith.maximumf %394, %395 : vector<5x128xf32>
    %397 = vector.broadcast %326 : vector<1x128xf32> to vector<5x128xf32>
    %398 = arith.addf %396, %397 : vector<5x128xf32>
    %cst_276 = arith.constant 0.000000e+00 : f32
    %399 = vector.broadcast %cst_276 : f32 to vector<5x128xf32>
    %400 = arith.maximumf %398, %399 : vector<5x128xf32>
    %401 = vector.extract_strided_slice %400 {offsets = [0, 0], sizes = [1, 16], strides = [1, 1]} : vector<5x128xf32> to vector<1x16xf32>
    %c0_277 = arith.constant 0 : index
    %c240 = arith.constant 240 : index
    %402 = vector.load %arg16[%c0_277, %c240] : memref<1x400xf32, #tpu.memory_space<vmem>>, vector<1x16xf32>
    tpu.vector_store %arg16[%c0_277, %c240], %401 {strides = array<i32>} : memref<1x400xf32, #tpu.memory_space<vmem>>, vector<1x16xf32>,
    %403 = vector.extract_strided_slice %400 {offsets = [1, 0], sizes = [1, 16], strides = [1, 1]} : vector<5x128xf32> to vector<1x16xf32>
    %c0_278 = arith.constant 0 : index
    %c256 = arith.constant 256 : index
    %404 = vector.load %arg16[%c0_278, %c256] : memref<1x400xf32, #tpu.memory_space<vmem>>, vector<1x16xf32>
    tpu.vector_store %arg16[%c0_278, %c256], %403 {strides = array<i32>} : memref<1x400xf32, #tpu.memory_space<vmem>>, vector<1x16xf32>,
    %405 = vector.extract_strided_slice %400 {offsets = [2, 0], sizes = [1, 16], strides = [1, 1]} : vector<5x128xf32> to vector<1x16xf32>
    %c0_279 = arith.constant 0 : index
    %c272 = arith.constant 272 : index
    %406 = vector.load %arg16[%c0_279, %c272] : memref<1x400xf32, #tpu.memory_space<vmem>>, vector<1x16xf32>
    tpu.vector_store %arg16[%c0_279, %c272], %405 {strides = array<i32>} : memref<1x400xf32, #tpu.memory_space<vmem>>, vector<1x16xf32>,
    %407 = vector.extract_strided_slice %400 {offsets = [3, 0], sizes = [1, 16], strides = [1, 1]} : vector<5x128xf32> to vector<1x16xf32>
    %c0_280 = arith.constant 0 : index
    %c288 = arith.constant 288 : index
    %408 = vector.load %arg16[%c0_280, %c288] : memref<1x400xf32, #tpu.memory_space<vmem>>, vector<1x16xf32>
    tpu.vector_store %arg16[%c0_280, %c288], %407 {strides = array<i32>} : memref<1x400xf32, #tpu.memory_space<vmem>>, vector<1x16xf32>,
    %409 = vector.extract_strided_slice %400 {offsets = [4, 0], sizes = [1, 16], strides = [1, 1]} : vector<5x128xf32> to vector<1x16xf32>
    %c0_281 = arith.constant 0 : index
    %c304 = arith.constant 304 : index
    %410 = vector.load %arg16[%c0_281, %c304] : memref<1x400xf32, #tpu.memory_space<vmem>>, vector<1x16xf32>
    tpu.vector_store %arg16[%c0_281, %c304], %409 {strides = array<i32>} : memref<1x400xf32, #tpu.memory_space<vmem>>, vector<1x16xf32>,
    %c112_282 = arith.constant 112 : index
    %c0_283 = arith.constant 0 : index
    %411 = tpu.strided_load %arg15[%c112_282, %c0_283] {strides = array<i32: 2, 1>} : memref<136x128xf32, #tpu.memory_space<vmem>>, vector<5x128xf32>
    %c113_284 = arith.constant 113 : index
    %c0_285 = arith.constant 0 : index
    %412 = tpu.strided_load %arg15[%c113_284, %c0_285] {strides = array<i32: 2, 1>} : memref<136x128xf32, #tpu.memory_space<vmem>>, vector<5x128xf32>
    %c126_286 = arith.constant 126 : index
    %c0_287 = arith.constant 0 : index
    %413 = tpu.strided_load %arg15[%c126_286, %c0_287] {strides = array<i32: 2, 1>} : memref<136x128xf32, #tpu.memory_space<vmem>>, vector<5x128xf32>
    %c127 = arith.constant 127 : index
    %c0_288 = arith.constant 0 : index
    %414 = tpu.strided_load %arg15[%c127, %c0_288] {strides = array<i32: 2, 1>} : memref<136x128xf32, #tpu.memory_space<vmem>>, vector<5x128xf32>
    %415 = arith.maximumf %411, %412 : vector<5x128xf32>
    %416 = arith.maximumf %413, %414 : vector<5x128xf32>
    %417 = arith.maximumf %415, %416 : vector<5x128xf32>
    %418 = vector.broadcast %326 : vector<1x128xf32> to vector<5x128xf32>
    %419 = arith.addf %417, %418 : vector<5x128xf32>
    %cst_289 = arith.constant 0.000000e+00 : f32
    %420 = vector.broadcast %cst_289 : f32 to vector<5x128xf32>
    %421 = arith.maximumf %419, %420 : vector<5x128xf32>
    %422 = vector.extract_strided_slice %421 {offsets = [0, 0], sizes = [1, 16], strides = [1, 1]} : vector<5x128xf32> to vector<1x16xf32>
    %c0_290 = arith.constant 0 : index
    %c320 = arith.constant 320 : index
    %423 = vector.load %arg16[%c0_290, %c320] : memref<1x400xf32, #tpu.memory_space<vmem>>, vector<1x16xf32>
    tpu.vector_store %arg16[%c0_290, %c320], %422 {strides = array<i32>} : memref<1x400xf32, #tpu.memory_space<vmem>>, vector<1x16xf32>,
    %424 = vector.extract_strided_slice %421 {offsets = [1, 0], sizes = [1, 16], strides = [1, 1]} : vector<5x128xf32> to vector<1x16xf32>
    %c0_291 = arith.constant 0 : index
    %c336_292 = arith.constant 336 : index
    %425 = vector.load %arg16[%c0_291, %c336_292] : memref<1x400xf32, #tpu.memory_space<vmem>>, vector<1x16xf32>
    tpu.vector_store %arg16[%c0_291, %c336_292], %424 {strides = array<i32>} : memref<1x400xf32, #tpu.memory_space<vmem>>, vector<1x16xf32>,
    %426 = vector.extract_strided_slice %421 {offsets = [2, 0], sizes = [1, 16], strides = [1, 1]} : vector<5x128xf32> to vector<1x16xf32>
    %c0_293 = arith.constant 0 : index
    %c352 = arith.constant 352 : index
    %427 = vector.load %arg16[%c0_293, %c352] : memref<1x400xf32, #tpu.memory_space<vmem>>, vector<1x16xf32>
    tpu.vector_store %arg16[%c0_293, %c352], %426 {strides = array<i32>} : memref<1x400xf32, #tpu.memory_space<vmem>>, vector<1x16xf32>,
    %428 = vector.extract_strided_slice %421 {offsets = [3, 0], sizes = [1, 16], strides = [1, 1]} : vector<5x128xf32> to vector<1x16xf32>
    %c0_294 = arith.constant 0 : index
    %c368 = arith.constant 368 : index
    %429 = vector.load %arg16[%c0_294, %c368] : memref<1x400xf32, #tpu.memory_space<vmem>>, vector<1x16xf32>
    tpu.vector_store %arg16[%c0_294, %c368], %428 {strides = array<i32>} : memref<1x400xf32, #tpu.memory_space<vmem>>, vector<1x16xf32>,
    %430 = vector.extract_strided_slice %421 {offsets = [4, 0], sizes = [1, 16], strides = [1, 1]} : vector<5x128xf32> to vector<1x16xf32>
    %c0_295 = arith.constant 0 : index
    %c384 = arith.constant 384 : index
    %431 = vector.load %arg16[%c0_295, %c384] : memref<1x400xf32, #tpu.memory_space<vmem>>, vector<1x16xf32>
    tpu.vector_store %arg16[%c0_295, %c384], %430 {strides = array<i32>} : memref<1x400xf32, #tpu.memory_space<vmem>>, vector<1x16xf32>,
    %c0_296 = arith.constant 0 : index
    %c0_297 = arith.constant 0 : index
    %432 = vector.load %arg16[%c0_296, %c0_297] : memref<1x400xf32, #tpu.memory_space<vmem>>, vector<1x400xf32>
    %433 = arith.truncf %432 : vector<1x400xf32> to vector<1x400xbf16>
    %c0_298 = arith.constant 0 : index
    %c0_299 = arith.constant 0 : index
    %434 = vector.load %arg6[%c0_298, %c0_299] : memref<400x256xbf16, #tpu.memory_space<vmem>>, vector<400x256xbf16>
    %cst_300 = arith.constant dense<0.000000e+00> : vector<1x256xf32>
    %435 = tpu.matmul %433, %434, %cst_300 {dimension_numbers = #tpu.dot_dimension_numbers<[1], [0], [0], [1], [0, 0, 1, 1], [], []>} : vector<1x400xbf16>, vector<400x256xbf16>, vector<1x256xf32> -> vector<1x256xf32>
    %c0_301 = arith.constant 0 : index
    %c0_302 = arith.constant 0 : index
    %436 = vector.load %arg7[%c0_301, %c0_302] : memref<1x256xf32, #tpu.memory_space<vmem>>, vector<1x256xf32>
    %437 = arith.addf %435, %436 : vector<1x256xf32>
    %cst_303 = arith.constant 0.000000e+00 : f32
    %438 = vector.broadcast %cst_303 : f32 to vector<1x256xf32>
    %439 = arith.maximumf %437, %438 : vector<1x256xf32>
    %440 = arith.truncf %439 : vector<1x256xf32> to vector<1x256xbf16>
    %c0_304 = arith.constant 0 : index
    %c0_305 = arith.constant 0 : index
    %441 = vector.load %arg8[%c0_304, %c0_305] : memref<256x128xbf16, #tpu.memory_space<vmem>>, vector<256x128xbf16>
    %cst_306 = arith.constant dense<0.000000e+00> : vector<1x128xf32>
    %442 = tpu.matmul %440, %441, %cst_306 {dimension_numbers = #tpu.dot_dimension_numbers<[1], [0], [0], [1], [0, 0, 1, 1], [], []>} : vector<1x256xbf16>, vector<256x128xbf16>, vector<1x128xf32> -> vector<1x128xf32>
    %c0_307 = arith.constant 0 : index
    %c0_308 = arith.constant 0 : index
    %443 = vector.load %arg9[%c0_307, %c0_308] : memref<1x128xf32, #tpu.memory_space<vmem>>, vector<1x128xf32>
    %444 = arith.addf %442, %443 : vector<1x128xf32>
    %cst_309 = arith.constant 0.000000e+00 : f32
    %445 = vector.broadcast %cst_309 : f32 to vector<1x128xf32>
    %446 = arith.maximumf %444, %445 : vector<1x128xf32>
    %447 = arith.truncf %446 : vector<1x128xf32> to vector<1x128xbf16>
    %c0_310 = arith.constant 0 : index
    %c0_311 = arith.constant 0 : index
    %448 = vector.load %arg10[%c0_310, %c0_311] : memref<128x100xbf16, #tpu.memory_space<vmem>>, vector<128x100xbf16>
    %cst_312 = arith.constant dense<0.000000e+00> : vector<1x100xf32>
    %449 = tpu.matmul %447, %448, %cst_312 {dimension_numbers = #tpu.dot_dimension_numbers<[1], [0], [0], [1], [0, 0, 1, 1], [], []>} : vector<1x128xbf16>, vector<128x100xbf16>, vector<1x100xf32> -> vector<1x100xf32>
    %c0_313 = arith.constant 0 : index
    %c0_314 = arith.constant 0 : index
    %450 = vector.load %arg11[%c0_313, %c0_314] : memref<1x100xf32, #tpu.memory_space<vmem>>, vector<1x100xf32>
    %451 = arith.addf %449, %450 : vector<1x100xf32>
    %c0_315 = arith.constant 0 : index
    %c0_316 = arith.constant 0 : index
    %c0_317 = arith.constant 0 : index
    %452 = vector.load %arg12[%c0_315, %c0_316, %c0_317] : memref<1x1x100xf32, #tpu.memory_space<vmem>>, vector<1x1x100xf32>
    %453 = vector.shape_cast %452 : vector<1x1x100xf32> to vector<1x100xf32>
    %454 = vector.shape_cast %451 : vector<1x100xf32> to vector<1x1x100xf32>
    tpu.vector_store %arg12[%c0_315, %c0_316, %c0_317], %454 {strides = array<i32>} : memref<1x1x100xf32, #tpu.memory_space<vmem>>, vector<1x1x100xf32>,
    return
  }
  func.func @transform_0(%arg0: i32) -> (i32, i32, i32) {
    %c0_i32 = arith.constant 0 : i32
    %c0_i32_0 = arith.constant 0 : i32
    %c0_i32_1 = arith.constant 0 : i32
    return %arg0, %c0_i32, %c0_i32_0 : i32, i32, i32
  }
  func.func @transform_1(%arg0: i32) -> (i32, i32) {
    %c0_i32 = arith.constant 0 : i32
    %c0_i32_0 = arith.constant 0 : i32
    %c0_i32_1 = arith.constant 0 : i32
    return %c0_i32, %c0_i32_0 : i32, i32
  }
  func.func @transform_2(%arg0: i32) -> (i32, i32) {
    %c0_i32 = arith.constant 0 : i32
    %c0_i32_0 = arith.constant 0 : i32
    %c0_i32_1 = arith.constant 0 : i32
    return %c0_i32, %c0_i32_0 : i32, i32
  }
  func.func @transform_3(%arg0: i32) -> (i32, i32, i32) {
    %c0_i32 = arith.constant 0 : i32
    %c0_i32_0 = arith.constant 0 : i32
    %c0_i32_1 = arith.constant 0 : i32
    %c0_i32_2 = arith.constant 0 : i32
    return %c0_i32, %c0_i32_0, %c0_i32_1 : i32, i32, i32
  }
  func.func @transform_4(%arg0: i32) -> (i32, i32) {
    %c0_i32 = arith.constant 0 : i32
    %c0_i32_0 = arith.constant 0 : i32
    %c0_i32_1 = arith.constant 0 : i32
    return %c0_i32, %c0_i32_0 : i32, i32
  }
  func.func @transform_5(%arg0: i32) -> (i32, i32) {
    %c0_i32 = arith.constant 0 : i32
    %c0_i32_0 = arith.constant 0 : i32
    %c0_i32_1 = arith.constant 0 : i32
    return %c0_i32, %c0_i32_0 : i32, i32
  }
  func.func @transform_6(%arg0: i32) -> (i32, i32) {
    %c0_i32 = arith.constant 0 : i32
    %c0_i32_0 = arith.constant 0 : i32
    %c0_i32_1 = arith.constant 0 : i32
    return %c0_i32, %c0_i32_0 : i32, i32
  }
  func.func @transform_7(%arg0: i32) -> (i32, i32) {
    %c0_i32 = arith.constant 0 : i32
    %c0_i32_0 = arith.constant 0 : i32
    %c0_i32_1 = arith.constant 0 : i32
    return %c0_i32, %c0_i32_0 : i32, i32
  }
  func.func @transform_8(%arg0: i32) -> (i32, i32) {
    %c0_i32 = arith.constant 0 : i32
    %c0_i32_0 = arith.constant 0 : i32
    %c0_i32_1 = arith.constant 0 : i32
    return %c0_i32, %c0_i32_0 : i32, i32
  }
  func.func @transform_9(%arg0: i32) -> (i32, i32) {
    %c0_i32 = arith.constant 0 : i32
    %c0_i32_0 = arith.constant 0 : i32
    %c0_i32_1 = arith.constant 0 : i32
    return %c0_i32, %c0_i32_0 : i32, i32
  }
  func.func @transform_10(%arg0: i32) -> (i32, i32) {
    %c0_i32 = arith.constant 0 : i32
    %c0_i32_0 = arith.constant 0 : i32
    %c0_i32_1 = arith.constant 0 : i32
    return %c0_i32, %c0_i32_0 : i32, i32
  }
  func.func @transform_11(%arg0: i32) -> (i32, i32, i32) {
    %c0_i32 = arith.constant 0 : i32
    %c0_i32_0 = arith.constant 0 : i32
    %c0_i32_1 = arith.constant 0 : i32
    return %arg0, %c0_i32, %c0_i32_0 : i32, i32, i32
  }
}

</mosaic_0001>

<bundles_post_ra>
// kernel: _fused_forward.1
= control target key start
LH: loop header
LB: loop body
LE: loop exit
PB: predicated region body
PF: predicated region fallthrough
CT: control target
= control target key end

     0   :  { %s12680_s0 = inlined_call_operand.vmem [shape: bf16[2,784,80], index: 0, kind: input, shape index: {}]   ;;  %s12681_s1 = inlined_call_operand.vmem [shape: bf16[80,128], index: 1, kind: input, shape index: {}]   ;;  %s12682_s2 = inlined_call_operand.vmem [shape: f32[1,128], index: 2, kind: input, shape index: {}]   ;;  %s12683_s3 = inlined_call_operand.vmem [shape: bf16[25,8,128], index: 3, kind: input, shape index: {}]   ;;  %s12684_s4 = inlined_call_operand.vmem [shape: f32[1,128], index: 4, kind: input, shape index: {}]   ;;  %s12685_s5 = inlined_call_operand.vmem [shape: bf16[400,256], index: 5, kind: input, shape index: {}]   ;;  %s12686_s6 = inlined_call_operand.vmem [shape: f32[1,256], index: 6, kind: input, shape index: {}]   ;;  %s12687_s7 = inlined_call_operand.vmem [shape: bf16[256,128], index: 7, kind: input, shape index: {}]   ;;  %s12688_s8 = inlined_call_operand.vmem [shape: f32[1,128], index: 8, kind: input, shape index: {}]   ;;  %s12689_s9 = inlined_call_operand.vmem [shape: bf16[128,100], index: 9, kind: input, shape index: {}]   ;;  %s12690_s10 = inlined_call_operand.vmem [shape: f32[1,100], index: 10, kind: input, shape index: {}]   ;;  %s12691_s11 = inlined_call_operand.hbm [shape: f32[2,1,100], index: 11, kind: output, shape index: {}]  }
   0x1   :  { %12711 = sst [smem:[#allocation22_spill]] %s12680_s0 }
   0x2   :  { %16 = vsyncpa [#allocation7], 0 }
   0x3   :  { %18 = vsyncpa [#allocation7 + $0x1], 0  ;;  %s10624_s17 = smov 0   ;;  %s10626_s18 = smov 0  }
   0x4   :  { %s10628_s19 = smov 0   ;;  %s10630_s20 = smov 0  }
   0x5 LB: > { %s10645_s21 = sadd.s32 4294967295, %s10551_s20   ;;  %s7457_s22 = sadd.s32 4294967294, %s10551_s20   ;;  %s10551_s20 = sphi %s10630_s20, %s12790_s20   ;;  %s10547_s19 = sphi %s10628_s19, %s12789_s19   ;;  %s10543_s18 = sphi %s10626_s18, %s12788_s18   ;;  %s10539_s17 = sphi %s10624_s17, %s12787_s17  }
   0x6   : > { %s10649_s23 = sadd.s32 1, %s10551_s20   ;;  %s267_s24 = sadd.s32 1, %s10547_s19 }
   0x7   : > { %s264_s25 = ssub.s32 %s10551_s20, %s10649_s23  ;;  %p277_p0 = scmp.ne.s32.totalorder %s10547_s19, %s10543_s18 }
   0x8   : > { %p265_p1 = scmp.eq.s32.totalorder %s264_s25, 0  ;;  %p278_p2 = scmp.eq.s32.totalorder %s10645_s21, 1 }
   0x9   : > { %p283_p3 = scmp.ne.s32.totalorder %s10543_s18, %s10539_s17  ;;  %p284_p4 = scmp.eq.s32.totalorder %s7457_s22, 1 }
   0xa   : > { %s10660_s26 = scalar_select %p265_p1, %s10547_s19, %s267_s24  }
   0xb   : > { %p10662_p5 = por %p278_p2, %p277_p0  ;;  %p10666_p6 = por %p284_p4, %p283_p3 }
   0xc   : > { %p7460_p7 = scmp.ge.s32.totalorder %s10551_s20, 1  ;;  %p340_p8 = scmp.lt.s32.totalorder %s10551_s20, 3 }
   0xe   : > { %p341_p9 = pnand %p7460_p7, %p340_p8 }
  0x10   : > { %344 = sbr.rel (%p341_p9) target bundleno = 2813 (0xafd), region = 64 }
  0x17   : > { %v10308_v0 = vld [vmem:[%s12681_s1] sm:$0xff]   ;;  %v12697_v1 = vmov 0.0   ;;  %v10309_v2 = vld [vmem:[%s12681_s1 + $0x8] sm:$0xff]   ;;  %vm10554_vm0 = vmmov 0   ;;  %p379_p10 = scmp.lt.s32.totalorder %s10645_s21, 1  ;;  %v10310_v3 = vld [vmem:[%s12681_s1 + $0x10] sm:$0xff]  }
  0x18   : > { %8229 = vmatprep.subr.bf16.mxu0 %v12697_v1  ;;  %9405 = vmatprep.subr.bf16.mxu1 %v12697_v1  ;;  %s12714_s0 = sld [smem:[#allocation22_spill]]  ;;  %v10311_v4 = vld [vmem:[%s12681_s1 + $0x18] sm:$0xff]   ;;  %v10312_v5 = vld [vmem:[%s12681_s1 + $0x20] sm:$0xff]   ;;  %vm768_vm1 = vcmask 654336   ;;  %vm1920_vm2 = vcmask 1043456   ;;  %vm1892_vm3 = vcmask 64512  }
  0x19   : > { %8230 = vmatpush3.bf16.msra.mxu0 %v10308_v0  ;;  %8239 = vmatprep.mubr.msk.bf16.mxu0 %vm10554_vm0, %v12697_v1  ;;  %s380_s16 = scalar_select %p379_p10, %s10645_s21, 1  ;;  %v10829_v59 = vld [vmem:[%s12682_s2] ss:$0 sm:$0xff] }
  0x1a   : > { %8231 = vmatprep.subr.bf16.mxu0 %v12697_v1  ;;  %8773 = vmatprep.mubr.msk.bf16.mxu1 %vm10554_vm0, %v12697_v1  ;;  %s12701_s24 = smov 16   ;;  %s12702_s13 = smov 64  }
  0x1b   : > { %s10258_s22 = smul.u32 392, %s380_s16  ;;  %s12710_s14 = smov 48  }
  0x1c   : > { %s12704_s25 = smov 80   ;;  %s12699_s16 = smov 96  }
  0x1d   : > { %8232 = vmatpush3.bf16.msra.mxu0 %v10309_v2  ;;  %s12766_s15 = smov 80   ;;  %s12769_s12 = smov 96  }
  0x1e   : > { %8233 = vmatprep.subr.bf16.mxu0 %v12697_v1  ;;  %s10694_s29 = scalar_lea.vmem %s12714_s0, %s10258_s22  ;;  %s12706_s22 = smov 32  }
  0x1f   : > { %v10313_v6 = vld [vmem:[%s10694_s29] sm:$0xff]   ;;  %v10314_v7 = vld [vmem:[%s10694_s29 + $0x8] sm:$0xff]   ;;  %v10315_v8 = vld [vmem:[%s10694_s29 + $0x10] sm:$0xff]  }
  0x20   : > { %v10316_v9 = vld [vmem:[%s10694_s29 + $0x18] sm:$0xff]   ;;  %v10317_v10 = vld [vmem:[%s10694_s29 + $0x20] sm:$0xff]   ;;  %v10318_v11 = vld [vmem:[%s10694_s29 + $0x28] sm:$0xff]  }
  0x21   : > { %8234 = vmatpush3.bf16.msra.mxu0 %v10310_v3  ;;  %v10319_v12 = vld [vmem:[%s10694_s29 + $0x30] sm:$0xff]   ;;  %v10320_v13 = vld [vmem:[%s10694_s29 + $0x38] sm:$0xff]   ;;  %v10321_v14 = vld [vmem:[%s10694_s29 + $0x40] sm:$0xff]  }
  0x22   : > { %8235 = vmatprep.subr.bf16.mxu0 %v12697_v1  ;;  %v10322_v15 = vld [vmem:[%s10694_s29 + $0x48] sm:$0xff]   ;;  %v10323_v16 = vld [vmem:[%s10694_s29 + $0x50] sm:$0xff]   ;;  %v10324_v17 = vld [vmem:[%s10694_s29 + $0x58] sm:$0xff]  }
  0x23   : > { %v10325_v18 = vld [vmem:[%s10694_s29 + $0x60] sm:$0xff]   ;;  %v10326_v19 = vld [vmem:[%s10694_s29 + $0x68] sm:$0xff]   ;;  %v10327_v20 = vld [vmem:[%s10694_s29 + $0x70] sm:$0xff]  }
  0x24   : > { %v10328_v21 = vld [vmem:[%s10694_s29 + $0x78] sm:$0xff]   ;;  %v10329_v22 = vld [vmem:[%s10694_s29 + $0x80] sm:$0xff]   ;;  %v10330_v23 = vld [vmem:[%s10694_s29 + $0x88] sm:$0xff]  }
  0x25   : > { %8236 = vmatpush3.bf16.msra.mxu0 %v10311_v4  ;;  %v10331_v24 = vld [vmem:[%s10694_s29 + $0x90] sm:$0xff]   ;;  %v10332_v25 = vld [vmem:[%s10694_s29 + $0x98] sm:$0xff]   ;;  %v10333_v26 = vld [vmem:[%s10694_s29 + $0xa0] sm:$0xff]  }
  0x26   : > { %8237 = vmatprep.subr.bf16.mxu0 %v12697_v1  ;;  %v10334_v27 = vld [vmem:[%s10694_s29 + $0xa8] sm:$0xff]   ;;  %v10335_v28 = vld [vmem:[%s10694_s29 + $0xb0] sm:$0xff]   ;;  %v10336_v29 = vld [vmem:[%s10694_s29 + $0xb8] sm:$0xff]  }
  0x27   : > { %v10337_v30 = vld [vmem:[%s10694_s29 + $0xc0] sm:$0xff]   ;;  %v10338_v31 = vld [vmem:[%s10694_s29 + $0xc8] sm:$0xff]   ;;  %v10339_v32 = vld [vmem:[%s10694_s29 + $0xd0] sm:$0xff]  }
  0x28   : > { %v10340_v35 = vld [vmem:[%s10694_s29 + $0xd8] sm:$0xff]   ;;  %v10341_v40 = vld [vmem:[%s10694_s29 + $0xe0] sm:$0xff]   ;;  %v10342_v45 = vld [vmem:[%s10694_s29 + $0xe8] sm:$0xff]  }
  0x29   : > { %8238 = vmatpush3.bf16.msra.mxu0 %v10312_v5  ;;  %v10343_v52 = vld [vmem:[%s10694_s29 + $0xf0] sm:$0xff]  }
  0x2a   : > { %8435 = vmatprep.subr.bf16.mxu0 %v12697_v1 }
  0x2c   : > { %8240 = vmatmul.mubr.msk.bf16.vlgmr.msra.gmra.mrb[0].mxu0 %vm768_vm1, %v10313_v6  ;;  %v10344_v6 = vld [vmem:[%s10694_s29 + $0xf8] sm:$0xff]  }
  0x2d   : > { %8243 = vmatprep.mubr.msk.bf16.mxu0 %vm10554_vm0, %v12697_v1 }
  0x34   : > { %8244 = vmatmul.mubr.msk.bf16.gmra.mrb[4].mxu0 %vm768_vm1, %v10314_v7 }
  0x35   : > { %8247 = vmatprep.mubr.msk.bf16.mxu0 %vm10554_vm0, %v12697_v1 }
  0x3c   : > { %8248 = vmatmul.mubr.msk.bf16.gmra.mrb[8].mxu0 %vm768_vm1, %v10315_v8 }
  0x3d   : > { %8251 = vmatprep.mubr.msk.bf16.mxu0 %vm10554_vm0, %v12697_v1 }
  0x44   : > { %8252 = vmatmul.mubr.msk.bf16.gmra.mrb[12].mxu0 %vm768_vm1, %v10316_v9 }
  0x45   : > { %8255 = vmatprep.mubr.msk.bf16.mxu0 %vm10554_vm0, %v12697_v1 }
  0x4c   : > { %8256 = vmatmul.mubr.msk.bf16.gmra.mrb[16].mxu0 %vm768_vm1, %v10317_v10 }
  0x4d   : > { %8259 = vmatprep.mubr.msk.bf16.mxu0 %vm10554_vm0, %v12697_v1 }
  0x54   : > { %8260 = vmatmul.mubr.msk.bf16.gmra.mrb[20].mxu0 %vm768_vm1, %v10318_v11 }
  0x55   : > { %8263 = vmatprep.mubr.msk.bf16.mxu0 %vm10554_vm0, %v12697_v1 }
  0x5c   : > { %8264 = vmatmul.mubr.msk.bf16.gmra.mrb[24].mxu0 %vm768_vm1, %v10319_v12 }
  0x5d   : > { %8267 = vmatprep.mubr.msk.bf16.mxu0 %vm10554_vm0, %v12697_v1 }
  0x64   : > { %8268 = vmatmul.mubr.msk.bf16.gmra.mrb[28].mxu0 %vm768_vm1, %v10320_v13 }
  0x65   : > { %8271 = vmatprep.mubr.msk.bf16.mxu0 %vm10554_vm0, %v12697_v1 }
  0x6c   : > { %8272 = vmatmul.mubr.msk.bf16.gmra.mrb[32].mxu0 %vm768_vm1, %v10321_v14 }
  0x6d   : > { %8275 = vmatprep.mubr.msk.bf16.mxu0 %vm10554_vm0, %v12697_v1 }
  0x74   : > { %8276 = vmatmul.mubr.msk.bf16.gmra.mrb[36].mxu0 %vm768_vm1, %v10322_v15 }
  0x75   : > { %8279 = vmatprep.mubr.msk.bf16.mxu0 %vm10554_vm0, %v12697_v1 }
  0x7c   : > { %8280 = vmatmul.mubr.msk.bf16.gmra.mrb[40].mxu0 %vm768_vm1, %v10323_v16  ;;  %v10345_v16 = vld [vmem:[%s10694_s29 + $0x100] sm:$0xff]  }
  0x7d   : > { %8283 = vmatprep.mubr.msk.bf16.mxu0 %vm10554_vm0, %v12697_v1 }
  0x84   : > { %8284 = vmatmul.mubr.msk.bf16.gmra.mrb[44].mxu0 %vm768_vm1, %v10324_v17 }
  0x85   : > { %8287 = vmatprep.mubr.msk.bf16.mxu0 %vm10554_vm0, %v12697_v1 }
  0x8c   : > { %8288 = vmatmul.mubr.msk.bf16.gmra.mrb[48].mxu0 %vm768_vm1, %v10325_v18 }
  0x8d   : > { %8291 = vmatprep.mubr.msk.bf16.mxu0 %vm10554_vm0, %v12697_v1 }
  0x94   : > { %8292 = vmatmul.mubr.msk.bf16.gmra.mrb[52].mxu0 %vm768_vm1, %v10326_v19 }
  0x95   : > { %8295 = vmatprep.mubr.msk.bf16.mxu0 %vm10554_vm0, %v12697_v1 }
  0x9c   : > { %8296 = vmatmul.mubr.msk.bf16.gmra.mrb[56].mxu0 %vm768_vm1, %v10327_v20  ;;  %v10346_v20 = vld [vmem:[%s10694_s29 + $0x108] sm:$0xff]  }
  0x9d   : > { %8299 = vmatprep.mubr.msk.bf16.mxu0 %vm10554_vm0, %v12697_v1 }
  0xa4   : > { %8300 = vmatmul.mubr.msk.bf16.gmra.mrb[60].mxu0 %vm768_vm1, %v10328_v21  ;;  %v7566_v21 = vld [vmem:[%s12683_s3 + $0x4] sm:$0xf] }
  0xa5   : > { %8303 = vmatprep.mubr.msk.bf16.mxu0 %vm10554_vm0, %v12697_v1 }
  0xac   : > { %8304 = vmatmul.mubr.msk.bf16.gmra.mrb[64].mxu0 %vm768_vm1, %v10329_v22 }
  0xad   : > { %8307 = vmatprep.mubr.msk.bf16.mxu0 %vm10554_vm0, %v12697_v1 }
  0xb4   : > { %8308 = vmatmul.mubr.msk.bf16.gmra.mrb[68].mxu0 %vm768_vm1, %v10330_v23  ;;  %v1922_v23 = vsel %vm1920_vm2, %v7566_v21, 0 }
  0xb5   : > { %8311 = vmatprep.mubr.msk.bf16.mxu0 %vm10554_vm0, %v12697_v1  ;;  %8436 = vmatpush3.bf16.msra.mxu0 %v1922_v23 }
  0xb6   : > { %8473 = vmatprep.subr.bf16.mxu0 %v12697_v1 }
  0xbc   : > { %8312 = vmatmul.mubr.msk.bf16.gmra.mrb[72].mxu0 %vm768_vm1, %v10331_v24 }
  0xbd   : > { %8315 = vmatprep.mubr.msk.bf16.mxu0 %vm10554_vm0, %v12697_v1 }
  0xc4   : > { %8316 = vmatmul.mubr.msk.bf16.gmra.mrb[76].mxu0 %vm768_vm1, %v10332_v25 }
  0xc5   : > { %8319 = vmatprep.mubr.msk.bf16.mxu0 %vm10554_vm0, %v12697_v1 }
  0xcc   : > { %8320 = vmatmul.mubr.msk.bf16.gmra.mrb[80].mxu0 %vm768_vm1, %v10333_v26 }
  0xcd   : > { %8323 = vmatprep.mubr.msk.bf16.mxu0 %vm10554_vm0, %v12697_v1 }
  0xd4   : > { %8324 = vmatmul.mubr.msk.bf16.gmra.mrb[84].mxu0 %vm768_vm1, %v10334_v27 }
  0xd5   : > { %8327 = vmatprep.mubr.msk.bf16.mxu0 %vm10554_vm0, %v12697_v1 }
  0xdc   : > { %8328 = vmatmul.mubr.msk.bf16.gmra.mrb[88].mxu0 %vm768_vm1, %v10335_v28 }
  0xdd   : > { %8331 = vmatprep.mubr.msk.bf16.mxu0 %vm10554_vm0, %v12697_v1 }
  0xe4   : > { %8332 = vmatmul.mubr.msk.bf16.gmra.mrb[92].mxu0 %vm768_vm1, %v10336_v29 }
  0xe5   : > { %8335 = vmatprep.mubr.msk.bf16.mxu0 %vm10554_vm0, %v12697_v1 }
  0xec   : > { %8336 = vmatmul.mubr.msk.bf16.gmra.mrb[96].mxu0 %vm768_vm1, %v10337_v30 }
  0xed   : > { %8339 = vmatprep.mubr.msk.bf16.mxu0 %vm10554_vm0, %v12697_v1 }
  0xf4   : > { %8340 = vmatmul.mubr.msk.bf16.gmra.mrb[100].mxu0 %vm768_vm1, %v10338_v31 }
  0xf5   : > { %8343 = vmatprep.mubr.msk.bf16.mxu0 %vm10554_vm0, %v12697_v1 }
  0xfc   : > { %8344 = vmatmul.mubr.msk.bf16.gmra.mrb[104].mxu0 %vm768_vm1, %v10339_v32 }
  0xfd   : > { %8347 = vmatprep.mubr.msk.bf16.mxu0 %vm10554_vm0, %v12697_v1 }
  0xff   : > { %v950_v33 = vpop.f32.mrb[0].mxu0 }
 0x100   : > { %1341 = vst [vmem:[#allocation2] sm:$0xff] %v950_v33  ;;  %v8241_v34 = vpop.f32.mrb[1].mxu0 }
 0x101   : > { %v953_v36 = vpop.f32.mrb[2].mxu0  ;;  %v10347_v34 = vld [vmem:[%s10694_s29 + $0x110] sm:$0xff]  }
 0x102   : > { %1342 = vst [vmem:[#allocation2 + $0x8] sm:$0xff] %v953_v36  ;;  %v8242_v37 = vpop.f32.mrb[3].mxu0 }
 0x104   : > { %8348 = vmatmul.mubr.msk.bf16.gmra.mrb[108].mxu0 %vm768_vm1, %v10340_v35 }
 0x105   : > { %8351 = vmatprep.mubr.msk.bf16.mxu0 %vm10554_vm0, %v12697_v1 }
 0x107   : > { %v958_v38 = vpop.f32.mrb[4].mxu0 }
 0x108   : > { %1343 = vst [vmem:[#allocation2 + $0x10] sm:$0xff] %v958_v38  ;;  %v8245_v39 = vpop.f32.mrb[5].mxu0 }
 0x109   : > { %v961_v41 = vpop.f32.mrb[6].mxu0  ;;  %v1440_v49 = vld [vmem:[#allocation2] ss:$2 sm:$0xff]  ;;  %v1444_v50 = vld [vmem:[#allocation2 + $0x1] ss:$2 sm:$0xff] }
 0x10a   : > { %1344 = vst [vmem:[#allocation2 + $0x18] sm:$0xff] %v961_v41  ;;  %v8246_v42 = vpop.f32.mrb[7].mxu0  ;;  %v1455_v57 = vmax.f32 %v1440_v49, %v1444_v50  ;;  %v10348_v50 = vld [vmem:[%s10694_s29 + $0x118] sm:$0xff]  }
 0x10c   : > { %8352 = vmatmul.mubr.msk.bf16.gmra.mrb[112].mxu0 %vm768_vm1, %v10341_v40 }
 0x10d   : > { %8355 = vmatprep.mubr.msk.bf16.mxu0 %vm10554_vm0, %v12697_v1 }
 0x10f   : > { %v966_v43 = vpop.f32.mrb[8].mxu0 }
 0x110   : > { %1345 = vst [vmem:[#allocation2 + $0x20] sm:$0xff] %v966_v43  ;;  %v8249_v44 = vpop.f32.mrb[9].mxu0 }
 0x111   : > { %v969_v46 = vpop.f32.mrb[10].mxu0  ;;  %v1442_v60 = vld [vmem:[#allocation2 + $0x10] ss:$2 sm:$0x3f] }
 0x112   : > { %1346 = vst [vmem:[#allocation2 + $0x28] sm:$0xff] %v969_v46  ;;  %v8250_v47 = vpop.f32.mrb[11].mxu0  ;;  %v1446_v61 = vld [vmem:[#allocation2 + $0x11] ss:$2 sm:$0x3f] }
 0x113   : > { %v1456_v3 = vmax.f32 %v1442_v60, %v1446_v61 }
 0x114   : > { %8356 = vmatmul.mubr.msk.bf16.gmra.mrb[116].mxu0 %vm768_vm1, %v10342_v45 }
 0x115   : > { %8359 = vmatprep.mubr.msk.bf16.mxu0 %vm10554_vm0, %v12697_v1 }
 0x117   : > { %v974_v48 = vpop.f32.mrb[12].mxu0 }
 0x118   : > { %1347 = vst [vmem:[#allocation2 + $0x30] sm:$0xff] %v974_v48  ;;  %v8253_v51 = vpop.f32.mrb[13].mxu0 }
 0x119   : > { %v977_v53 = vpop.f32.mrb[14].mxu0  ;;  %v1448_v54 = vld [vmem:[#allocation2 + $0x1c] ss:$2 sm:$0xff]  ;;  %v1452_v55 = vld [vmem:[#allocation2 + $0x1d] ss:$2 sm:$0xff] }
 0x11a   : > { %1348 = vst [vmem:[#allocation2 + $0x38] sm:$0xff] %v977_v53  ;;  %v8254_v56 = vpop.f32.mrb[15].mxu0  ;;  %v1457_v58 = vmax.f32 %v1448_v54, %v1452_v55 }
 0x11b   : > { %v10349_v56 = vld [vmem:[%s10694_s29 + $0x120] sm:$0xff]  }
 0x11c   : > { %8360 = vmatmul.mubr.msk.bf16.gmra.mrb[120].mxu0 %vm768_vm1, %v10343_v52  ;;  %v1459_v62 = vmax.f32 %v1455_v57, %v1457_v58 }
 0x11d   : > { %8363 = vmatprep.mubr.msk.bf16.mxu0 %vm10554_vm0, %v12697_v1 }
 0x11e   : > { %v1467_v63 = vadd.f32 %v10829_v59, %v1459_v62 }
 0x11f   : > { %v1450_v0 = vld [vmem:[#allocation2 + $0x2c] ss:$2 sm:$0x3f]  ;;  %v1454_v2 = vld [vmem:[#allocation2 + $0x2d] ss:$2 sm:$0x3f] }
 0x120   : > { %v1458_v4 = vmax.f32 %v1450_v0, %v1454_v2  ;;  %v982_v5 = vpop.f32.mrb[16].mxu0  ;;  %v1469_v7 = vmax.f32 %v1467_v63, 0.0  ;;  %v10350_v0 = vld [vmem:[%s10694_s29 + $0x128] sm:$0xff]  }
 0x121   : > { %1349 = vst [vmem:[#allocation2 + $0x40] sm:$0xff] %v982_v5  ;;  %v8257_v8 = vpop.f32.mrb[17].mxu0 }
 0x122   : > { %v1460_v9 = vmax.f32 %v1456_v3, %v1458_v4  ;;  %v985_v10 = vpop.f32.mrb[18].mxu0  ;;  %1471 = vst [vmem:[#allocation3] sm:$0xff] %v1469_v7 }
 0x123   : > { %1350 = vst [vmem:[#allocation2 + $0x48] sm:$0xff] %v985_v10  ;;  %v8258_v11 = vpop.f32.mrb[19].mxu0 }
 0x124   : > { %v1468_v12 = vadd.f32 %v10829_v59, %v1460_v9  ;;  %8364 = vmatmul.mubr.msk.bf16.gmra.mrb[124].mxu0 %vm768_vm1, %v10344_v6 }
 0x125   : > { %8367 = vmatprep.mubr.msk.bf16.mxu0 %vm10554_vm0, %v12697_v1 }
 0x126   : > { %v1470_v13 = vmax.f32 %v1468_v12, 0.0 }
 0x127   : > { %v990_v14 = vpop.f32.mrb[20].mxu0 }
 0x128   : > { %1472 = vst [vmem:[#allocation3 + $0x8] sm:$0x3f] %v1470_v13  ;;  %1351 = vst [vmem:[#allocation2 + $0x50] sm:$0xff] %v990_v14  ;;  %v8261_v15 = vpop.f32.mrb[21].mxu0  ;;  %v1474_v26 = vld [vmem:[#allocation2 + $0x38] ss:$2 sm:$0xff] }
 0x129   : > { %v993_v17 = vpop.f32.mrb[22].mxu0  ;;  %v1478_v27 = vld [vmem:[#allocation2 + $0x39] ss:$2 sm:$0xff] }
 0x12a   : > { %1352 = vst [vmem:[#allocation2 + $0x58] sm:$0xff] %v993_v17  ;;  %v8262_v18 = vpop.f32.mrb[23].mxu0  ;;  %v1489_v35 = vmax.f32 %v1474_v26, %v1478_v27  ;;  %v10351_v17 = vld [vmem:[%s10694_s29 + $0x130] sm:$0xff]   ;;  %v10352_v27 = vld [vmem:[%s10694_s29 + $0x138] sm:$0xff]  }
 0x12c   : > { %8368 = vmatmul.mubr.msk.bf16.gmra.mrb[128].mxu0 %vm768_vm1, %v10345_v16 }
 0x12d   : > { %8371 = vmatprep.mubr.msk.bf16.mxu0 %vm10554_vm0, %v12697_v1 }
 0x12f   : > { %v998_v19 = vpop.f32.mrb[24].mxu0  ;;  %v1476_v28 = vld [vmem:[#allocation2 + $0x48] ss:$2 sm:$0x3f] }
 0x130   : > { %1353 = vst [vmem:[#allocation2 + $0x60] sm:$0xff] %v998_v19  ;;  %v8265_v22 = vpop.f32.mrb[25].mxu0  ;;  %v1480_v29 = vld [vmem:[#allocation2 + $0x49] ss:$2 sm:$0x3f] }
 0x131   : > { %v1001_v24 = vpop.f32.mrb[26].mxu0  ;;  %v1490_v40 = vmax.f32 %v1476_v28, %v1480_v29 }
 0x132   : > { %1354 = vst [vmem:[#allocation2 + $0x68] sm:$0xff] %v1001_v24  ;;  %v8266_v25 = vpop.f32.mrb[27].mxu0 }
 0x134   : > { %8372 = vmatmul.mubr.msk.bf16.gmra.mrb[132].mxu0 %vm768_vm1, %v10346_v20 }
 0x135   : > { %8375 = vmatprep.mubr.msk.bf16.mxu0 %vm10554_vm0, %v12697_v1 }
 0x137   : > { %v1006_v30 = vpop.f32.mrb[28].mxu0  ;;  %v1482_v31 = vld [vmem:[#allocation2 + $0x54] ss:$2 sm:$0xff]  ;;  %v1486_v32 = vld [vmem:[#allocation2 + $0x55] ss:$2 sm:$0xff] }
 0x138   : > { %1355 = vst [vmem:[#allocation2 + $0x70] sm:$0xff] %v1006_v30  ;;  %v8269_v33 = vpop.f32.mrb[29].mxu0  ;;  %v1491_v36 = vmax.f32 %v1482_v31, %v1486_v32  ;;  %v10353_v31 = vld [vmem:[%s10694_s29 + $0x140] sm:$0xff]  }
 0x139   : > { %v1009_v37 = vpop.f32.mrb[30].mxu0  ;;  %v1484_v38 = vld [vmem:[#allocation2 + $0x64] ss:$2 sm:$0x3f] }
 0x13a   : > { %v1488_v39 = vld [vmem:[#allocation2 + $0x65] ss:$2 sm:$0x3f]  ;;  %1356 = vst [vmem:[#allocation2 + $0x78] sm:$0xff] %v1009_v37  ;;  %v1493_v41 = vmax.f32 %v1489_v35, %v1491_v36  ;;  %v8270_v43 = vpop.f32.mrb[31].mxu0 }
 0x13b   : > { %v1492_v42 = vmax.f32 %v1484_v38, %v1488_v39  ;;  %v10354_v43 = vld [vmem:[%s10694_s29 + $0x148] sm:$0xff]  }
 0x13c   : > { %8376 = vmatmul.mubr.msk.bf16.gmra.mrb[136].mxu0 %vm768_vm1, %v10347_v34  ;;  %v1495_v44 = vadd.f32 %v10829_v59, %v1493_v41 }
 0x13d   : > { %v1494_v45 = vmax.f32 %v1490_v40, %v1492_v42  ;;  %8379 = vmatprep.mubr.msk.bf16.mxu0 %vm10554_vm0, %v12697_v1 }
 0x13e   : > { %v1497_v46 = vmax.f32 %v1495_v44, 0.0 }
 0x13f   : > { %v1496_v47 = vadd.f32 %v10829_v59, %v1494_v45  ;;  %v1014_v48 = vpop.f32.mrb[32].mxu0 }
 0x140   : > { %1357 = vst [vmem:[#allocation2 + $0x80] sm:$0xff] %v1014_v48  ;;  %v8273_v49 = vpop.f32.mrb[33].mxu0  ;;  %1499 = vst [vmem:[#allocation3 + $0xe] sm:$0xff] %v1497_v46 }
 0x141   : > { %v1498_v51 = vmax.f32 %v1496_v47, 0.0  ;;  %v1017_v52 = vpop.f32.mrb[34].mxu0  ;;  %v1502_v61 = vld [vmem:[#allocation2 + $0x70] ss:$2 sm:$0xff]  ;;  %v1506_v62 = vld [vmem:[#allocation2 + $0x71] ss:$2 sm:$0xff] }
 0x142   : > { %1358 = vst [vmem:[#allocation2 + $0x88] sm:$0xff] %v1017_v52  ;;  %v8274_v53 = vpop.f32.mrb[35].mxu0  ;;  %v1517_v6 = vmax.f32 %v1502_v61, %v1506_v62 }
 0x143   : > { %1500 = vst [vmem:[#allocation3 + $0x16] sm:$0x3f] %v1498_v51 }
 0x144   : > { %8380 = vmatmul.mubr.msk.bf16.gmra.mrb[140].mxu0 %vm768_vm1, %v10348_v50 }
 0x145   : > { %8383 = vmatprep.mubr.msk.bf16.mxu0 %vm10554_vm0, %v12697_v1 }
 0x147   : > { %v1022_v54 = vpop.f32.mrb[36].mxu0 }
 0x148   : > { %1359 = vst [vmem:[#allocation2 + $0x90] sm:$0xff] %v1022_v54  ;;  %v8277_v55 = vpop.f32.mrb[37].mxu0 }
 0x149   : > { %v1025_v57 = vpop.f32.mrb[38].mxu0  ;;  %v1504_v8 = vld [vmem:[#allocation2 + $0x80] ss:$2 sm:$0x3f] }
 0x14a   : > { %1360 = vst [vmem:[#allocation2 + $0x98] sm:$0xff] %v1025_v57  ;;  %v8278_v58 = vpop.f32.mrb[39].mxu0  ;;  %v1508_v9 = vld [vmem:[#allocation2 + $0x81] ss:$2 sm:$0x3f] }
 0x14b   : > { %v1518_v14 = vmax.f32 %v1504_v8, %v1508_v9 }
 0x14c   : > { %8384 = vmatmul.mubr.msk.bf16.gmra.mrb[144].mxu0 %vm768_vm1, %v10349_v56 }
 0x14d   : > { %8387 = vmatprep.mubr.msk.bf16.mxu0 %vm10554_vm0, %v12697_v1 }
 0x14f   : > { %v1030_v60 = vpop.f32.mrb[40].mxu0 }
 0x150   : > { %1361 = vst [vmem:[#allocation2 + $0xa0] sm:$0xff] %v1030_v60  ;;  %v8281_v63 = vpop.f32.mrb[41].mxu0  ;;  %v10355_v60 = vld [vmem:[%s10694_s29 + $0x150] sm:$0xff]  }
 0x151   : > { %v1033_v2 = vpop.f32.mrb[42].mxu0  ;;  %v1510_v3 = vld [vmem:[#allocation2 + $0x8c] ss:$2 sm:$0xff]  ;;  %v1514_v4 = vld [vmem:[#allocation2 + $0x8d] ss:$2 sm:$0xff] }
 0x152   : > { %1362 = vst [vmem:[#allocation2 + $0xa8] sm:$0xff] %v1033_v2  ;;  %v8282_v5 = vpop.f32.mrb[43].mxu0  ;;  %v1519_v7 = vmax.f32 %v1510_v3, %v1514_v4  ;;  %v10356_v3 = vld [vmem:[%s10694_s29 + $0x158] sm:$0xff]  }
 0x154   : > { %8388 = vmatmul.mubr.msk.bf16.gmra.mrb[148].mxu0 %vm768_vm1, %v10350_v0  ;;  %v1521_v10 = vmax.f32 %v1517_v6, %v1519_v7 }
 0x155   : > { %8391 = vmatprep.mubr.msk.bf16.mxu0 %vm10554_vm0, %v12697_v1 }
 0x156   : > { %v1523_v11 = vadd.f32 %v10829_v59, %v1521_v10 }
 0x157   : > { %v1512_v12 = vld [vmem:[#allocation2 + $0x9c] ss:$2 sm:$0x3f]  ;;  %v1516_v13 = vld [vmem:[#allocation2 + $0x9d] ss:$2 sm:$0x3f] }
 0x158   : > { %v1520_v15 = vmax.f32 %v1512_v12, %v1516_v13  ;;  %v1038_v16 = vpop.f32.mrb[44].mxu0  ;;  %v1525_v18 = vmax.f32 %v1523_v11, 0.0  ;;  %v10357_v13 = vld [vmem:[%s10694_s29 + $0x160] sm:$0xff]  }
 0x159   : > { %1363 = vst [vmem:[#allocation2 + $0xb0] sm:$0xff] %v1038_v16  ;;  %v8285_v19 = vpop.f32.mrb[45].mxu0 }
 0x15a   : > { %v1522_v20 = vmax.f32 %v1518_v14, %v1520_v15  ;;  %v1041_v21 = vpop.f32.mrb[46].mxu0  ;;  %1527 = vst [vmem:[#allocation3 + $0x1c] sm:$0xff] %v1525_v18 }
 0x15b   : > { %1364 = vst [vmem:[#allocation2 + $0xb8] sm:$0xff] %v1041_v21  ;;  %v8286_v22 = vpop.f32.mrb[47].mxu0 }
 0x15c   : > { %v1524_v23 = vadd.f32 %v10829_v59, %v1522_v20  ;;  %8392 = vmatmul.mubr.msk.bf16.gmra.mrb[152].mxu0 %vm768_vm1, %v10351_v17 }
 0x15d   : > { %8395 = vmatprep.mubr.msk.bf16.mxu0 %vm10554_vm0, %v12697_v1 }
 0x15e   : > { %v1526_v24 = vmax.f32 %v1524_v23, 0.0 }
 0x15f   : > { %v1046_v25 = vpop.f32.mrb[48].mxu0 }
 0x160   : > { %1528 = vst [vmem:[#allocation3 + $0x24] sm:$0x3f] %v1526_v24  ;;  %1365 = vst [vmem:[#allocation2 + $0xc0] sm:$0xff] %v1046_v25  ;;  %v8289_v26 = vpop.f32.mrb[49].mxu0  ;;  %v1530_v35 = vld [vmem:[#allocation2 + $0xa8] ss:$2 sm:$0xff] }
 0x161   : > { %v1049_v28 = vpop.f32.mrb[50].mxu0  ;;  %v1534_v36 = vld [vmem:[#allocation2 + $0xa9] ss:$2 sm:$0xff] }
 0x162   : > { %1366 = vst [vmem:[#allocation2 + $0xc8] sm:$0xff] %v1049_v28  ;;  %v8290_v29 = vpop.f32.mrb[51].mxu0  ;;  %v1545_v44 = vmax.f32 %v1530_v35, %v1534_v36 }
 0x163   : > { %v10358_v29 = vld [vmem:[%s10694_s29 + $0x168] sm:$0xff]  }
 0x164   : > { %8396 = vmatmul.mubr.msk.bf16.gmra.mrb[156].mxu0 %vm768_vm1, %v10352_v27 }
 0x165   : > { %8399 = vmatprep.mubr.msk.bf16.mxu0 %vm10554_vm0, %v12697_v1 }
 0x167   : > { %v1054_v30 = vpop.f32.mrb[52].mxu0  ;;  %v1532_v37 = vld [vmem:[#allocation2 + $0xb8] ss:$2 sm:$0x3f] }
 0x168   : > { %1367 = vst [vmem:[#allocation2 + $0xd0] sm:$0xff] %v1054_v30  ;;  %v8293_v32 = vpop.f32.mrb[53].mxu0  ;;  %v1536_v38 = vld [vmem:[#allocation2 + $0xb9] ss:$2 sm:$0x3f] }
 0x169   : > { %v1057_v33 = vpop.f32.mrb[54].mxu0  ;;  %v1546_v49 = vmax.f32 %v1532_v37, %v1536_v38 }
 0x16a   : > { %1368 = vst [vmem:[#allocation2 + $0xd8] sm:$0xff] %v1057_v33  ;;  %v8294_v34 = vpop.f32.mrb[55].mxu0 }
 0x16c   : > { %8400 = vmatmul.mubr.msk.bf16.gmra.mrb[160].mxu0 %vm768_vm1, %v10353_v31 }
 0x16d   : > { %8403 = vmatprep.mubr.msk.bf16.mxu0 %vm10554_vm0, %v12697_v1 }
 0x16f   : > { %v1062_v39 = vpop.f32.mrb[56].mxu0  ;;  %v1538_v40 = vld [vmem:[#allocation2 + $0xc4] ss:$2 sm:$0xff]  ;;  %v1542_v41 = vld [vmem:[#allocation2 + $0xc5] ss:$2 sm:$0xff] }
 0x170   : > { %1369 = vst [vmem:[#allocation2 + $0xe0] sm:$0xff] %v1062_v39  ;;  %v8297_v42 = vpop.f32.mrb[57].mxu0  ;;  %v1547_v45 = vmax.f32 %v1538_v40, %v1542_v41  ;;  %v10359_v39 = vld [vmem:[%s10694_s29 + $0x170] sm:$0xff]  }
 0x171   : > { %v1065_v46 = vpop.f32.mrb[58].mxu0  ;;  %v1540_v47 = vld [vmem:[#allocation2 + $0xd4] ss:$2 sm:$0x3f] }
 0x172   : > { %v1544_v48 = vld [vmem:[#allocation2 + $0xd5] ss:$2 sm:$0x3f]  ;;  %1370 = vst [vmem:[#allocation2 + $0xe8] sm:$0xff] %v1065_v46  ;;  %v1549_v50 = vmax.f32 %v1545_v44, %v1547_v45  ;;  %v8298_v52 = vpop.f32.mrb[59].mxu0 }
 0x173   : > { %v1548_v51 = vmax.f32 %v1540_v47, %v1544_v48 }
 0x174   : > { %8404 = vmatmul.mubr.msk.bf16.gmra.mrb[164].mxu0 %vm768_vm1, %v10354_v43  ;;  %v10888_v53 = vadd.f32 %v10829_v59, %v1549_v50  ;;  %v10360_v43 = vld [vmem:[%s10694_s29 + $0x178] sm:$0xff]  }
 0x175   : > { %v1550_v54 = vmax.f32 %v1546_v49, %v1548_v51  ;;  %8407 = vmatprep.mubr.msk.bf16.mxu0 %vm10554_vm0, %v12697_v1 }
 0x176   : > { %v12696_v55 = vmax.f32 %v10888_v53, 0.0 }
 0x177   : > { %v1552_v56 = vadd.f32 %v10829_v59, %v1550_v54  ;;  %v1070_v57 = vpop.f32.mrb[60].mxu0 }
 0x178   : > { %1371 = vst [vmem:[#allocation2 + $0xf0] sm:$0xff] %v1070_v57  ;;  %v8301_v58 = vpop.f32.mrb[61].mxu0  ;;  %1555 = vst [vmem:[#allocation3 + $0x2a] sm:$0xff] %v12696_v55 }
 0x179   : > { %v1554_v61 = vmax.f32 %v1552_v56, 0.0  ;;  %v1073_v62 = vpop.f32.mrb[62].mxu0  ;;  %v1558_v10 = vld [vmem:[#allocation2 + $0xe0] ss:$2 sm:$0xff]  ;;  %v1562_v11 = vld [vmem:[#allocation2 + $0xe1] ss:$2 sm:$0xff] }
 0x17a   : > { %1372 = vst [vmem:[#allocation2 + $0xf8] sm:$0xff] %v1073_v62  ;;  %v8302_v63 = vpop.f32.mrb[63].mxu0  ;;  %v1573_v18 = vmax.f32 %v1558_v10, %v1562_v11 }
 0x17b   : > { %1556 = vst [vmem:[#allocation3 + $0x32] sm:$0x3f] %v1554_v61  ;;  %v10361_v61 = vld [vmem:[%s10694_s29 + $0x180] sm:$0xff]   ;;  %s12767_s29 = smov 64  }
 0x17c   : > { %8408 = vmatmul.mubr.msk.bf16.gmra.mrb[168].mxu0 %vm768_vm1, %v10355_v60 }
 0x17d   : > { %8411 = vmatprep.mubr.msk.bf16.mxu0 %vm10554_vm0, %v12697_v1 }
 0x17f   : > { %v1078_v0 = vpop.f32.mrb[64].mxu0  ;;  %v10901_v5 = vld [vmem:[#allocation3 + $0x24] sm:$0xff] }
 0x180   : > { %1373 = vst [vmem:[#allocation2 + $0x100] sm:$0xff] %v1078_v0  ;;  %v8305_v2 = vpop.f32.mrb[65].mxu0 }
 0x181   : > { %v1081_v4 = vpop.f32.mrb[66].mxu0  ;;  %v1560_v20 = vld [vmem:[#allocation2 + $0xf0] ss:$2 sm:$0x3f] }
 0x182   : > { %v10903_v6 = vld [vmem:[#allocation3 + $0x2c] sm:$0xff]  ;;  %1374 = vst [vmem:[#allocation2 + $0x108] sm:$0xff] %v1081_v4  ;;  %v8306_v7 = vpop.f32.mrb[67].mxu0  ;;  %v1564_v21 = vld [vmem:[#allocation2 + $0xf1] ss:$2 sm:$0x3f] }
 0x183   : > { %v1574_v26 = vmax.f32 %v1560_v20, %v1564_v21  ;;  %v1864_v20 = vld [vmem:[#allocation3 + $0x1] sm:$0xff] }
 0x184   : > { %8412 = vmatmul.mubr.msk.bf16.gmra.mrb[172].mxu0 %vm768_vm1, %v10356_v3 }
 0x185   : > { %8415 = vmatprep.mubr.msk.bf16.mxu0 %vm10554_vm0, %v12697_v1 }
 0x187   : > { %v1086_v9 = vpop.f32.mrb[68].mxu0 }
 0x188   : > { %1375 = vst [vmem:[#allocation2 + $0x110] sm:$0xff] %v1086_v9  ;;  %v8309_v12 = vpop.f32.mrb[69].mxu0 }
 0x189   : > { %v1089_v14 = vpop.f32.mrb[70].mxu0  ;;  %v1566_v15 = vld [vmem:[#allocation2 + $0xfc] ss:$2 sm:$0xff]  ;;  %v1570_v16 = vld [vmem:[#allocation2 + $0xfd] ss:$2 sm:$0xff] }
 0x18a   : > { %1376 = vst [vmem:[#allocation2 + $0x118] sm:$0xff] %v1089_v14  ;;  %v8310_v17 = vpop.f32.mrb[71].mxu0  ;;  %v1575_v19 = vmax.f32 %v1566_v15, %v1570_v16  ;;  %v1865_v16 = vld [vmem:[#allocation3 + $0x9] sm:$0xff] }
 0x18c   : > { %8416 = vmatmul.mubr.msk.bf16.gmra.mrb[176].mxu0 %vm768_vm1, %v10357_v13  ;;  %v1577_v22 = vmax.f32 %v1573_v18, %v1575_v19 }
 0x18d   : > { %8419 = vmatprep.mubr.msk.bf16.mxu0 %vm10554_vm0, %v12697_v1 }
 0x18e   : > { %v10915_v23 = vadd.f32 %v10829_v59, %v1577_v22  ;;  %v1881_v22 = vpack.c.bf16 %v1865_v16, %v1864_v20 }
 0x18f   : > { %v1568_v24 = vld [vmem:[#allocation2 + $0x10c] ss:$2 sm:$0x3f]  ;;  %v1572_v25 = vld [vmem:[#allocation2 + $0x10d] ss:$2 sm:$0x3f] }
 0x190   : > { %v1576_v27 = vmax.f32 %v1568_v24, %v1572_v25  ;;  %v1094_v28 = vpop.f32.mrb[72].mxu0  ;;  %v1581_v30 = vmax.f32 %v10915_v23, 0.0  ;;  %v1863_v24 = vld [vmem:[%s12683_s3] sm:$0xf] }
 0x191   : > { %1377 = vst [vmem:[#allocation2 + $0x120] sm:$0xff] %v1094_v28  ;;  %v8313_v31 = vpop.f32.mrb[73].mxu0 }
 0x192   : > { %v1578_v32 = vmax.f32 %v1574_v26, %v1576_v27  ;;  %v1097_v33 = vpop.f32.mrb[74].mxu0  ;;  %1583 = vst [vmem:[#allocation3 + $0x38] sm:$0xff] %v1581_v30  ;;  %v1867_v26 = vld [vmem:[#allocation3 + $0x19] sm:$0xff]  ;;  %v2056_v27 = vsel %vm1920_vm2, %v1863_v24, 0 }
 0x193   : > { %1378 = vst [vmem:[#allocation2 + $0x128] sm:$0xff] %v1097_v33  ;;  %v8314_v34 = vpop.f32.mrb[75].mxu0 }
 0x194   : > { %v1580_v35 = vadd.f32 %v10829_v59, %v1578_v32  ;;  %8420 = vmatmul.mubr.msk.bf16.gmra.mrb[180].mxu0 %vm768_vm1, %v10358_v29  ;;  %v1866_v29 = vld [vmem:[#allocation3 + $0x11] sm:$0xff] }
 0x195   : > { %8423 = vmatprep.mubr.msk.bf16.mxu0 %vm10554_vm0, %v12697_v1  ;;  %v1882_v32 = vpack.c.bf16 %v1867_v26, %v1866_v29 }
 0x196   : > { %v1582_v36 = vmax.f32 %v1580_v35, 0.0 }
 0x197   : > { %v1102_v37 = vpop.f32.mrb[76].mxu0 }
 0x198   : > { %1584 = vst [vmem:[#allocation3 + $0x40] sm:$0x3f] %v1582_v36  ;;  %1379 = vst [vmem:[#allocation2 + $0x130] sm:$0xff] %v1102_v37  ;;  %v8317_v38 = vpop.f32.mrb[77].mxu0  ;;  %v1586_v50 = vld [vmem:[#allocation2 + $0x118] ss:$2 sm:$0xff] }
 0x199   : > { %v1105_v40 = vpop.f32.mrb[78].mxu0  ;;  %v10930_v44 = vld [vmem:[#allocation3 + $0x34] sm:$0xff] }
 0x19a   : > { %1380 = vst [vmem:[#allocation2 + $0x138] sm:$0xff] %v1105_v40  ;;  %v8318_v41 = vpop.f32.mrb[79].mxu0  ;;  %v1590_v51 = vld [vmem:[#allocation2 + $0x119] ss:$2 sm:$0xff]  ;;  %v10962_v37 = vld [vmem:[#allocation3 + $0x38] sm:$0xff] }
 0x19b   : > { %v1601_v62 = vmax.f32 %v1586_v50, %v1590_v51  ;;  %v1869_v41 = vld [vmem:[#allocation3 + $0x29] sm:$0xff]  ;;  %v1870_v16 = vld [vmem:[#allocation3 + $0x31] sm:$0xff] }
 0x19c   : > { %8424 = vmatmul.mubr.msk.bf16.gmra.mrb[184].mxu0 %vm768_vm1, %v10359_v39 }
 0x19d   : > { %8427 = vmatprep.mubr.msk.bf16.mxu0 %vm10554_vm0, %v12697_v1 }
 0x19f   : > { %v1110_v42 = vpop.f32.mrb[80].mxu0  ;;  %v10932_v45 = vld [vmem:[#allocation3 + $0x3c] sm:$0xff] }
 0x1a0   : > { %1381 = vst [vmem:[#allocation2 + $0x140] sm:$0xff] %v1110_v42  ;;  %v8321_v46 = vpop.f32.mrb[81].mxu0  ;;  %v1588_v52 = vld [vmem:[#allocation2 + $0x128] ss:$2 sm:$0x3f] }
 0x1a1   : > { %v1113_v48 = vpop.f32.mrb[82].mxu0  ;;  %v1592_v54 = vld [vmem:[#allocation2 + $0x129] ss:$2 sm:$0x3f] }
 0x1a2   : > { %1382 = vst [vmem:[#allocation2 + $0x148] sm:$0xff] %v1113_v48  ;;  %v8322_v49 = vpop.f32.mrb[83].mxu0  ;;  %v1602_v4 = vmax.f32 %v1588_v52, %v1592_v54  ;;  %v10968_v42 = vld [vmem:[#allocation3 + $0x39] sm:$0xff]  ;;  %v1868_v52 = vld [vmem:[#allocation3 + $0x21] sm:$0xff] }
 0x1a4   : > { %8428 = vmatmul.mubr.msk.bf16.gmra.mrb[188].mxu0 %vm768_vm1, %v10360_v43 }
 0x1a5   : > { %8431 = vmatprep.mubr.msk.bf16.mxu0 %vm10554_vm0, %v12697_v1 }
 0x1a7   : > { %v1118_v56 = vpop.f32.mrb[84].mxu0  ;;  %v1594_v57 = vld [vmem:[#allocation2 + $0x134] ss:$2 sm:$0xff]  ;;  %v1598_v58 = vld [vmem:[#allocation2 + $0x135] ss:$2 sm:$0xff] }
 0x1a8   : > { %1383 = vst [vmem:[#allocation2 + $0x150] sm:$0xff] %v1118_v56  ;;  %v8325_v60 = vpop.f32.mrb[85].mxu0  ;;  %v1603_v63 = vmax.f32 %v1594_v57, %v1598_v58  ;;  %v1883_v58 = vpack.c.bf16 %v1869_v41, %v1868_v52 }
 0x1a9   : > { %v1121_v0 = vpop.f32.mrb[86].mxu0  ;;  %v1596_v2 = vld [vmem:[#allocation2 + $0x144] ss:$2 sm:$0x3f] }
 0x1aa   : > { %v1600_v3 = vld [vmem:[#allocation2 + $0x145] ss:$2 sm:$0x3f]  ;;  %1384 = vst [vmem:[#allocation2 + $0x158] sm:$0xff] %v1121_v0  ;;  %v1605_v7 = vmax.f32 %v1601_v62, %v1603_v63  ;;  %v8326_v10 = vpop.f32.mrb[87].mxu0 }
 0x1ab   : > { %v1604_v9 = vmax.f32 %v1596_v2, %v1600_v3  ;;  %v1871_v2 = vld [vmem:[#allocation3 + $0x39] sm:$0xff]  ;;  %v7645_v3 = vld [vmem:[%s12683_s3 + $0x20] sm:$0xf] }
 0x1ac   : > { %8432 = vmatmul.mubr.msk.bf16.gmra.mrb[192].mxu0 %vm768_vm1, %v10361_v61  ;;  %v1607_v11 = vadd.f32 %v10829_v59, %v1605_v7 }
 0x1ad   : > { %v1606_v12 = vmax.f32 %v1602_v4, %v1604_v9  ;;  %8437 = vmatprep.mubr.msk.bf16.mxu0 %vm10554_vm0, %v12697_v1 }
 0x1ae   : > { %v1609_v13 = vmax.f32 %v1607_v11, 0.0 }
 0x1af   : > { %v1608_v14 = vadd.f32 %v10829_v59, %v1606_v12  ;;  %v1126_v15 = vpop.f32.mrb[88].mxu0 }
 0x1b0   : > { %1385 = vst [vmem:[#allocation2 + $0x160] sm:$0xff] %v1126_v15  ;;  %v8329_v17 = vpop.f32.mrb[89].mxu0  ;;  %1611 = vst [vmem:[#allocation3 + $0x46] sm:$0xff] %v1609_v13  ;;  %v10984_v13 = vsel %vm1920_vm2, %v7645_v3, 0 }
 0x1b1   : > { %v1610_v18 = vmax.f32 %v1608_v14, 0.0  ;;  %v1129_v19 = vpop.f32.mrb[90].mxu0  ;;  %v1614_v46 = vld [vmem:[#allocation2 + $0x150] ss:$2 sm:$0xff]  ;;  %v1618_v48 = vld [vmem:[#allocation2 + $0x151] ss:$2 sm:$0xff]  ;;  %9406 = vmatpush3.bf16.msra.mxu1 %v10984_v13 }
 0x1b2   : > { %1386 = vst [vmem:[#allocation2 + $0x168] sm:$0xff] %v1129_v19  ;;  %v8330_v21 = vpop.f32.mrb[91].mxu0  ;;  %v1629_v60 = vmax.f32 %v1614_v46, %v1618_v48  ;;  %v1884_v19 = vpack.c.bf16 %v1871_v2, %v1870_v16  ;;  %8777 = vmatprep.subr.bf16.mxu1 %v12697_v1 }
 0x1b3   : > { %1612 = vst [vmem:[#allocation3 + $0x4e] sm:$0x3f] %v1610_v18 }
 0x1b4   : > { %8438 = vmatmul.mubr.msk.bf16.vlgmr.msra.gmra.mrb[196].mxu0 %vm1892_vm3, %v1881_v22 }
 0x1b5   : > { %8441 = vmatprep.mubr.msk.bf16.mxu0 %vm10554_vm0, %v12697_v1  ;;  %8474 = vmatpush3.bf16.msra.mxu0 %v2056_v27 }
 0x1b6   : > { %8511 = vmatprep.subr.bf16.mxu0 %v12697_v1 }
 0x1b7   : > { %v1134_v25 = vpop.f32.mrb[92].mxu0  ;;  %v10953_v34 = vld [vmem:[#allocation3 + $0x44] sm:$0xff] }
 0x1b8   : > { %1387 = vst [vmem:[#allocation2 + $0x170] sm:$0xff] %v1134_v25  ;;  %v8333_v28 = vpop.f32.mrb[93].mxu0  ;;  %v10964_v38 = vld [vmem:[#allocation3 + $0x40] sm:$0xff] }
 0x1b9   : > { %v1137_v31 = vpop.f32.mrb[94].mxu0  ;;  %v10970_v43 = vld [vmem:[#allocation3 + $0x41] sm:$0xff]  ;;  %v1616_v62 = vld [vmem:[#allocation2 + $0x160] ss:$2 sm:$0x3f] }
 0x1ba   : > { %1388 = vst [vmem:[#allocation2 + $0x178] sm:$0xff] %v1137_v31  ;;  %v8334_v33 = vpop.f32.mrb[95].mxu0  ;;  %v10955_v35 = vld [vmem:[#allocation3 + $0x4c] sm:$0xff]  ;;  %v1872_v28 = vld [vmem:[#allocation3 + $0x41] sm:$0xff] }
 0x1bb   : > { %v1620_v63 = vld [vmem:[#allocation2 + $0x161] ss:$2 sm:$0x3f]  ;;  %v1873_v25 = vld [vmem:[#allocation3 + $0x49] sm:$0xff] }
 0x1bc   : > { %8442 = vmatmul.mubr.msk.bf16.gmra.mrb[200].mxu0 %vm1892_vm3, %v1882_v32  ;;  %v1630_v10 = vmax.f32 %v1616_v62, %v1620_v63  ;;  %v1885_v31 = vpack.c.bf16 %v1873_v25, %v1872_v28  ;;  %v10996_v32 = vld [vmem:[#allocation3 + $0x48] sm:$0xff] }
 0x1bd   : > { %8445 = vmatprep.mubr.msk.bf16.mxu0 %vm10554_vm0, %v12697_v1 }
 0x1bf   : > { %v1142_v40 = vpop.f32.mrb[96].mxu0 }
 0x1c0   : > { %1389 = vst [vmem:[#allocation2 + $0x180] sm:$0xff] %v1142_v40  ;;  %v8337_v49 = vpop.f32.mrb[97].mxu0  ;;  %v11002_v40 = vld [vmem:[#allocation3 + $0x49] sm:$0xff] }
 0x1c1   : > { %v1145_v51 = vpop.f32.mrb[98].mxu0  ;;  %v1622_v54 = vld [vmem:[#allocation2 + $0x16c] ss:$2 sm:$0xff]  ;;  %v1626_v56 = vld [vmem:[#allocation2 + $0x16d] ss:$2 sm:$0xff] }
 0x1c2   : > { %1390 = vst [vmem:[#allocation2 + $0x188] sm:$0xff] %v1145_v51  ;;  %v8338_v57 = vpop.f32.mrb[99].mxu0  ;;  %v1631_v61 = vmax.f32 %v1622_v54, %v1626_v56 }
 0x1c4   : > { %8446 = vmatmul.mubr.msk.bf16.gmra.mrb[204].mxu0 %vm1892_vm3, %v1883_v58  ;;  %v1633_v0 = vmax.f32 %v1629_v60, %v1631_v61 }
 0x1c5   : > { %8449 = vmatprep.mubr.msk.bf16.mxu0 %vm10554_vm0, %v12697_v1 }
 0x1c6   : > { %v10981_v4 = vadd.f32 %v10829_v59, %v1633_v0 }
 0x1c7   : > { %v1624_v7 = vld [vmem:[#allocation2 + $0x17c] ss:$2 sm:$0x3f]  ;;  %v1628_v9 = vld [vmem:[#allocation2 + $0x17d] ss:$2 sm:$0x3f] }
 0x1c8   : > { %v1632_v11 = vmax.f32 %v1624_v7, %v1628_v9  ;;  %v1150_v12 = vpop.f32.mrb[100].mxu0  ;;  %v12693_v14 = vmax.f32 %v10981_v4, 0.0 }
 0x1c9   : > { %1391 = vst [vmem:[#allocation2 + $0x190] sm:$0xff] %v1150_v12  ;;  %v8341_v15 = vpop.f32.mrb[101].mxu0 }
 0x1ca   : > { %v1634_v17 = vmax.f32 %v1630_v10, %v1632_v11  ;;  %v1153_v18 = vpop.f32.mrb[102].mxu0  ;;  %1639 = vst [vmem:[#allocation3 + $0x54] sm:$0xff] %v12693_v14 }
 0x1cb   : > { %1392 = vst [vmem:[#allocation2 + $0x198] sm:$0xff] %v1153_v18  ;;  %v8342_v20 = vpop.f32.mrb[103].mxu0 }
 0x1cc   : > { %v1636_v21 = vadd.f32 %v10829_v59, %v1634_v17  ;;  %8450 = vmatmul.mubr.msk.bf16.gmra.mrb[208].mxu0 %vm1892_vm3, %v1884_v19 }
 0x1cd   : > { %8453 = vmatprep.mubr.msk.bf16.mxu0 %vm10554_vm0, %v12697_v1 }
 0x1ce   : > { %v1638_v22 = vmax.f32 %v1636_v21, 0.0 }
 0x1cf   : > { %v1158_v24 = vpop.f32.mrb[104].mxu0 }
 0x1d0   : > { %1640 = vst [vmem:[#allocation3 + $0x5c] sm:$0x3f] %v1638_v22  ;;  %1393 = vst [vmem:[#allocation2 + $0x1a0] sm:$0xff] %v1158_v24  ;;  %v8345_v26 = vpop.f32.mrb[105].mxu0  ;;  %v1642_v60 = vld [vmem:[#allocation2 + $0x188] ss:$2 sm:$0xff] }
 0x1d1   : > { %v1161_v27 = vpop.f32.mrb[106].mxu0  ;;  %v10998_v33 = vld [vmem:[#allocation3 + $0x50] sm:$0xff]  ;;  %v1646_v61 = vld [vmem:[#allocation2 + $0x189] ss:$2 sm:$0xff] }
 0x1d2   : > { %1394 = vst [vmem:[#allocation2 + $0x1a8] sm:$0xff] %v1161_v27  ;;  %v8346_v29 = vpop.f32.mrb[107].mxu0  ;;  %v11004_v41 = vld [vmem:[#allocation3 + $0x51] sm:$0xff]  ;;  %v1657_v9 = vmax.f32 %v1642_v60, %v1646_v61 }
 0x1d3   : > { %v1874_v54 = vld [vmem:[#allocation3 + $0x51] sm:$0xff] }
 0x1d4   : > { %8454 = vmatmul.mubr.msk.bf16.gmra.mrb[212].mxu0 %vm1892_vm3, %v1885_v31 }
 0x1d5   : > { %8457 = vmatprep.mubr.msk.bf16.mxu0 %vm10554_vm0, %v12697_v1 }
 0x1d7   : > { %v1166_v49 = vpop.f32.mrb[108].mxu0  ;;  %v1875_v51 = vld [vmem:[#allocation3 + $0x59] sm:$0xff]  ;;  %v1644_v62 = vld [vmem:[#allocation2 + $0x198] ss:$2 sm:$0x3f] }
 0x1d8   : > { %1395 = vst [vmem:[#allocation2 + $0x1b0] sm:$0xff] %v1166_v49  ;;  %v8349_v52 = vpop.f32.mrb[109].mxu0  ;;  %v1886_v57 = vpack.c.bf16 %v1875_v51, %v1874_v54  ;;  %v1648_v63 = vld [vmem:[#allocation2 + $0x199] ss:$2 sm:$0x3f]  ;;  %v11020_v54 = vld [vmem:[#allocation3 + $0x58] sm:$0xff] }
 0x1d9   : > { %v1169_v56 = vpop.f32.mrb[110].mxu0  ;;  %v1658_v16 = vmax.f32 %v1644_v62, %v1648_v63 }
 0x1da   : > { %1396 = vst [vmem:[#allocation2 + $0x1b8] sm:$0xff] %v1169_v56  ;;  %v8350_v58 = vpop.f32.mrb[111].mxu0 }
 0x1dc   : > { %8458 = vmatmul.mubr.msk.bf16.gmra.mrb[216].mxu0 %vm1892_vm3, %v1886_v57  ;;  %v11024_v57 = vld [vmem:[#allocation3 + $0x59] sm:$0xff] }
 0x1dd   : > { %8461 = vmatprep.mubr.msk.bf16.mxu0 %vm10554_vm0, %v12697_v1 }
 0x1df   : > { %v1174_v0 = vpop.f32.mrb[112].mxu0  ;;  %v1650_v2 = vld [vmem:[#allocation2 + $0x1a4] ss:$2 sm:$0xff]  ;;  %v1654_v3 = vld [vmem:[#allocation2 + $0x1a5] ss:$2 sm:$0xff] }
 0x1e0   : > { %1397 = vst [vmem:[#allocation2 + $0x1c0] sm:$0xff] %v1174_v0  ;;  %v8353_v7 = vpop.f32.mrb[113].mxu0  ;;  %v1659_v10 = vmax.f32 %v1650_v2, %v1654_v3 }
 0x1e1   : > { %v1177_v11 = vpop.f32.mrb[114].mxu0  ;;  %v1652_v12 = vld [vmem:[#allocation2 + $0x1b4] ss:$2 sm:$0x3f] }
 0x1e2   : > { %v1656_v15 = vld [vmem:[#allocation2 + $0x1b5] ss:$2 sm:$0x3f]  ;;  %1398 = vst [vmem:[#allocation2 + $0x1c8] sm:$0xff] %v1177_v11  ;;  %v1661_v17 = vmax.f32 %v1657_v9, %v1659_v10  ;;  %v8354_v19 = vpop.f32.mrb[115].mxu0 }
 0x1e3   : > { %v1660_v18 = vmax.f32 %v1652_v12, %v1656_v15 }
 0x1e4   : > { %v11014_v20 = vadd.f32 %v10829_v59, %v1661_v17 }
 0x1e5   : > { %v1662_v21 = vmax.f32 %v1658_v16, %v1660_v18 }
 0x1e6   : > { %v12694_v22 = vmax.f32 %v11014_v20, 0.0 }
 0x1e7   : > { %v1664_v24 = vadd.f32 %v10829_v59, %v1662_v21  ;;  %v1182_v25 = vpop.f32.mrb[116].mxu0 }
 0x1e8   : > { %1399 = vst [vmem:[#allocation2 + $0x1d0] sm:$0xff] %v1182_v25  ;;  %v8357_v26 = vpop.f32.mrb[117].mxu0  ;;  %1667 = vst [vmem:[#allocation3 + $0x62] sm:$0xff] %v12694_v22 }
 0x1e9   : > { %v1666_v27 = vmax.f32 %v1664_v24, 0.0  ;;  %v1185_v28 = vpop.f32.mrb[118].mxu0  ;;  %v1670_v63 = vld [vmem:[#allocation2 + $0x1c0] ss:$2 sm:$0xff]  ;;  %v1674_v0 = vld [vmem:[#allocation2 + $0x1c1] ss:$2 sm:$0xff] }
 0x1ea   : > { %1400 = vst [vmem:[#allocation2 + $0x1d8] sm:$0xff] %v1185_v28  ;;  %v8358_v29 = vpop.f32.mrb[119].mxu0  ;;  %v1685_v11 = vmax.f32 %v1670_v63, %v1674_v0 }
 0x1eb   : > { %1668 = vst [vmem:[#allocation3 + $0x6a] sm:$0x3f] %v1666_v27 }
 0x1ef   : > { %v1190_v31 = vpop.f32.mrb[120].mxu0  ;;  %v11022_v56 = vld [vmem:[#allocation3 + $0x60] sm:$0xff] }
 0x1f0   : > { %1401 = vst [vmem:[#allocation2 + $0x1e0] sm:$0xff] %v1190_v31  ;;  %v8361_v49 = vpop.f32.mrb[121].mxu0  ;;  %v11026_v58 = vld [vmem:[#allocation3 + $0x61] sm:$0xff] }
 0x1f1   : > { %v1193_v51 = vpop.f32.mrb[122].mxu0  ;;  %v1672_v15 = vld [vmem:[#allocation2 + $0x1d0] ss:$2 sm:$0x3f] }
 0x1f2   : > { %1402 = vst [vmem:[#allocation2 + $0x1e8] sm:$0xff] %v1193_v51  ;;  %v8362_v52 = vpop.f32.mrb[123].mxu0  ;;  %v1676_v16 = vld [vmem:[#allocation2 + $0x1d1] ss:$2 sm:$0x3f] }
 0x1f3   : > { %v1686_v24 = vmax.f32 %v1672_v15, %v1676_v16 }
 0x1f7   : > { %v1198_v61 = vpop.f32.mrb[124].mxu0 }
 0x1f8   : > { %1403 = vst [vmem:[#allocation2 + $0x1f0] sm:$0xff] %v1198_v61  ;;  %v8365_v2 = vpop.f32.mrb[125].mxu0 }
 0x1f9   : > { %v1201_v3 = vpop.f32.mrb[126].mxu0  ;;  %v1678_v7 = vld [vmem:[#allocation2 + $0x1dc] ss:$2 sm:$0xff]  ;;  %v1682_v9 = vld [vmem:[#allocation2 + $0x1dd] ss:$2 sm:$0xff]  ;;  %v1876_v2 = vld [vmem:[#allocation3 + $0x61] sm:$0xff] }
 0x1fa   : > { %1404 = vst [vmem:[#allocation2 + $0x1f8] sm:$0xff] %v1201_v3  ;;  %v8366_v10 = vpop.f32.mrb[127].mxu0  ;;  %v1687_v12 = vmax.f32 %v1678_v7, %v1682_v9  ;;  %v11039_v9 = vld [vmem:[#allocation3 + $0x64] sm:$0xff] }
 0x1fc   : > { %v1689_v17 = vmax.f32 %v1685_v11, %v1687_v12 }
 0x1fe   : > { %v11033_v18 = vadd.f32 %v10829_v59, %v1689_v17 }
 0x1ff   : > { %v1680_v19 = vld [vmem:[#allocation2 + $0x1ec] ss:$2 sm:$0x3f]  ;;  %v1684_v21 = vld [vmem:[#allocation2 + $0x1ed] ss:$2 sm:$0x3f] }
 0x200   : > { %v1688_v25 = vmax.f32 %v1680_v19, %v1684_v21  ;;  %v1206_v26 = vpop.f32.mrb[128].mxu0  ;;  %v12695_v27 = vmax.f32 %v11033_v18, 0.0 }
 0x201   : > { %1405 = vst [vmem:[#allocation2 + $0x200] sm:$0xff] %v1206_v26  ;;  %v8369_v28 = vpop.f32.mrb[129].mxu0 }
 0x202   : > { %v1690_v29 = vmax.f32 %v1686_v24, %v1688_v25  ;;  %v1209_v31 = vpop.f32.mrb[130].mxu0  ;;  %1695 = vst [vmem:[#allocation3 + $0x70] sm:$0xff] %v12695_v27  ;;  %v11063_v28 = vld [vmem:[%s12682_s2] ss:$0 sm:$0xff] }
 0x203   : > { %1406 = vst [vmem:[#allocation2 + $0x208] sm:$0xff] %v1209_v31  ;;  %v8370_v49 = vpop.f32.mrb[131].mxu0 }
 0x204   : > { %v1692_v51 = vadd.f32 %v10829_v59, %v1690_v29  ;;  %v11047_v59 = vld [vmem:[#allocation3 + $0x68] sm:$0xff] }
 0x206   : > { %v1694_v52 = vmax.f32 %v1692_v51, 0.0 }
 0x207   : > { %v1214_v61 = vpop.f32.mrb[132].mxu0 }
 0x208   : > { %1696 = vst [vmem:[#allocation3 + $0x78] sm:$0x3f] %v1694_v52  ;;  %1407 = vst [vmem:[#allocation2 + $0x210] sm:$0xff] %v1214_v61  ;;  %v8373_v63 = vpop.f32.mrb[133].mxu0  ;;  %v1698_v29 = vld [vmem:[#allocation2 + $0x1f8] ss:$2 sm:$0xff] }
 0x209   : > { %v1217_v0 = vpop.f32.mrb[134].mxu0  ;;  %v1877_v7 = vld [vmem:[#allocation3 + $0x69] sm:$0xff] }
 0x20a   : > { %1408 = vst [vmem:[#allocation2 + $0x218] sm:$0xff] %v1217_v0  ;;  %v8374_v3 = vpop.f32.mrb[135].mxu0  ;;  %v11041_v10 = vld [vmem:[#allocation3 + $0x6c] sm:$0xff]  ;;  %v1887_v11 = vpack.c.bf16 %v1877_v7, %v1876_v2 }
 0x20b   : > { %v11045_v15 = vld [vmem:[#allocation3 + $0x70] sm:$0xff] }
 0x20c   : > { %8462 = vmatmul.mubr.msk.bf16.gmra.mrb[220].mxu0 %vm1892_vm3, %v1887_v11  ;;  %v11054_v24 = vld [vmem:[#allocation3 + $0x69] sm:$0xff] }
 0x20d   : > { %8465 = vmatprep.mubr.msk.bf16.mxu0 %vm10554_vm0, %v12697_v1  ;;  %v1702_v31 = vld [vmem:[#allocation2 + $0x1f9] ss:$2 sm:$0xff] }
 0x20e   : > { %v1713_v2 = vmax.f32 %v1698_v29, %v1702_v31 }
 0x20f   : > { %v1222_v17 = vpop.f32.mrb[136].mxu0  ;;  %v11056_v25 = vld [vmem:[#allocation3 + $0x71] sm:$0xff]  ;;  %v1704_v51 = vld [vmem:[#allocation2 + $0x209] ss:$2 sm:$0x3f] }
 0x210   : > { %1409 = vst [vmem:[#allocation2 + $0x220] sm:$0xff] %v1222_v17  ;;  %v8377_v19 = vpop.f32.mrb[137].mxu0  ;;  %v1700_v49 = vld [vmem:[#allocation2 + $0x208] ss:$2 sm:$0x3f] }
 0x211   : > { %v1225_v21 = vpop.f32.mrb[138].mxu0  ;;  %v1714_v19 = vmax.f32 %v1700_v49, %v1704_v51 }
 0x212   : > { %1410 = vst [vmem:[#allocation2 + $0x228] sm:$0xff] %v1225_v21  ;;  %v8378_v26 = vpop.f32.mrb[139].mxu0 }
 0x217   : > { %v1230_v52 = vpop.f32.mrb[140].mxu0  ;;  %v1706_v61 = vld [vmem:[#allocation2 + $0x214] ss:$2 sm:$0xff]  ;;  %v1710_v63 = vld [vmem:[#allocation2 + $0x215] ss:$2 sm:$0xff] }
 0x218   : > { %1411 = vst [vmem:[#allocation2 + $0x230] sm:$0xff] %v1230_v52  ;;  %v8381_v0 = vpop.f32.mrb[141].mxu0  ;;  %v1715_v3 = vmax.f32 %v1706_v61, %v1710_v63 }
 0x219   : > { %v1233_v7 = vpop.f32.mrb[142].mxu0  ;;  %v1708_v11 = vld [vmem:[#allocation2 + $0x224] ss:$2 sm:$0x3f] }
 0x21a   : > { %v1712_v17 = vld [vmem:[#allocation2 + $0x225] ss:$2 sm:$0x3f]  ;;  %1412 = vst [vmem:[#allocation2 + $0x238] sm:$0xff] %v1233_v7  ;;  %v1717_v21 = vmax.f32 %v1713_v2, %v1715_v3  ;;  %v8382_v62 = vpop.f32.mrb[143].mxu0 }
 0x21b   : > { %v1716_v26 = vmax.f32 %v1708_v11, %v1712_v17  ;;  %v1878_v2 = vld [vmem:[#allocation3 + $0x71] sm:$0xff] }
 0x21c   : > { %v1719_v48 = vadd.f32 %v11063_v28, %v1717_v21 }
 0x21d   : > { %v1718_v50 = vmax.f32 %v1714_v19, %v1716_v26 }
 0x21e   : > { %v1721_v52 = vmax.f32 %v1719_v48, 0.0 }
 0x21f   : > { %v1720_v29 = vadd.f32 %v11063_v28, %v1718_v50  ;;  %v1238_v31 = vpop.f32.mrb[144].mxu0  ;;  %v11068_v50 = vld [vmem:[#allocation3 + $0x74] sm:$0xff] }
 0x220   : > { %1413 = vst [vmem:[#allocation2 + $0x240] sm:$0xff] %v1238_v31  ;;  %v8385_v61 = vpop.f32.mrb[145].mxu0  ;;  %1723 = vst [vmem:[#allocation3 + $0x7e] sm:$0xff] %v1721_v52 }
 0x221   : > { %v1722_v63 = vmax.f32 %v1720_v29, 0.0  ;;  %v1241_v49 = vpop.f32.mrb[146].mxu0 }
 0x222   : > { %1414 = vst [vmem:[#allocation2 + $0x248] sm:$0xff] %v1241_v49  ;;  %v8386_v51 = vpop.f32.mrb[147].mxu0  ;;  %v1726_v49 = vld [vmem:[#allocation2 + $0x230] ss:$2 sm:$0xff] }
 0x223   : > { %1724 = vst [vmem:[#allocation3 + $0x86] sm:$0x3f] %v1722_v63  ;;  %v1730_v51 = vld [vmem:[#allocation2 + $0x231] ss:$2 sm:$0xff] }
 0x224   : > { %v1741_v16 = vmax.f32 %v1726_v49, %v1730_v51 }
 0x227   : > { %v1246_v62 = vpop.f32.mrb[148].mxu0  ;;  %v1879_v3 = vld [vmem:[#allocation3 + $0x79] sm:$0xff] }
 0x228   : > { %1415 = vst [vmem:[#allocation2 + $0x250] sm:$0xff] %v1246_v62  ;;  %v8389_v0 = vpop.f32.mrb[149].mxu0  ;;  %v1888_v7 = vpack.c.bf16 %v1879_v3, %v1878_v2  ;;  %v11070_v17 = vld [vmem:[#allocation3 + $0x7c] sm:$0xff] }
 0x229   : > { %v1249_v11 = vpop.f32.mrb[150].mxu0  ;;  %v11076_v26 = vld [vmem:[#allocation3 + $0x78] sm:$0xff] }
 0x22a   : > { %1416 = vst [vmem:[#allocation2 + $0x258] sm:$0xff] %v1249_v11  ;;  %v8390_v48 = vpop.f32.mrb[151].mxu0  ;;  %8466 = vmatmul.mubr.msk.bf16.gmra.mrb[224].mxu0 %vm1892_vm3, %v1888_v7  ;;  %v1880_v21 = vld [vmem:[#allocation3 + $0x81] sm:$0xff]  ;;  %v11080_v31 = vld [vmem:[#allocation3 + $0x79] sm:$0xff] }
 0x22b   : > { %8469 = vmatprep.mubr.msk.bf16.mxu0 %vm10554_vm0, %v12697_v1  ;;  %v11078_v52 = vld [vmem:[#allocation3 + $0x80] sm:$0xff]  ;;  %v1889_v3 = vpack.c.bf16 %v1880_v21, %v1880_v21  ;;  %v1728_v63 = vld [vmem:[#allocation2 + $0x240] ss:$2 sm:$0x3f] }
 0x22c   : > { %v11082_v61 = vld [vmem:[#allocation3 + $0x81] sm:$0xff]  ;;  %v1732_v46 = vld [vmem:[#allocation2 + $0x241] ss:$2 sm:$0x3f] }
 0x22d   : > { %v7585_v0 = vld [vmem:[%s12683_s3 + $0x8] sm:$0xf]  ;;  %v1742_v49 = vmax.f32 %v1728_v63, %v1732_v46 }
 0x22e   : > { %v1840_v63 = vld [vmem:[#allocation3 + $0x18] sm:$0xff] }
 0x22f   : > { %v1254_v29 = vpop.f32.mrb[152].mxu0 }
 0x230   : > { %1417 = vst [vmem:[#allocation2 + $0x260] sm:$0xff] %v1254_v29  ;;  %v8393_v62 = vpop.f32.mrb[153].mxu0 }
 0x231   : > { %v1257_v2 = vpop.f32.mrb[154].mxu0  ;;  %v1734_v7 = vld [vmem:[#allocation2 + $0x24c] ss:$2 sm:$0xff]  ;;  %v1738_v11 = vld [vmem:[#allocation2 + $0x24d] ss:$2 sm:$0xff] }
 0x232   : > { %1418 = vst [vmem:[#allocation2 + $0x268] sm:$0xff] %v1257_v2  ;;  %v8394_v48 = vpop.f32.mrb[155].mxu0  ;;  %v1743_v60 = vmax.f32 %v1734_v7, %v1738_v11  ;;  %8470 = vmatmul.mubr.msk.bf16.gmra.mrb[228].mxu0 %vm1892_vm3, %v1889_v3  ;;  %v1838_v62 = vld [vmem:[#allocation3 + $0x8] sm:$0xff]  ;;  %v1837_v3 = vld [vmem:[#allocation3] sm:$0xff] }
 0x233   : > { %8475 = vmatprep.mubr.msk.bf16.mxu0 %vm10554_vm0, %v12697_v1  ;;  %v1854_v39 = vpack.c.bf16 %v1838_v62, %v1837_v3  ;;  %v1839_v62 = vld [vmem:[#allocation3 + $0x10] sm:$0xff]  ;;  %v1841_v3 = vld [vmem:[#allocation3 + $0x20] sm:$0xff] }
 0x234   : > { %v1745_v29 = vmax.f32 %v1741_v16, %v1743_v60  ;;  %v2218_v60 = vsel %vm1920_vm2, %v7585_v0, 0 }
 0x236   : > { %v11095_v21 = vadd.f32 %v11063_v28, %v1745_v29 }
 0x237   : > { %v1736_v2 = vld [vmem:[#allocation2 + $0x25c] ss:$2 sm:$0x3f]  ;;  %v1740_v48 = vld [vmem:[#allocation2 + $0x25d] ss:$2 sm:$0x3f] }
 0x238   : > { %v1744_v51 = vmax.f32 %v1736_v2, %v1740_v48  ;;  %v1262_v7 = vpop.f32.mrb[156].mxu0  ;;  %v12692_v11 = vmax.f32 %v11095_v21, 0.0  ;;  %v1855_v48 = vpack.c.bf16 %v1840_v63, %v1839_v62 }
 0x239   : > { %1419 = vst [vmem:[#allocation2 + $0x270] sm:$0xff] %v1262_v7  ;;  %v8397_v19 = vpop.f32.mrb[157].mxu0 }
 0x23a   : > { %v1746_v16 = vmax.f32 %v1742_v49, %v1744_v51  ;;  %v1265_v12 = vpop.f32.mrb[158].mxu0  ;;  %1751 = vst [vmem:[#allocation3 + $0x8c] sm:$0xff] %v12692_v11  ;;  %8476 = vmatmul.mubr.msk.bf16.vlgmr.msra.gmra.mrb[196].mxu0 %vm1892_vm3, %v1854_v39  ;;  %v7655_v51 = vld [vmem:[%s12683_s3 + $0x24] sm:$0xf] }
 0x23b   : > { %1420 = vst [vmem:[#allocation2 + $0x278] sm:$0xff] %v1265_v12  ;;  %v8398_v29 = vpop.f32.mrb[159].mxu0  ;;  %8479 = vmatprep.mubr.msk.bf16.mxu0 %vm10554_vm0, %v12697_v1  ;;  %8512 = vmatpush3.bf16.msra.mxu0 %v2218_v60  ;;  %v1842_v12 = vld [vmem:[#allocation3 + $0x28] sm:$0xff] }
 0x23c   : > { %v1748_v46 = vadd.f32 %v11063_v28, %v1746_v16  ;;  %8549 = vmatprep.subr.bf16.mxu0 %v12697_v1  ;;  %v1856_v29 = vpack.c.bf16 %v1842_v12, %v1841_v3 }
 0x23e   : > { %v1750_v19 = vmax.f32 %v1748_v46, 0.0 }
 0x23f   : > { %v1270_v0 = vpop.f32.mrb[160].mxu0 }
 0x240   : > { %1752 = vst [vmem:[#allocation3 + $0x94] sm:$0x3f] %v1750_v19  ;;  %1421 = vst [vmem:[#allocation2 + $0x280] sm:$0xff] %v1270_v0  ;;  %v8401_v2 = vpop.f32.mrb[161].mxu0  ;;  %v3471_v19 = vsel %vm1920_vm2, %v7655_v51, 0 }
 0x241   : > { %v1273_v49 = vpop.f32.mrb[162].mxu0  ;;  %v11113_v63 = vld [vmem:[#allocation3 + $0x88] sm:$0xff]  ;;  %v1758_v12 = vld [vmem:[#allocation2 + $0x269] ss:$2 sm:$0xff] }
 0x242   : > { %1422 = vst [vmem:[#allocation2 + $0x288] sm:$0xff] %v1273_v49  ;;  %v8402_v39 = vpop.f32.mrb[163].mxu0  ;;  %8480 = vmatmul.mubr.msk.bf16.gmra.mrb[200].mxu0 %vm1892_vm3, %v1855_v48  ;;  %v3416_v49 = vld [vmem:[#allocation3 + $0x1a] sm:$0xff] }
 0x243   : > { %8483 = vmatprep.mubr.msk.bf16.mxu0 %vm10554_vm0, %v12697_v1  ;;  %v1754_v39 = vld [vmem:[#allocation2 + $0x268] ss:$2 sm:$0xff] }
 0x244   : > { %v7665_v51 = vld [vmem:[%s12683_s3 + $0x28] sm:$0xf]  ;;  %v1769_v36 = vmax.f32 %v1754_v39, %v1758_v12  ;;  %v11144_v39 = vld [vmem:[#allocation3 + $0x22] sm:$0xff] }
 0x245   : > { %v3650_v11 = vsel %vm1920_vm2, %v7665_v51, 0 }
 0x247   : > { %v1278_v7 = vpop.f32.mrb[164].mxu0  ;;  %v3252_v60 = vld [vmem:[#allocation3 + $0x91] sm:$0xff] }
 0x248   : > { %1423 = vst [vmem:[#allocation2 + $0x290] sm:$0xff] %v1278_v7  ;;  %v8405_v16 = vpop.f32.mrb[165].mxu0  ;;  %v3261_v46 = vpack.c.bf16 %v3252_v60, %v3252_v60  ;;  %v11115_v0 = vld [vmem:[#allocation3 + $0x90] sm:$0xff] }
 0x249   : > { %v1281_v62 = vpop.f32.mrb[166].mxu0  ;;  %v1756_v7 = vld [vmem:[#allocation2 + $0x278] ss:$2 sm:$0x3f] }
 0x24a   : > { %1424 = vst [vmem:[#allocation2 + $0x298] sm:$0xff] %v1281_v62  ;;  %8484 = vmatmul.mubr.msk.bf16.gmra.mrb[204].mxu0 %vm1892_vm3, %v1856_v29  ;;  %8774 = vmatmul.mubr.msk.bf16.vlgmr.msra.gmra.mrb[0].mxu1 %vm1892_vm3, %v3261_v46  ;;  %v8406_v48 = vpop.f32.mrb[167].mxu0  ;;  %v1760_v3 = vld [vmem:[#allocation2 + $0x279] ss:$2 sm:$0x3f] }
 0x24b   : > { %8778 = vmatpush3.bf16.msra.mxu1 %v3471_v19  ;;  %8487 = vmatprep.mubr.msk.bf16.mxu0 %vm10554_vm0, %v12697_v1  ;;  %v1843_v60 = vld [vmem:[#allocation3 + $0x30] sm:$0xff]  ;;  %v1770_v47 = vmax.f32 %v1756_v7, %v1760_v3  ;;  %v1848_v3 = vld [vmem:[#allocation3 + $0x58] sm:$0xff] }
 0x24c   : > { %8779 = vmatprep.mubr.msk.bf16.mxu1 %vm10554_vm0, %v12697_v1  ;;  %8815 = vmatprep.subr.bf16.mxu1 %v12697_v1  ;;  %v3415_v16 = vld [vmem:[#allocation3 + $0x12] sm:$0xff]  ;;  %v1857_v62 = vpack.c.bf16 %v1581_v30, %v1843_v60  ;;  %v12715_v30 = vmov 0.0   ;;  %v3420_v60 = vld [vmem:[#allocation3 + $0x3a] sm:$0xff] }
 0x24d   : > { %v11131_v48 = vpack.c.bf16 %v3416_v49, %v3415_v16 }
 0x24f   : > { %v1286_v29 = vpop.f32.mrb[168].mxu0  ;;  %v1762_v46 = vld [vmem:[#allocation2 + $0x284] ss:$2 sm:$0xff]  ;;  %v1766_v19 = vld [vmem:[#allocation2 + $0x285] ss:$2 sm:$0xff] }
 0x250   : > { %1425 = vst [vmem:[#allocation2 + $0x2a0] sm:$0xff] %v1286_v29  ;;  %v8409_v2 = vpop.f32.mrb[169].mxu0  ;;  %v1771_v8 = vmax.f32 %v1762_v46, %v1766_v19  ;;  %v1847_v29 = vld [vmem:[#allocation3 + $0x50] sm:$0xff] }
 0x251   : > { %v1289_v14 = vpop.f32.mrb[170].mxu0  ;;  %v1764_v22 = vld [vmem:[#allocation2 + $0x294] ss:$2 sm:$0x3f]  ;;  %v3419_v46 = vld [vmem:[#allocation3 + $0x32] sm:$0xff]  ;;  %v11155_v19 = vpack.c.bf16 %v1848_v3, %v1847_v29  ;;  %v3424_v29 = vld [vmem:[#allocation3 + $0x5a] sm:$0xff] }
 0x252   : > { %v1768_v27 = vld [vmem:[#allocation2 + $0x295] ss:$2 sm:$0x3f]  ;;  %1426 = vst [vmem:[#allocation2 + $0x2a8] sm:$0xff] %v1289_v14  ;;  %v1773_v55 = vmax.f32 %v1769_v36, %v1771_v8  ;;  %8488 = vmatmul.mubr.msk.bf16.gmra.mrb[208].mxu0 %vm1892_vm3, %v1857_v62  ;;  %8780 = vmatmul.mubr.msk.bf16.vlgmr.msra.gmra.mrb[4].mxu1 %vm1892_vm3, %v11131_v48  ;;  %v8410_v23 = vpop.f32.mrb[171].mxu0  ;;  %v11157_v62 = vpack.c.bf16 %v3420_v60, %v3419_v46 }
 0x253   : > { %v1772_v1 = vmax.f32 %v1764_v22, %v1768_v27  ;;  %8816 = vmatpush3.bf16.msra.mxu1 %v3650_v11  ;;  %8491 = vmatprep.mubr.msk.bf16.mxu0 %vm10554_vm0, %v12715_v30  ;;  %v1846_v8 = vld [vmem:[#allocation3 + $0x48] sm:$0xff]  ;;  %v1845_v27 = vld [vmem:[#allocation3 + $0x40] sm:$0xff] }
 0x254   : > { %v1775_v2 = vadd.f32 %v11063_v28, %v1773_v55  ;;  %8783 = vmatprep.mubr.msk.bf16.mxu1 %vm10554_vm0, %v12715_v30  ;;  %8853 = vmatprep.subr.bf16.mxu1 %v12715_v30  ;;  %v1858_v51 = vpack.c.bf16 %v1846_v8, %v1845_v27 }
 0x255   : > { %v1774_v49 = vmax.f32 %v1770_v47, %v1772_v1  ;;  %v12716_v1 = vmax.f32 %v10888_v53, 0.0 }
 0x256   : > { %v1777_v36 = vmax.f32 %v1775_v2, 0.0 }
 0x257   : > { %v1776_v14 = vadd.f32 %v11063_v28, %v1774_v49  ;;  %v1294_v22 = vpop.f32.mrb[172].mxu0  ;;  %v3433_v55 = vpack.c.bf16 %v12716_v1, %v11144_v39 }
 0x258   : > { %1427 = vst [vmem:[#allocation2 + $0x2b0] sm:$0xff] %v1294_v22  ;;  %v8413_v11 = vpop.f32.mrb[173].mxu0  ;;  %1779 = vst [vmem:[#allocation3 + $0x9a] sm:$0xff] %v1777_v36  ;;  %v3422_v36 = vld [vmem:[#allocation3 + $0x4a] sm:$0xff] }
 0x259   : > { %v1778_v12 = vmax.f32 %v1776_v14, 0.0  ;;  %v1297_v47 = vpop.f32.mrb[174].mxu0  ;;  %v1782_v22 = vld [vmem:[#allocation2 + $0x2a0] ss:$2 sm:$0xff]  ;;  %v1786_v27 = vld [vmem:[#allocation2 + $0x2a1] ss:$2 sm:$0xff] }
 0x25a   : > { %1428 = vst [vmem:[#allocation2 + $0x2b8] sm:$0xff] %v1297_v47  ;;  %v8414_v7 = vpop.f32.mrb[175].mxu0  ;;  %8492 = vmatmul.mubr.msk.bf16.gmra.mrb[212].mxu0 %vm1892_vm3, %v1858_v51  ;;  %8784 = vmatmul.mubr.msk.bf16.gmra.mrb[8].mxu1 %vm1892_vm3, %v3433_v55  ;;  %v1850_v11 = vld [vmem:[#allocation3 + $0x68] sm:$0xff]  ;;  %v1797_v1 = vmax.f32 %v1782_v22, %v1786_v27 }
 0x25b   : > { %1780 = vst [vmem:[#allocation3 + $0xa2] sm:$0x3f] %v1778_v12  ;;  %8495 = vmatprep.mubr.msk.bf16.mxu0 %vm10554_vm0, %v12715_v30  ;;  %8787 = vmatprep.mubr.msk.bf16.mxu1 %vm10554_vm0, %v12715_v30  ;;  %v1849_v12 = vld [vmem:[#allocation3 + $0x60] sm:$0xff] }
 0x25c   : > { %v3421_v51 = vld [vmem:[#allocation3 + $0x42] sm:$0xff]  ;;  %v11173_v55 = vpack.c.bf16 %v1850_v11, %v1849_v12  ;;  %v3426_v11 = vld [vmem:[#allocation3 + $0x6a] sm:$0xff]  ;;  %v12718_v12 = vmax.f32 %v11014_v20, 0.0 }
 0x25d   : > { %v11175_v47 = vpack.c.bf16 %v3422_v36, %v3421_v51  ;;  %v12717_v36 = vmax.f32 %v11033_v18, 0.0 }
 0x25e   : > { %v3437_v51 = vpack.c.bf16 %v3426_v11, %v12718_v12  ;;  %v3431_v11 = vld [vmem:[#allocation3 + $0x92] sm:$0xff] }
 0x25f   : > { %v1302_v16 = vpop.f32.mrb[176].mxu0  ;;  %v11167_v49 = vld [vmem:[#allocation3 + $0x98] sm:$0xff]  ;;  %v3440_v12 = vpack.c.bf16 %v3431_v11, %v3431_v11  ;;  %v11297_v11 = vld [vmem:[#allocation3 + $0x84] sm:$0xff] }
 0x260   : > { %1429 = vst [vmem:[#allocation2 + $0x2c0] sm:$0xff] %v1302_v16  ;;  %v8417_v53 = vpop.f32.mrb[177].mxu0 }
 0x261   : > { %v1305_v23 = vpop.f32.mrb[178].mxu0  ;;  %v11185_v53 = vld [vmem:[#allocation3 + $0x78] sm:$0xff] }
 0x262   : > { %1430 = vst [vmem:[#allocation2 + $0x2c8] sm:$0xff] %v1305_v23  ;;  %8496 = vmatmul.mubr.msk.bf16.gmra.mrb[216].mxu0 %vm1892_vm3, %v11155_v19  ;;  %8788 = vmatmul.mubr.msk.bf16.gmra.mrb[12].mxu1 %vm1892_vm3, %v11157_v62  ;;  %v8418_v2 = vpop.f32.mrb[179].mxu0  ;;  %v11169_v8 = vld [vmem:[#allocation3 + $0xa0] sm:$0xff]  ;;  %v3423_v23 = vld [vmem:[#allocation3 + $0x52] sm:$0xff]  ;;  %v1861_v22 = vpack.c.bf16 %v11185_v53, %v12717_v36 }
 0x263   : > { %8499 = vmatprep.mubr.msk.bf16.mxu0 %vm10554_vm0, %v12715_v30  ;;  %8791 = vmatprep.mubr.msk.bf16.mxu1 %vm10554_vm0, %v12715_v30  ;;  %v11191_v27 = vpack.c.bf16 %v3424_v29, %v3423_v23  ;;  %v3430_v23 = vld [vmem:[#allocation3 + $0x8a] sm:$0xff] }
 0x269   : > { %v1790_v7 = vld [vmem:[#allocation2 + $0x2bc] ss:$2 sm:$0xff]  ;;  %v1794_v3 = vld [vmem:[#allocation2 + $0x2bd] ss:$2 sm:$0xff] }
 0x26a   : > { %v1799_v60 = vmax.f32 %v1790_v7, %v1794_v3  ;;  %8500 = vmatmul.mubr.msk.bf16.gmra.mrb[220].mxu0 %vm1892_vm3, %v11173_v55  ;;  %8792 = vmatmul.mubr.msk.bf16.gmra.mrb[16].mxu1 %vm1892_vm3, %v11175_v47  ;;  %v3428_v7 = vld [vmem:[#allocation3 + $0x7a] sm:$0xff] }
 0x26b   : > { %8503 = vmatprep.mubr.msk.bf16.mxu0 %vm10554_vm0, %v12715_v30  ;;  %8795 = vmatprep.mubr.msk.bf16.mxu1 %vm10554_vm0, %v12715_v30  ;;  %v7595_v3 = vld [vmem:[%s12683_s3 + $0xc] sm:$0xf] }
 0x26c   : > { %v1801_v16 = vmax.f32 %v1797_v1, %v1799_v60  ;;  %v2163_v1 = vld [vmem:[#allocation3 + $0xa] sm:$0xff]  ;;  %v2162_v60 = vld [vmem:[#allocation3 + $0x2] sm:$0xff] }
 0x26d   : > { %v2179_v20 = vpack.c.bf16 %v2163_v1, %v2162_v60  ;;  %v11243_v1 = vld [vmem:[#allocation3 + $0x1c] sm:$0xff]  ;;  %v10463_v60 = vld [vmem:[#allocation3 + $0x2c] sm:$0xff] }
 0x26e   : > { %v1803_v46 = vadd.f32 %v11063_v28, %v1801_v16  ;;  %v11200_v28 = vld [vmem:[#allocation3 + $0x80] sm:$0xff]  ;;  %v3427_v16 = vld [vmem:[#allocation3 + $0x72] sm:$0xff] }
 0x26f   : > { %v1862_v18 = vpack.c.bf16 %v11200_v28, %v11200_v28  ;;  %v3438_v29 = vpack.c.bf16 %v3428_v7, %v3427_v16  ;;  %v10462_v7 = vld [vmem:[#allocation3 + $0x24] sm:$0xff]  ;;  %v10464_v16 = vld [vmem:[#allocation3 + $0x34] sm:$0xff] }
 0x270   : > { %v1805_v2 = vmax.f32 %v1803_v46, 0.0  ;;  %v2397_v46 = vsel %vm1920_vm2, %v7595_v3, 0 }
 0x272   : > { %1807 = vst [vmem:[#allocation3 + $0xa8] sm:$0xff] %v1805_v2  ;;  %8504 = vmatmul.mubr.msk.bf16.gmra.mrb[224].mxu0 %vm1892_vm3, %v1861_v22  ;;  %8796 = vmatmul.mubr.msk.bf16.gmra.mrb[20].mxu1 %vm1892_vm3, %v11191_v27  ;;  %v3429_v2 = vld [vmem:[#allocation3 + $0x82] sm:$0xff]  ;;  %v11230_v22 = vld [vmem:[#allocation3 + $0x2a] sm:$0xff] }
 0x273   : > { %8507 = vmatprep.mubr.msk.bf16.mxu0 %vm10554_vm0, %v12715_v30  ;;  %8799 = vmatprep.mubr.msk.bf16.mxu1 %vm10554_vm0, %v12715_v30  ;;  %v3439_v36 = vpack.c.bf16 %v3430_v23, %v3429_v2 }
 0x27a   : > { %8508 = vmatmul.mubr.msk.bf16.gmra.mrb[228].mxu0 %vm1892_vm3, %v1862_v18  ;;  %8800 = vmatmul.mubr.msk.bf16.gmra.mrb[24].mxu1 %vm1892_vm3, %v3437_v51  ;;  %v2181_v18 = vpack.c.bf16 %v11230_v22, %v11144_v39  ;;  %v3611_v39 = vpack.c.bf16 %v10462_v7, %v11243_v1 }
 0x27b   : > { %8513 = vmatprep.mubr.msk.bf16.mxu0 %vm10554_vm0, %v12715_v30  ;;  %8803 = vmatprep.mubr.msk.bf16.mxu1 %vm10554_vm0, %v12715_v30 }
 0x282   : > { %8514 = vmatmul.mubr.msk.bf16.vlgmr.msra.gmra.mrb[196].mxu0 %vm1892_vm3, %v2179_v20  ;;  %8804 = vmatmul.mubr.msk.bf16.gmra.mrb[28].mxu1 %vm1892_vm3, %v3438_v29  ;;  %v3612_v20 = vpack.c.bf16 %v10464_v16, %v10463_v60  ;;  %v2343_v60 = vld [vmem:[#allocation3 + $0x13] sm:$0xff] }
 0x283   : > { %8517 = vmatprep.mubr.msk.bf16.mxu0 %vm10554_vm0, %v12715_v30  ;;  %8807 = vmatprep.mubr.msk.bf16.mxu1 %vm10554_vm0, %v12715_v30 }
 0x284   : > { %8550 = vmatpush3.bf16.msra.mxu0 %v2397_v46 }
 0x285   : > { %8587 = vmatprep.subr.bf16.mxu0 %v12715_v30 }
 0x28a   : > { %8518 = vmatmul.mubr.msk.bf16.gmra.mrb[200].mxu0 %vm1892_vm3, %v11131_v48  ;;  %8808 = vmatmul.mubr.msk.bf16.gmra.mrb[32].mxu1 %vm1892_vm3, %v3439_v36  ;;  %v7675_v48 = vld [vmem:[%s12683_s3 + $0x2c] sm:$0xf] }
 0x28b   : > { %8521 = vmatprep.mubr.msk.bf16.mxu0 %vm10554_vm0, %v12715_v30  ;;  %8811 = vmatprep.mubr.msk.bf16.mxu1 %vm10554_vm0, %v12715_v30  ;;  %v3829_v3 = vsel %vm1920_vm2, %v7675_v48, 0  ;;  %v3617_v48 = vpack.c.bf16 %v11297_v11, %v11070_v17 }
 0x292   : > { %8522 = vmatmul.mubr.msk.bf16.gmra.mrb[204].mxu0 %vm1892_vm3, %v2181_v18  ;;  %8812 = vmatmul.mubr.msk.bf16.gmra.mrb[0].mxu1 %vm1892_vm3, %v3440_v12  ;;  %v2341_v18 = vld [vmem:[#allocation3 + $0x3] sm:$0xff] }
 0x293   : > { %8525 = vmatprep.mubr.msk.bf16.mxu0 %vm10554_vm0, %v12715_v30  ;;  %8817 = vmatprep.mubr.msk.bf16.mxu1 %vm10554_vm0, %v12715_v30 }
 0x29a   : > { %8526 = vmatmul.mubr.msk.bf16.gmra.mrb[208].mxu0 %vm1892_vm3, %v11157_v62  ;;  %8818 = vmatmul.mubr.msk.bf16.vlgmr.msra.gmra.mrb[4].mxu1 %vm1892_vm3, %v3611_v39  ;;  %v10465_v62 = vld [vmem:[#allocation3 + $0x3c] sm:$0xff] }
 0x29b   : > { %8854 = vmatpush3.bf16.msra.mxu1 %v3829_v3  ;;  %8529 = vmatprep.mubr.msk.bf16.mxu0 %vm10554_vm0, %v12715_v30  ;;  %v3613_v46 = vpack.c.bf16 %v10953_v34, %v10465_v62  ;;  %v2344_v39 = vld [vmem:[#allocation3 + $0x1b] sm:$0xff] }
 0x29c   : > { %8821 = vmatprep.mubr.msk.bf16.mxu1 %vm10554_vm0, %v12715_v30  ;;  %8891 = vmatprep.subr.bf16.mxu1 %v12715_v30  ;;  %v3609_v3 = vld [vmem:[#allocation3 + $0x94] sm:$0xff]  ;;  %v2359_v16 = vpack.c.bf16 %v2344_v39, %v2343_v60  ;;  %v2350_v39 = vld [vmem:[#allocation3 + $0x4b] sm:$0xff]  ;;  %v2349_v60 = vld [vmem:[#allocation3 + $0x43] sm:$0xff] }
 0x2a2   : > { %8530 = vmatmul.mubr.msk.bf16.gmra.mrb[212].mxu0 %vm1892_vm3, %v11175_v47  ;;  %8822 = vmatmul.mubr.msk.bf16.gmra.mrb[8].mxu1 %vm1892_vm3, %v3612_v20  ;;  %v12719_v47 = vmax.f32 %v10981_v4, 0.0  ;;  %v2187_v4 = vpack.c.bf16 %v3429_v2, %v3429_v2  ;;  %v7605_v2 = vld [vmem:[%s12683_s3 + $0x10] sm:$0xf]  ;;  %v12720_v20 = vmax.f32 %v11095_v21, 0.0 }
 0x2a3   : > { %8533 = vmatprep.mubr.msk.bf16.mxu0 %vm10554_vm0, %v12715_v30  ;;  %8825 = vmatprep.mubr.msk.bf16.mxu1 %vm10554_vm0, %v12715_v30  ;;  %v2576_v7 = vsel %vm1920_vm2, %v7605_v2, 0  ;;  %v2348_v21 = vld [vmem:[#allocation3 + $0x3b] sm:$0xff]  ;;  %v2347_v2 = vld [vmem:[#allocation3 + $0x33] sm:$0xff] }
 0x2a4   : > { %v3614_v23 = vpack.c.bf16 %v12719_v47, %v10955_v35  ;;  %v3618_v62 = vpack.c.bf16 %v3609_v3, %v12720_v20  ;;  %v3610_v47 = vld [vmem:[#allocation3 + $0x9c] sm:$0xff]  ;;  %v2362_v20 = vpack.c.bf16 %v2350_v39, %v2349_v60  ;;  %v3782_v39 = vld [vmem:[#allocation3 + $0x65] sm:$0xff] }
 0x2a5   : > { %v3776_v3 = vld [vmem:[#allocation3 + $0x35] sm:$0xff]  ;;  %v3781_v60 = vld [vmem:[#allocation3 + $0x5d] sm:$0xff] }
 0x2aa   : > { %8534 = vmatmul.mubr.msk.bf16.gmra.mrb[216].mxu0 %vm1892_vm3, %v11191_v27  ;;  %8826 = vmatmul.mubr.msk.bf16.gmra.mrb[12].mxu1 %vm1892_vm3, %v3613_v46  ;;  %v11279_v27 = vld [vmem:[#allocation3 + $0x5c] sm:$0xff]  ;;  %v2346_v46 = vld [vmem:[#allocation3 + $0x2b] sm:$0xff] }
 0x2ab   : > { %8537 = vmatprep.mubr.msk.bf16.mxu0 %vm10554_vm0, %v12715_v30  ;;  %8829 = vmatprep.mubr.msk.bf16.mxu1 %vm10554_vm0, %v12715_v30  ;;  %v3615_v36 = vpack.c.bf16 %v11039_v9, %v11279_v27 }
 0x2b2   : > { %8538 = vmatmul.mubr.msk.bf16.gmra.mrb[220].mxu0 %vm1892_vm3, %v3437_v51  ;;  %8830 = vmatmul.mubr.msk.bf16.gmra.mrb[16].mxu1 %vm1892_vm3, %v3614_v23  ;;  %v3616_v51 = vpack.c.bf16 %v11068_v50, %v11041_v10  ;;  %v2345_v23 = vld [vmem:[#allocation3 + $0x23] sm:$0xff] }
 0x2b3   : > { %8541 = vmatprep.mubr.msk.bf16.mxu0 %vm10554_vm0, %v12715_v30  ;;  %8833 = vmatprep.mubr.msk.bf16.mxu1 %vm10554_vm0, %v12715_v30 }
 0x2ba   : > { %8542 = vmatmul.mubr.msk.bf16.gmra.mrb[224].mxu0 %vm1892_vm3, %v3438_v29  ;;  %8834 = vmatmul.mubr.msk.bf16.gmra.mrb[20].mxu1 %vm1892_vm3, %v3615_v36  ;;  %v2342_v29 = vld [vmem:[#allocation3 + $0xb] sm:$0xff]  ;;  %v2360_v36 = vpack.c.bf16 %v2346_v46, %v2345_v23  ;;  %v2352_v46 = vld [vmem:[#allocation3 + $0x5b] sm:$0xff]  ;;  %v2351_v23 = vld [vmem:[#allocation3 + $0x53] sm:$0xff] }
 0x2bb   : > { %8545 = vmatprep.mubr.msk.bf16.mxu0 %vm10554_vm0, %v12715_v30  ;;  %8837 = vmatprep.mubr.msk.bf16.mxu1 %vm10554_vm0, %v12715_v30  ;;  %v2358_v12 = vpack.c.bf16 %v2342_v29, %v2341_v18  ;;  %v7685_v29 = vld [vmem:[%s12683_s3 + $0x30] sm:$0xf] }
 0x2bc   : > { %v3773_v18 = vld [vmem:[#allocation3 + $0x1d] sm:$0xff] }
 0x2c2   : > { %8546 = vmatmul.mubr.msk.bf16.gmra.mrb[228].mxu0 %vm1892_vm3, %v2187_v4  ;;  %8838 = vmatmul.mubr.msk.bf16.gmra.mrb[24].mxu1 %vm1892_vm3, %v3616_v51  ;;  %v3619_v4 = vpack.c.bf16 %v3610_v47, %v3610_v47  ;;  %v3774_v51 = vld [vmem:[#allocation3 + $0x25] sm:$0xff] }
 0x2c3   : > { %8551 = vmatprep.mubr.msk.bf16.mxu0 %vm10554_vm0, %v12715_v30  ;;  %8841 = vmatprep.mubr.msk.bf16.mxu1 %vm10554_vm0, %v12715_v30  ;;  %v3778_v47 = vld [vmem:[#allocation3 + $0x45] sm:$0xff] }
 0x2ca   : > { %8552 = vmatmul.mubr.msk.bf16.vlgmr.msra.gmra.mrb[196].mxu0 %vm1892_vm3, %v2358_v12  ;;  %8842 = vmatmul.mubr.msk.bf16.gmra.mrb[28].mxu1 %vm1892_vm3, %v3617_v48  ;;  %v2361_v12 = vpack.c.bf16 %v2348_v21, %v2347_v2  ;;  %v3790_v48 = vpack.c.bf16 %v3774_v51, %v3773_v18  ;;  %v2354_v51 = vld [vmem:[#allocation3 + $0x6b] sm:$0xff]  ;;  %v2353_v2 = vld [vmem:[#allocation3 + $0x63] sm:$0xff] }
 0x2cb   : > { %8555 = vmatprep.mubr.msk.bf16.mxu0 %vm10554_vm0, %v12715_v30  ;;  %8845 = vmatprep.mubr.msk.bf16.mxu1 %vm10554_vm0, %v12715_v30  ;;  %v3779_v18 = vld [vmem:[#allocation3 + $0x4d] sm:$0xff] }
 0x2cc   : > { %8588 = vmatpush3.bf16.msra.mxu0 %v2576_v7  ;;  %v4008_v7 = vsel %vm1920_vm2, %v7685_v29, 0  ;;  %v3780_v29 = vld [vmem:[#allocation3 + $0x55] sm:$0xff] }
 0x2cd   : > { %8625 = vmatprep.subr.bf16.mxu0 %v12715_v30 }
 0x2d2   : > { %8556 = vmatmul.mubr.msk.bf16.gmra.mrb[200].mxu0 %vm1892_vm3, %v2359_v16  ;;  %8846 = vmatmul.mubr.msk.bf16.gmra.mrb[32].mxu1 %vm1892_vm3, %v3618_v62  ;;  %v3775_v16 = vld [vmem:[#allocation3 + $0x2d] sm:$0xff] }
 0x2d3   : > { %8559 = vmatprep.mubr.msk.bf16.mxu0 %vm10554_vm0, %v12715_v30  ;;  %8849 = vmatprep.mubr.msk.bf16.mxu1 %vm10554_vm0, %v12715_v30  ;;  %v3791_v62 = vpack.c.bf16 %v3776_v3, %v3775_v16  ;;  %v2355_v3 = vld [vmem:[#allocation3 + $0x73] sm:$0xff] }
 0x2da   : > { %8560 = vmatmul.mubr.msk.bf16.gmra.mrb[204].mxu0 %vm1892_vm3, %v2360_v36  ;;  %8850 = vmatmul.mubr.msk.bf16.gmra.mrb[0].mxu1 %vm1892_vm3, %v3619_v4  ;;  %v3777_v36 = vld [vmem:[#allocation3 + $0x3d] sm:$0xff]  ;;  %v2363_v4 = vpack.c.bf16 %v2352_v46, %v2351_v23  ;;  %v3784_v46 = vld [vmem:[#allocation3 + $0x75] sm:$0xff] }
 0x2db   : > { %8563 = vmatprep.mubr.msk.bf16.mxu0 %vm10554_vm0, %v12715_v30  ;;  %8855 = vmatprep.mubr.msk.bf16.mxu1 %vm10554_vm0, %v12715_v30  ;;  %v3792_v21 = vpack.c.bf16 %v3778_v47, %v3777_v36  ;;  %v3783_v47 = vld [vmem:[#allocation3 + $0x6d] sm:$0xff] }
 0x2dc   : > { %v3795_v36 = vpack.c.bf16 %v3784_v46, %v3783_v47  ;;  %v12721_v46 = vpack.c.bf16 %v10903_v6, %v10901_v5  ;;  %v7695_v47 = vld [vmem:[%s12683_s3 + $0x34] sm:$0xf]  ;;  %v12722_v6 = vpack.c.bf16 %v10932_v45, %v10930_v44  ;;  %v12723_v44 = vpack.c.bf16 %v10955_v35, %v10953_v34  ;;  %v3959_v34 = vld [vmem:[#allocation3 + $0x56] sm:$0xff]  ;;  %v3958_v35 = vld [vmem:[#allocation3 + $0x4e] sm:$0xff] }
 0x2dd   : > { %v4187_v5 = vsel %vm1920_vm2, %v7695_v47, 0  ;;  %v3957_v45 = vld [vmem:[#allocation3 + $0x46] sm:$0xff] }
 0x2e2   : > { %8564 = vmatmul.mubr.msk.bf16.gmra.mrb[208].mxu0 %vm1892_vm3, %v2361_v12  ;;  %8856 = vmatmul.mubr.msk.bf16.vlgmr.msra.gmra.mrb[4].mxu1 %vm1892_vm3, %v3790_v48  ;;  %v2364_v12 = vpack.c.bf16 %v2354_v51, %v2353_v2  ;;  %v3793_v48 = vpack.c.bf16 %v3780_v29, %v3779_v18  ;;  %v7615_v51 = vld [vmem:[%s12683_s3 + $0x14] sm:$0xf] }
 0x2e3   : > { %8892 = vmatpush3.bf16.msra.mxu1 %v4008_v7  ;;  %8567 = vmatprep.mubr.msk.bf16.mxu0 %vm10554_vm0, %v12715_v30  ;;  %v2356_v7 = vld [vmem:[#allocation3 + $0x7b] sm:$0xff]  ;;  %v2520_v29 = vld [vmem:[#allocation3 + $0x4] sm:$0xff] }
 0x2e4   : > { %8859 = vmatprep.mubr.msk.bf16.mxu1 %vm10554_vm0, %v12715_v30  ;;  %8929 = vmatprep.subr.bf16.mxu1 %v12715_v30  ;;  %v2365_v16 = vpack.c.bf16 %v2356_v7, %v2355_v3  ;;  %v3785_v2 = vld [vmem:[#allocation3 + $0x7d] sm:$0xff]  ;;  %v3788_v7 = vld [vmem:[#allocation3 + $0x95] sm:$0xff]  ;;  %v3787_v3 = vld [vmem:[#allocation3 + $0x8d] sm:$0xff] }
 0x2ea   : > { %8568 = vmatmul.mubr.msk.bf16.gmra.mrb[212].mxu0 %vm1892_vm3, %v2362_v20  ;;  %8860 = vmatmul.mubr.msk.bf16.gmra.mrb[8].mxu1 %vm1892_vm3, %v3791_v62  ;;  %v3794_v20 = vpack.c.bf16 %v3782_v39, %v3781_v60  ;;  %v2357_v62 = vld [vmem:[#allocation3 + $0x83] sm:$0xff]  ;;  %v2522_v39 = vld [vmem:[#allocation3 + $0x14] sm:$0xff] }
 0x2eb   : > { %8571 = vmatprep.mubr.msk.bf16.mxu0 %vm10554_vm0, %v12715_v30  ;;  %8863 = vmatprep.mubr.msk.bf16.mxu1 %vm10554_vm0, %v12715_v30  ;;  %v2366_v23 = vpack.c.bf16 %v2357_v62, %v2357_v62  ;;  %v2538_v60 = vpack.c.bf16 %v11243_v1, %v2522_v39  ;;  %v3953_v1 = vld [vmem:[#allocation3 + $0x26] sm:$0xff]  ;;  %v3960_v39 = vld [vmem:[#allocation3 + $0x5e] sm:$0xff] }
 0x2f2   : > { %8572 = vmatmul.mubr.msk.bf16.gmra.mrb[216].mxu0 %vm1892_vm3, %v2363_v4  ;;  %8864 = vmatmul.mubr.msk.bf16.gmra.mrb[12].mxu1 %vm1892_vm3, %v3792_v21  ;;  %v2521_v4 = vld [vmem:[#allocation3 + $0xc] sm:$0xff] }
 0x2f3   : > { %8575 = vmatprep.mubr.msk.bf16.mxu0 %vm10554_vm0, %v12715_v30  ;;  %8867 = vmatprep.mubr.msk.bf16.mxu1 %vm10554_vm0, %v12715_v30  ;;  %v3786_v21 = vld [vmem:[#allocation3 + $0x85] sm:$0xff]  ;;  %v2537_v18 = vpack.c.bf16 %v2521_v4, %v2520_v29  ;;  %v3955_v4 = vld [vmem:[#allocation3 + $0x36] sm:$0xff] }
 0x2f4   : > { %v11420_v29 = vld [vmem:[#allocation3 + $0x54] sm:$0xff] }
 0x2fa   : > { %8576 = vmatmul.mubr.msk.bf16.gmra.mrb[220].mxu0 %vm1892_vm3, %v2364_v12  ;;  %8868 = vmatmul.mubr.msk.bf16.gmra.mrb[16].mxu1 %vm1892_vm3, %v3793_v48  ;;  %v3796_v12 = vpack.c.bf16 %v3786_v21, %v3785_v2  ;;  %v2755_v48 = vsel %vm1920_vm2, %v7615_v51, 0  ;;  %v3954_v21 = vld [vmem:[#allocation3 + $0x2e] sm:$0xff]  ;;  %v3956_v2 = vld [vmem:[#allocation3 + $0x3e] sm:$0xff] }
 0x2fb   : > { %8579 = vmatprep.mubr.msk.bf16.mxu0 %vm10554_vm0, %v12715_v30  ;;  %8871 = vmatprep.mubr.msk.bf16.mxu1 %vm10554_vm0, %v12715_v30  ;;  %v3970_v51 = vpack.c.bf16 %v3955_v4, %v3954_v21  ;;  %v3968_v21 = vld [vmem:[#allocation3 + $0x9e] sm:$0xff] }
 0x302   : > { %8580 = vmatmul.mubr.msk.bf16.gmra.mrb[224].mxu0 %vm1892_vm3, %v2365_v16  ;;  %8872 = vmatmul.mubr.msk.bf16.gmra.mrb[20].mxu1 %vm1892_vm3, %v3794_v20  ;;  %v3797_v16 = vpack.c.bf16 %v3788_v7, %v3787_v3  ;;  %v3789_v20 = vld [vmem:[#allocation3 + $0x9d] sm:$0xff]  ;;  %v12724_v7 = vpack.c.bf16 %v11041_v10, %v11039_v9  ;;  %v3962_v10 = vld [vmem:[#allocation3 + $0x6e] sm:$0xff] }
 0x303   : > { %8583 = vmatprep.mubr.msk.bf16.mxu0 %vm10554_vm0, %v12715_v30  ;;  %8875 = vmatprep.mubr.msk.bf16.mxu1 %vm10554_vm0, %v12715_v30  ;;  %v3798_v62 = vpack.c.bf16 %v3789_v20, %v3789_v20  ;;  %v3963_v9 = vld [vmem:[#allocation3 + $0x76] sm:$0xff] }
 0x304   : > { %v11453_v20 = vpack.c.bf16 %v3963_v9, %v3962_v10  ;;  %v1788_v9 = vld [vmem:[#allocation2 + $0x2b1] ss:$2 sm:$0x3f] }
 0x305   : > { %v4135_v10 = vld [vmem:[#allocation3 + $0x3f] sm:$0xff] }
 0x30a   : > { %8584 = vmatmul.mubr.msk.bf16.gmra.mrb[228].mxu0 %vm1892_vm3, %v2366_v23  ;;  %8876 = vmatmul.mubr.msk.bf16.gmra.mrb[24].mxu1 %vm1892_vm3, %v3795_v36  ;;  %v3952_v23 = vld [vmem:[#allocation3 + $0x1e] sm:$0xff] }
 0x30b   : > { %8589 = vmatprep.mubr.msk.bf16.mxu0 %vm10554_vm0, %v12715_v30  ;;  %8879 = vmatprep.mubr.msk.bf16.mxu1 %vm10554_vm0, %v12715_v30  ;;  %v11397_v36 = vpack.c.bf16 %v3953_v1, %v3952_v23 }
 0x312   : > { %8590 = vmatmul.mubr.msk.bf16.vlgmr.msra.gmra.mrb[196].mxu0 %vm1892_vm3, %v2537_v18  ;;  %8880 = vmatmul.mubr.msk.bf16.gmra.mrb[28].mxu1 %vm1892_vm3, %v3796_v12  ;;  %v2542_v18 = vpack.c.bf16 %v11279_v27, %v11420_v29  ;;  %v3971_v12 = vpack.c.bf16 %v3957_v45, %v3956_v2  ;;  %v3961_v27 = vld [vmem:[#allocation3 + $0x66] sm:$0xff] }
 0x313   : > { %8593 = vmatprep.mubr.msk.bf16.mxu0 %vm10554_vm0, %v12715_v30  ;;  %8883 = vmatprep.mubr.msk.bf16.mxu1 %vm10554_vm0, %v12715_v30  ;;  %v11439_v3 = vpack.c.bf16 %v3961_v27, %v3960_v39  ;;  %v7705_v45 = vld [vmem:[%s12683_s3 + $0x38] sm:$0xf]  ;;  %v4131_v2 = vld [vmem:[#allocation3 + $0x1f] sm:$0xff] }
 0x314   : > { %8626 = vmatpush3.bf16.msra.mxu0 %v2755_v48  ;;  %v3972_v48 = vpack.c.bf16 %v3959_v34, %v3958_v35  ;;  %v4366_v34 = vsel %vm1920_vm2, %v7705_v45, 0  ;;  %v4133_v35 = vld [vmem:[#allocation3 + $0x2f] sm:$0xff]  ;;  %v4136_v39 = vld [vmem:[#allocation3 + $0x47] sm:$0xff] }
 0x315   : > { %8663 = vmatprep.subr.bf16.mxu0 %v12715_v30 }
 0x31a   : > { %8594 = vmatmul.mubr.msk.bf16.gmra.mrb[200].mxu0 %vm1892_vm3, %v2538_v60  ;;  %8884 = vmatmul.mubr.msk.bf16.gmra.mrb[32].mxu1 %vm1892_vm3, %v3797_v16  ;;  %v12725_v60 = vpack.c.bf16 %v11070_v17, %v11068_v50  ;;  %v2545_v16 = vpack.c.bf16 %v11297_v11, %v11297_v11  ;;  %v2700_v50 = vld [vmem:[#allocation3 + $0x16] sm:$0xff]  ;;  %v3965_v17 = vld [vmem:[#allocation3 + $0x86] sm:$0xff]  ;;  %v2699_v11 = vld [vmem:[#allocation3 + $0xe] sm:$0xff] }
 0x31b   : > { %8597 = vmatprep.mubr.msk.bf16.mxu0 %vm10554_vm0, %v12715_v30  ;;  %8887 = vmatprep.mubr.msk.bf16.mxu1 %vm10554_vm0, %v12715_v30  ;;  %v2716_v1 = vpack.c.bf16 %v2700_v50, %v2699_v11 }
 0x322   : > { %8598 = vmatmul.mubr.msk.bf16.gmra.mrb[204].mxu0 %vm1892_vm3, %v12721_v46  ;;  %8888 = vmatmul.mubr.msk.bf16.gmra.mrb[0].mxu1 %vm1892_vm3, %v3798_v62  ;;  %v7625_v62 = vld [vmem:[%s12683_s3 + $0x18] sm:$0xf]  ;;  %v3964_v46 = vld [vmem:[#allocation3 + $0x7e] sm:$0xff] }
 0x323   : > { %8601 = vmatprep.mubr.msk.bf16.mxu0 %vm10554_vm0, %v12715_v30  ;;  %8893 = vmatprep.mubr.msk.bf16.mxu1 %vm10554_vm0, %v12715_v30  ;;  %v11465_v47 = vpack.c.bf16 %v3965_v17, %v3964_v46  ;;  %v2934_v23 = vsel %vm1920_vm2, %v7625_v62, 0 }
 0x32a   : > { %8602 = vmatmul.mubr.msk.bf16.gmra.mrb[208].mxu0 %vm1892_vm3, %v12722_v6  ;;  %8894 = vmatmul.mubr.msk.bf16.vlgmr.msra.gmra.mrb[4].mxu1 %vm1892_vm3, %v11397_v36  ;;  %v11476_v6 = vld [vmem:[#allocation3 + $0x8e] sm:$0xff] }
 0x32b   : > { %8930 = vmatpush3.bf16.msra.mxu1 %v4187_v5  ;;  %8605 = vmatprep.mubr.msk.bf16.mxu0 %vm10554_vm0, %v12715_v30  ;;  %v3967_v5 = vld [vmem:[#allocation3 + $0x96] sm:$0xff] }
 0x32c   : > { %8897 = vmatprep.mubr.msk.bf16.mxu1 %vm10554_vm0, %v12715_v30  ;;  %8967 = vmatprep.subr.bf16.mxu1 %v12715_v30  ;;  %v3976_v4 = vpack.c.bf16 %v3967_v5, %v11476_v6 }
 0x332   : > { %8606 = vmatmul.mubr.msk.bf16.gmra.mrb[212].mxu0 %vm1892_vm3, %v12723_v44  ;;  %8898 = vmatmul.mubr.msk.bf16.gmra.mrb[8].mxu1 %vm1892_vm3, %v3970_v51  ;;  %v3977_v44 = vpack.c.bf16 %v3968_v21, %v3968_v21  ;;  %v11528_v21 = vld [vmem:[%s12682_s2] ss:$0 sm:$0xff] }
 0x333   : > { %8609 = vmatprep.mubr.msk.bf16.mxu0 %vm10554_vm0, %v12715_v30  ;;  %8901 = vmatprep.mubr.msk.bf16.mxu1 %vm10554_vm0, %v12715_v30 }
 0x33a   : > { %8610 = vmatmul.mubr.msk.bf16.gmra.mrb[216].mxu0 %vm1892_vm3, %v2542_v18  ;;  %8902 = vmatmul.mubr.msk.bf16.gmra.mrb[12].mxu1 %vm1892_vm3, %v3971_v12 }
 0x33b   : > { %8613 = vmatprep.mubr.msk.bf16.mxu0 %vm10554_vm0, %v12715_v30  ;;  %8905 = vmatprep.mubr.msk.bf16.mxu1 %vm10554_vm0, %v12715_v30 }
 0x342   : > { %8614 = vmatmul.mubr.msk.bf16.gmra.mrb[220].mxu0 %vm1892_vm3, %v12724_v7  ;;  %8906 = vmatmul.mubr.msk.bf16.gmra.mrb[16].mxu1 %vm1892_vm3, %v3972_v48 }
 0x343   : > { %8617 = vmatprep.mubr.msk.bf16.mxu0 %vm10554_vm0, %v12715_v30  ;;  %8909 = vmatprep.mubr.msk.bf16.mxu1 %vm10554_vm0, %v12715_v30 }
 0x34a   : > { %8618 = vmatmul.mubr.msk.bf16.gmra.mrb[224].mxu0 %vm1892_vm3, %v12725_v60  ;;  %8910 = vmatmul.mubr.msk.bf16.gmra.mrb[20].mxu1 %vm1892_vm3, %v11439_v3  ;;  %v1784_v60 = vld [vmem:[#allocation2 + $0x2b0] ss:$2 sm:$0x3f] }
 0x34b   : > { %8621 = vmatprep.mubr.msk.bf16.mxu0 %vm10554_vm0, %v12715_v30  ;;  %8913 = vmatprep.mubr.msk.bf16.mxu1 %vm10554_vm0, %v12715_v30  ;;  %v1798_v50 = vmax.f32 %v1784_v60, %v1788_v9 }
 0x352   : > { %8622 = vmatmul.mubr.msk.bf16.gmra.mrb[228].mxu0 %vm1892_vm3, %v2545_v16  ;;  %8914 = vmatmul.mubr.msk.bf16.gmra.mrb[24].mxu1 %vm1892_vm3, %v11453_v20  ;;  %v11515_v16 = vpack.c.bf16 %v4136_v39, %v4135_v10  ;;  %v4140_v39 = vld [vmem:[#allocation3 + $0x67] sm:$0xff] }
 0x353   : > { %8627 = vmatprep.mubr.msk.bf16.mxu0 %vm10554_vm0, %v12715_v30  ;;  %8917 = vmatprep.mubr.msk.bf16.mxu1 %vm10554_vm0, %v12715_v30 }
 0x35a   : > { %8628 = vmatmul.mubr.msk.bf16.vlgmr.msra.gmra.mrb[196].mxu0 %vm1892_vm3, %v2716_v1  ;;  %8918 = vmatmul.mubr.msk.bf16.gmra.mrb[28].mxu1 %vm1892_vm3, %v11465_v47  ;;  %v4138_v1 = vld [vmem:[#allocation3 + $0x57] sm:$0xff] }
 0x35b   : > { %8631 = vmatprep.mubr.msk.bf16.mxu0 %vm10554_vm0, %v12715_v30  ;;  %8921 = vmatprep.mubr.msk.bf16.mxu1 %vm10554_vm0, %v12715_v30 }
 0x35c   : > { %8664 = vmatpush3.bf16.msra.mxu0 %v2934_v23 }
 0x35d   : > { %8701 = vmatprep.subr.bf16.mxu0 %v12715_v30 }
 0x362   : > { %8632 = vmatmul.mubr.msk.bf16.gmra.mrb[200].mxu0 %vm1892_vm3, %v11397_v36  ;;  %8922 = vmatmul.mubr.msk.bf16.gmra.mrb[32].mxu1 %vm1892_vm3, %v3976_v4  ;;  %v4132_v36 = vld [vmem:[#allocation3 + $0x27] sm:$0xff]  ;;  %v4137_v4 = vld [vmem:[#allocation3 + $0x4f] sm:$0xff] }
 0x363   : > { %8635 = vmatprep.mubr.msk.bf16.mxu0 %vm10554_vm0, %v12715_v30  ;;  %8925 = vmatprep.mubr.msk.bf16.mxu1 %vm10554_vm0, %v12715_v30  ;;  %v11495_v18 = vpack.c.bf16 %v4132_v36, %v4131_v2  ;;  %v11531_v45 = vpack.c.bf16 %v4138_v1, %v4137_v4 }
 0x36a   : > { %8636 = vmatmul.mubr.msk.bf16.gmra.mrb[204].mxu0 %vm1892_vm3, %v3970_v51  ;;  %8926 = vmatmul.mubr.msk.bf16.gmra.mrb[0].mxu1 %vm1892_vm3, %v3977_v44  ;;  %v4134_v51 = vld [vmem:[#allocation3 + $0x37] sm:$0xff] }
 0x36b   : > { %8639 = vmatprep.mubr.msk.bf16.mxu0 %vm10554_vm0, %v12715_v30  ;;  %8931 = vmatprep.mubr.msk.bf16.mxu1 %vm10554_vm0, %v12715_v30  ;;  %v11506_v7 = vpack.c.bf16 %v4134_v51, %v4133_v35 }
 0x372   : > { %8640 = vmatmul.mubr.msk.bf16.gmra.mrb[208].mxu0 %vm1892_vm3, %v3971_v12  ;;  %8932 = vmatmul.mubr.msk.bf16.vlgmr.msra.gmra.mrb[4].mxu1 %vm1892_vm3, %v11495_v18  ;;  %v1310_v12 = vpop.f32.mrb[180].mxu0 }
 0x373   : > { %8968 = vmatpush3.bf16.msra.mxu1 %v4366_v34  ;;  %8643 = vmatprep.mubr.msk.bf16.mxu0 %vm10554_vm0, %v12715_v30  ;;  %1431 = vst [vmem:[#allocation2 + $0x2d0] sm:$0xff] %v1310_v12  ;;  %v8421_v27 = vpop.f32.mrb[181].mxu0 }
 0x374   : > { %8935 = vmatprep.mubr.msk.bf16.mxu1 %vm10554_vm0, %v12715_v30  ;;  %9005 = vmatprep.subr.bf16.mxu1 %v12715_v30  ;;  %v1313_v11 = vpop.f32.mrb[182].mxu0 }
 0x375   : > { %1432 = vst [vmem:[#allocation2 + $0x2d8] sm:$0xff] %v1313_v11  ;;  %v8422_v46 = vpop.f32.mrb[183].mxu0 }
 0x376   : > { %v1318_v5 = vpop.f32.mrb[184].mxu0 }
 0x377   : > { %1433 = vst [vmem:[#allocation2 + $0x2e0] sm:$0xff] %v1318_v5  ;;  %v2724_v5 = vpack.c.bf16 %v11476_v6, %v11476_v6  ;;  %v7635_v6 = vld [vmem:[%s12683_s3 + $0x1c] sm:$0xf] }
 0x37a   : > { %8644 = vmatmul.mubr.msk.bf16.gmra.mrb[212].mxu0 %vm1892_vm3, %v3972_v48  ;;  %8936 = vmatmul.mubr.msk.bf16.gmra.mrb[8].mxu1 %vm1892_vm3, %v11506_v7  ;;  %v1792_v48 = vld [vmem:[#allocation2 + $0x2cc] ss:$2 sm:$0x3f]  ;;  %v1796_v17 = vld [vmem:[#allocation2 + $0x2cd] ss:$2 sm:$0x3f] }
 0x37b   : > { %8647 = vmatprep.mubr.msk.bf16.mxu0 %vm10554_vm0, %v12715_v30  ;;  %8939 = vmatprep.mubr.msk.bf16.mxu1 %vm10554_vm0, %v12715_v30  ;;  %v1800_v62 = vmax.f32 %v1792_v48, %v1796_v17 }
 0x37d   : > { %v1802_v23 = vmax.f32 %v1798_v50, %v1800_v62  ;;  %v4142_v62 = vld [vmem:[#allocation3 + $0x77] sm:$0xff] }
 0x37e   : > { %v1810_v50 = vld [vmem:[#allocation2 + $0x2d8] ss:$2 sm:$0xff]  ;;  %v1814_v48 = vld [vmem:[#allocation2 + $0x2d9] ss:$2 sm:$0xff] }
 0x37f   : > { %v1804_v44 = vadd.f32 %v11528_v21, %v1802_v23  ;;  %v1825_v17 = vmax.f32 %v1810_v50, %v1814_v48  ;;  %v4141_v23 = vld [vmem:[#allocation3 + $0x6f] sm:$0xff] }
 0x380   : > { %v4145_v48 = vld [vmem:[#allocation3 + $0x8f] sm:$0xff] }
 0x381   : > { %v1806_v34 = vmax.f32 %v1804_v44, 0.0 }
 0x382   : > { %8648 = vmatmul.mubr.msk.bf16.gmra.mrb[216].mxu0 %vm1892_vm3, %v11439_v3  ;;  %8940 = vmatmul.mubr.msk.bf16.gmra.mrb[12].mxu1 %vm1892_vm3, %v11515_v16  ;;  %v8425_v3 = vpop.f32.mrb[185].mxu0 }
 0x383   : > { %8651 = vmatprep.mubr.msk.bf16.mxu0 %vm10554_vm0, %v12715_v30  ;;  %8943 = vmatprep.mubr.msk.bf16.mxu1 %vm10554_vm0, %v12715_v30  ;;  %v1321_v36 = vpop.f32.mrb[186].mxu0  ;;  %1808 = vst [vmem:[#allocation3 + $0xb0] sm:$0x3f] %v1806_v34  ;;  %v11553_v3 = vpack.c.bf16 %v4142_v62, %v4141_v23  ;;  %v2878_v34 = vld [vmem:[#allocation3 + $0xf] sm:$0xff]  ;;  %v4147_v23 = vld [vmem:[#allocation3 + $0x9f] sm:$0xff] }
 0x384   : > { %1434 = vst [vmem:[#allocation2 + $0x2e8] sm:$0xff] %v1321_v36  ;;  %v8426_v2 = vpop.f32.mrb[187].mxu0  ;;  %v2879_v36 = vld [vmem:[#allocation3 + $0x17] sm:$0xff] }
 0x385   : > { %v1326_v51 = vpop.f32.mrb[188].mxu0  ;;  %v4144_v2 = vld [vmem:[#allocation3 + $0x87] sm:$0xff] }
 0x386   : > { %1435 = vst [vmem:[#allocation2 + $0x2f0] sm:$0xff] %v1326_v51  ;;  %v8429_v35 = vpop.f32.mrb[189].mxu0  ;;  %v4143_v51 = vld [vmem:[#allocation3 + $0x7f] sm:$0xff] }
 0x387   : > { %v1329_v12 = vpop.f32.mrb[190].mxu0  ;;  %v2895_v35 = vpack.c.bf16 %v2879_v36, %v2878_v34  ;;  %v7715_v36 = vld [vmem:[%s12683_s3 + $0x3c] sm:$0xf]  ;;  %v10467_v34 = vld [vmem:[#allocation3 + $0x38] sm:$0xff] }
 0x388   : > { %1436 = vst [vmem:[#allocation2 + $0x2f8] sm:$0xff] %v1329_v12  ;;  %v8430_v27 = vpop.f32.mrb[191].mxu0  ;;  %v11566_v12 = vpack.c.bf16 %v4144_v2, %v4143_v51 }
 0x389   : > { %v1334_v60 = vpop.f32.mrb[192].mxu0  ;;  %v3113_v27 = vsel %vm1920_vm2, %v7635_v6, 0  ;;  %v4545_v6 = vsel %vm1920_vm2, %v7715_v36, 0  ;;  %v4496_v36 = vld [vmem:[#allocation3 + $0x62] sm:$0xff] }
 0x38a   : > { %8652 = vmatmul.mubr.msk.bf16.gmra.mrb[220].mxu0 %vm1892_vm3, %v11453_v20  ;;  %8944 = vmatmul.mubr.msk.bf16.gmra.mrb[16].mxu1 %vm1892_vm3, %v11531_v45  ;;  %1437 = vst [vmem:[#allocation2 + $0x300] sm:$0xff] %v1334_v60  ;;  %v8433_v9 = vpop.f32.mrb[193].mxu0  ;;  %v4139_v20 = vld [vmem:[#allocation3 + $0x5f] sm:$0xff] }
 0x38b   : > { %8655 = vmatprep.mubr.msk.bf16.mxu0 %vm10554_vm0, %v12715_v30  ;;  %8947 = vmatprep.mubr.msk.bf16.mxu1 %vm10554_vm0, %v12715_v30  ;;  %v11541_v10 = vpack.c.bf16 %v4140_v39, %v4139_v20  ;;  %v1337_v39 = vpop.f32.mrb[194].mxu0  ;;  %v4146_v9 = vld [vmem:[#allocation3 + $0x97] sm:$0xff] }
 0x38c   : > { %1438 = vst [vmem:[#allocation2 + $0x308] sm:$0xff] %v1337_v39  ;;  %v8434_v60 = vpop.f32.mrb[195].mxu0  ;;  %v11644_v39 = vld [vmem:[#allocation3 + $0x88] sm:$0xff] }
 0x38d   : > { %v1812_v20 = vld [vmem:[#allocation2 + $0x2e8] ss:$2 sm:$0x3f]  ;;  %v1816_v50 = vld [vmem:[#allocation2 + $0x2e9] ss:$2 sm:$0x3f]  ;;  %v4333_v60 = vpack.c.bf16 %v11644_v39, %v11200_v28  ;;  %v4335_v28 = vpack.c.bf16 %v11169_v8, %v11169_v8 }
 0x38e   : > { %v1826_v62 = vmax.f32 %v1812_v20, %v1816_v50  ;;  %v7725_v20 = vld [vmem:[%s12683_s3 + $0x40] sm:$0xf] }
 0x391   : > { %v1818_v11 = vld [vmem:[#allocation2 + $0x2f4] ss:$2 sm:$0xff]  ;;  %v1822_v46 = vld [vmem:[#allocation2 + $0x2f5] ss:$2 sm:$0xff] }
 0x392   : > { %8656 = vmatmul.mubr.msk.bf16.gmra.mrb[224].mxu0 %vm1892_vm3, %v11465_v47  ;;  %8948 = vmatmul.mubr.msk.bf16.gmra.mrb[20].mxu1 %vm1892_vm3, %v11541_v10  ;;  %v1827_v1 = vmax.f32 %v1818_v11, %v1822_v46 }
 0x393   : > { %8659 = vmatprep.mubr.msk.bf16.mxu0 %vm10554_vm0, %v12715_v30  ;;  %8951 = vmatprep.mubr.msk.bf16.mxu1 %vm10554_vm0, %v12715_v30  ;;  %v1820_v11 = vld [vmem:[#allocation2 + $0x304] ss:$2 sm:$0x3f]  ;;  %v1824_v46 = vld [vmem:[#allocation2 + $0x305] ss:$2 sm:$0x3f] }
 0x394   : > { %v1829_v47 = vmax.f32 %v1825_v17, %v1827_v1  ;;  %v4155_v17 = vpack.c.bf16 %v4146_v9, %v4145_v48  ;;  %v1828_v1 = vmax.f32 %v1820_v11, %v1824_v46  ;;  %v10473_v11 = vld [vmem:[#allocation3 + $0x50] sm:$0xff]  ;;  %v10474_v46 = vld [vmem:[#allocation3 + $0x58] sm:$0xff] }
 0x396   : > { %v1831_v4 = vadd.f32 %v11528_v21, %v1829_v47 }
 0x398   : > { %v1833_v44 = vmax.f32 %v1831_v4, 0.0  ;;  %v4156_v4 = vpack.c.bf16 %v4147_v23, %v4147_v23  ;;  %v4494_v23 = vld [vmem:[#allocation3 + $0x52] sm:$0xff] }
 0x39a   : > { %8660 = vmatmul.mubr.msk.bf16.gmra.mrb[228].mxu0 %vm1892_vm3, %v2724_v5  ;;  %8952 = vmatmul.mubr.msk.bf16.gmra.mrb[24].mxu1 %vm1892_vm3, %v11553_v3  ;;  %1835 = vst [vmem:[#allocation3 + $0xb6] sm:$0xff] %v1833_v44  ;;  %v1830_v5 = vmax.f32 %v1826_v62, %v1828_v1  ;;  %v4491_v62 = vld [vmem:[#allocation3 + $0x3a] sm:$0xff] }
 0x39b   : > { %8665 = vmatprep.mubr.msk.bf16.mxu0 %vm10554_vm0, %v12715_v30  ;;  %8955 = vmatprep.mubr.msk.bf16.mxu1 %vm10554_vm0, %v12715_v30 }
 0x39c   : > { %v1832_v47 = vadd.f32 %v11528_v21, %v1830_v5  ;;  %v4310_v21 = vld [vmem:[#allocation3 + $0x20] sm:$0xff]  ;;  %v4493_v5 = vld [vmem:[#allocation3 + $0x4a] sm:$0xff] }
 0x39e   : > { %v1834_v44 = vmax.f32 %v1832_v47, 0.0  ;;  %v10475_v47 = vld [vmem:[#allocation3 + $0x60] sm:$0xff] }
 0x3a0   : > { %1836 = vst [vmem:[#allocation3 + $0xbe] sm:$0x3f] %v1834_v44 }
 0x3a2   : > { %8666 = vmatmul.mubr.msk.bf16.vlgmr.msra.gmra.mrb[196].mxu0 %vm1892_vm3, %v2895_v35  ;;  %8956 = vmatmul.mubr.msk.bf16.gmra.mrb[28].mxu1 %vm1892_vm3, %v11566_v12  ;;  %v10469_v35 = vld [vmem:[#allocation3 + $0x48] sm:$0xff] }
 0x3a3   : > { %8669 = vmatprep.mubr.msk.bf16.mxu0 %vm10554_vm0, %v12715_v30  ;;  %8959 = vmatprep.mubr.msk.bf16.mxu1 %vm10554_vm0, %v12715_v30 }
 0x3a4   : > { %8702 = vmatpush3.bf16.msra.mxu0 %v3113_v27 }
 0x3a5   : > { %8739 = vmatprep.subr.bf16.mxu0 %v12715_v30 }
 0x3aa   : > { %8670 = vmatmul.mubr.msk.bf16.gmra.mrb[200].mxu0 %vm1892_vm3, %v11495_v18  ;;  %8960 = vmatmul.mubr.msk.bf16.gmra.mrb[32].mxu1 %vm1892_vm3, %v4155_v17  ;;  %v4311_v18 = vld [vmem:[#allocation3 + $0x28] sm:$0xff] }
 0x3ab   : > { %8673 = vmatprep.mubr.msk.bf16.mxu0 %vm10554_vm0, %v12715_v30  ;;  %8963 = vmatprep.mubr.msk.bf16.mxu1 %vm10554_vm0, %v12715_v30  ;;  %v4327_v2 = vpack.c.bf16 %v4311_v18, %v4310_v21  ;;  %v4492_v17 = vld [vmem:[#allocation3 + $0x42] sm:$0xff]  ;;  %v11694_v18 = vpack.c.bf16 %v4494_v23, %v4493_v5  ;;  %v4495_v21 = vld [vmem:[#allocation3 + $0x5a] sm:$0xff] }
 0x3ac   : > { %v11685_v1 = vpack.c.bf16 %v4492_v17, %v4491_v62  ;;  %v11752_v62 = vld [vmem:[#allocation3 + $0xaa] sm:$0xff]  ;;  %v4669_v5 = vld [vmem:[#allocation3 + $0x33] sm:$0xff] }
 0x3ad   : > { %v4514_v23 = vpack.c.bf16 %v11752_v62, %v11752_v62 }
 0x3b2   : > { %8674 = vmatmul.mubr.msk.bf16.gmra.mrb[204].mxu0 %vm1892_vm3, %v11506_v7  ;;  %8964 = vmatmul.mubr.msk.bf16.gmra.mrb[0].mxu1 %vm1892_vm3, %v4156_v4  ;;  %v4312_v7 = vld [vmem:[#allocation3 + $0x30] sm:$0xff]  ;;  %v10476_v4 = vld [vmem:[#allocation3 + $0x68] sm:$0xff] }
 0x3b3   : > { %8677 = vmatprep.mubr.msk.bf16.mxu0 %vm10554_vm0, %v12715_v30  ;;  %8969 = vmatprep.mubr.msk.bf16.mxu1 %vm10554_vm0, %v12715_v30  ;;  %v4328_v51 = vpack.c.bf16 %v10467_v34, %v4312_v7  ;;  %v3079_v44 = vpack.c.bf16 %v10476_v4, %v10475_v47  ;;  %v11704_v7 = vpack.c.bf16 %v4496_v36, %v4495_v21  ;;  %v4498_v34 = vld [vmem:[#allocation3 + $0x72] sm:$0xff]  ;;  %v10481_v36 = vld [vmem:[#allocation3 + $0x49] sm:$0xff] }
 0x3b4   : > { %v7735_v47 = vld [vmem:[%s12683_s3 + $0x44] sm:$0xf]  ;;  %v4668_v4 = vld [vmem:[#allocation3 + $0x2b] sm:$0xff] }
 0x3ba   : > { %8678 = vmatmul.mubr.msk.bf16.gmra.mrb[208].mxu0 %vm1892_vm3, %v11515_v16  ;;  %8970 = vmatmul.mubr.msk.bf16.vlgmr.msra.gmra.mrb[4].mxu1 %vm1892_vm3, %v4327_v2  ;;  %v10468_v16 = vld [vmem:[#allocation3 + $0x40] sm:$0xff] }
 0x3bb   : > { %9006 = vmatpush3.bf16.msra.mxu1 %v4545_v6  ;;  %8681 = vmatprep.mubr.msk.bf16.mxu0 %vm10554_vm0, %v12715_v30  ;;  %v4329_v27 = vpack.c.bf16 %v10469_v35, %v10468_v16  ;;  %v10478_v16 = vld [vmem:[#allocation3 + $0x80] sm:$0xff] }
 0x3bc   : > { %8973 = vmatprep.mubr.msk.bf16.mxu1 %vm10554_vm0, %v12715_v30  ;;  %9043 = vmatprep.subr.bf16.mxu1 %v12715_v30  ;;  %v3081_v35 = vpack.c.bf16 %v11644_v39, %v10478_v16  ;;  %v3236_v39 = vld [vmem:[#allocation3 + $0x11] sm:$0xff] }
 0x3bd   : > { %v10482_v16 = vld [vmem:[#allocation3 + $0x51] sm:$0xff] }
 0x3c2   : > { %8682 = vmatmul.mubr.msk.bf16.gmra.mrb[212].mxu0 %vm1892_vm3, %v11531_v45  ;;  %8974 = vmatmul.mubr.msk.bf16.gmra.mrb[8].mxu1 %vm1892_vm3, %v4328_v51  ;;  %v2903_v45 = vpack.c.bf16 %v4145_v48, %v4145_v48  ;;  %v4724_v48 = vsel %vm1920_vm2, %v7725_v20, 0  ;;  %v3238_v20 = vld [vmem:[#allocation3 + $0x21] sm:$0xff] }
 0x3c3   : > { %8685 = vmatprep.mubr.msk.bf16.mxu0 %vm10554_vm0, %v12715_v30  ;;  %8977 = vmatprep.mubr.msk.bf16.mxu1 %vm10554_vm0, %v12715_v30 }
 0x3ca   : > { %8686 = vmatmul.mubr.msk.bf16.gmra.mrb[216].mxu0 %vm1892_vm3, %v11541_v10  ;;  %8978 = vmatmul.mubr.msk.bf16.gmra.mrb[12].mxu1 %vm1892_vm3, %v4329_v27 }
 0x3cb   : > { %8689 = vmatprep.mubr.msk.bf16.mxu0 %vm10554_vm0, %v12715_v30  ;;  %8981 = vmatprep.mubr.msk.bf16.mxu1 %vm10554_vm0, %v12715_v30 }
 0x3d2   : > { %8690 = vmatmul.mubr.msk.bf16.gmra.mrb[220].mxu0 %vm1892_vm3, %v11553_v3  ;;  %8982 = vmatmul.mubr.msk.bf16.gmra.mrb[16].mxu1 %vm1892_vm3, %v11155_v19  ;;  %v11634_v19 = vld [vmem:[#allocation3 + $0x70] sm:$0xff] }
 0x3d3   : > { %8693 = vmatprep.mubr.msk.bf16.mxu0 %vm10554_vm0, %v12715_v30  ;;  %8985 = vmatprep.mubr.msk.bf16.mxu1 %vm10554_vm0, %v12715_v30  ;;  %v4332_v10 = vpack.c.bf16 %v11185_v53, %v11634_v19  ;;  %v3057_v3 = vld [vmem:[#allocation3 + $0x10] sm:$0xff] }
 0x3d4   : > { %v11655_v53 = vld [vmem:[#allocation3 + $0x90] sm:$0xff] }
 0x3d5   : > { %v4334_v9 = vpack.c.bf16 %v11167_v49, %v11655_v53 }
 0x3da   : > { %8694 = vmatmul.mubr.msk.bf16.gmra.mrb[224].mxu0 %vm1892_vm3, %v11566_v12  ;;  %8986 = vmatmul.mubr.msk.bf16.gmra.mrb[20].mxu1 %vm1892_vm3, %v11173_v55  ;;  %v3058_v55 = vld [vmem:[#allocation3 + $0x18] sm:$0xff] }
 0x3db   : > { %8697 = vmatprep.mubr.msk.bf16.mxu0 %vm10554_vm0, %v12715_v30  ;;  %8989 = vmatprep.mubr.msk.bf16.mxu1 %vm10554_vm0, %v12715_v30  ;;  %v3074_v12 = vpack.c.bf16 %v3058_v55, %v3057_v3  ;;  %v3237_v3 = vld [vmem:[#allocation3 + $0x19] sm:$0xff] }
 0x3e2   : > { %8698 = vmatmul.mubr.msk.bf16.gmra.mrb[228].mxu0 %vm1892_vm3, %v2903_v45  ;;  %8990 = vmatmul.mubr.msk.bf16.gmra.mrb[24].mxu1 %vm1892_vm3, %v4332_v10  ;;  %v4500_v45 = vld [vmem:[#allocation3 + $0x82] sm:$0xff]  ;;  %v3082_v10 = vpack.c.bf16 %v11655_v53, %v11655_v53 }
 0x3e3   : > { %8703 = vmatprep.mubr.msk.bf16.mxu0 %vm10554_vm0, %v12715_v30  ;;  %8993 = vmatprep.mubr.msk.bf16.mxu1 %vm10554_vm0, %v12715_v30  ;;  %v3239_v53 = vld [vmem:[#allocation3 + $0x29] sm:$0xff] }
 0x3ea   : > { %8704 = vmatmul.mubr.msk.bf16.vlgmr.msra.gmra.mrb[196].mxu0 %vm1892_vm3, %v3074_v12  ;;  %8994 = vmatmul.mubr.msk.bf16.gmra.mrb[28].mxu1 %vm1892_vm3, %v4333_v60  ;;  %v4502_v12 = vld [vmem:[#allocation3 + $0x92] sm:$0xff]  ;;  %v4501_v60 = vld [vmem:[#allocation3 + $0x8a] sm:$0xff] }
 0x3eb   : > { %8707 = vmatprep.mubr.msk.bf16.mxu0 %vm10554_vm0, %v12715_v30  ;;  %8997 = vmatprep.mubr.msk.bf16.mxu1 %vm10554_vm0, %v12715_v30 }
 0x3ec   : > { %8740 = vmatpush3.bf16.msra.mxu0 %v10984_v13  ;;  %v4490_v13 = vld [vmem:[#allocation3 + $0x32] sm:$0xff] }
 0x3ed   : > { %v4506_v50 = vpack.c.bf16 %v4490_v13, %v11230_v22  ;;  %v3078_v22 = vpack.c.bf16 %v10474_v46, %v10473_v11  ;;  %v4504_v13 = vld [vmem:[#allocation3 + $0xa2] sm:$0xff]  ;;  %v3240_v11 = vld [vmem:[#allocation3 + $0x31] sm:$0xff]  ;;  %v10479_v46 = vld [vmem:[#allocation3 + $0x39] sm:$0xff] }
 0x3f2   : > { %8708 = vmatmul.mubr.msk.bf16.gmra.mrb[200].mxu0 %vm1892_vm3, %v4327_v2  ;;  %8998 = vmatmul.mubr.msk.bf16.gmra.mrb[32].mxu1 %vm1892_vm3, %v4334_v9  ;;  %v10477_v2 = vld [vmem:[#allocation3 + $0x78] sm:$0xff]  ;;  %v3253_v9 = vpack.c.bf16 %v3237_v3, %v3236_v39  ;;  %v4672_v3 = vld [vmem:[#allocation3 + $0x4b] sm:$0xff] }
 0x3f3   : > { %8711 = vmatprep.mubr.msk.bf16.mxu0 %vm10554_vm0, %v12715_v30  ;;  %9001 = vmatprep.mubr.msk.bf16.mxu1 %vm10554_vm0, %v12715_v30  ;;  %v3080_v6 = vpack.c.bf16 %v10477_v2, %v11634_v19  ;;  %v4499_v19 = vld [vmem:[#allocation3 + $0x7a] sm:$0xff]  ;;  %v4685_v2 = vpack.c.bf16 %v4669_v5, %v4668_v4  ;;  %v10485_v39 = vld [vmem:[#allocation3 + $0x69] sm:$0xff] }
 0x3f4   : > { %v11725_v55 = vpack.c.bf16 %v4500_v45, %v4499_v19  ;;  %v10488_v5 = vld [vmem:[#allocation3 + $0x81] sm:$0xff] }
 0x3fa   : > { %8712 = vmatmul.mubr.msk.bf16.gmra.mrb[204].mxu0 %vm1892_vm3, %v4328_v51  ;;  %9002 = vmatmul.mubr.msk.bf16.gmra.mrb[0].mxu1 %vm1892_vm3, %v4335_v28  ;;  %v4497_v51 = vld [vmem:[#allocation3 + $0x6a] sm:$0xff]  ;;  %v11734_v28 = vpack.c.bf16 %v4502_v12, %v4501_v60  ;;  %v10484_v12 = vld [vmem:[#allocation3 + $0x61] sm:$0xff] }
 0x3fb   : > { %8715 = vmatprep.mubr.msk.bf16.mxu0 %vm10554_vm0, %v12715_v30  ;;  %9007 = vmatprep.mubr.msk.bf16.mxu1 %vm10554_vm0, %v12715_v30  ;;  %v3258_v60 = vpack.c.bf16 %v10485_v39, %v10484_v12  ;;  %v7745_v12 = vld [vmem:[%s12683_s3 + $0x48] sm:$0xf]  ;;  %v4847_v39 = vld [vmem:[#allocation3 + $0x2c] sm:$0xff] }
 0x402   : > { %8716 = vmatmul.mubr.msk.bf16.gmra.mrb[208].mxu0 %vm1892_vm3, %v4329_v27  ;;  %9008 = vmatmul.mubr.msk.bf16.vlgmr.msra.gmra.mrb[4].mxu1 %vm1892_vm3, %v4506_v50  ;;  %v11714_v27 = vpack.c.bf16 %v4498_v34, %v4497_v51  ;;  %v4503_v50 = vld [vmem:[#allocation3 + $0x9a] sm:$0xff]  ;;  %v4671_v34 = vld [vmem:[#allocation3 + $0x43] sm:$0xff] }
 0x403   : > { %9044 = vmatpush3.bf16.msra.mxu1 %v4724_v48  ;;  %8719 = vmatprep.mubr.msk.bf16.mxu0 %vm10554_vm0, %v12715_v30  ;;  %v3254_v48 = vpack.c.bf16 %v3239_v53, %v3238_v20  ;;  %v11743_v17 = vpack.c.bf16 %v4504_v13, %v4503_v50  ;;  %v4670_v51 = vld [vmem:[#allocation3 + $0x3b] sm:$0xff]  ;;  %v4675_v53 = vld [vmem:[#allocation3 + $0x63] sm:$0xff]  ;;  %v10486_v20 = vld [vmem:[#allocation3 + $0x71] sm:$0xff] }
 0x404   : > { %9011 = vmatprep.mubr.msk.bf16.mxu1 %vm10554_vm0, %v12715_v30  ;;  %9081 = vmatprep.subr.bf16.mxu1 %v12715_v30  ;;  %v11773_v19 = vpack.c.bf16 %v4671_v34, %v4670_v51  ;;  %v4674_v13 = vld [vmem:[#allocation3 + $0x5b] sm:$0xff]  ;;  %v4683_v51 = vld [vmem:[#allocation3 + $0xa3] sm:$0xff] }
 0x405   : > { %v10487_v50 = vld [vmem:[#allocation3 + $0x79] sm:$0xff] }
 0x40a   : > { %8720 = vmatmul.mubr.msk.bf16.gmra.mrb[212].mxu0 %vm1892_vm3, %v3078_v22  ;;  %9012 = vmatmul.mubr.msk.bf16.gmra.mrb[8].mxu1 %vm1892_vm3, %v11685_v1  ;;  %v3255_v22 = vpack.c.bf16 %v10479_v46, %v3240_v11  ;;  %v11791_v11 = vpack.c.bf16 %v4675_v53, %v4674_v13  ;;  %v11800_v46 = vld [vmem:[#allocation3 + $0x89] sm:$0xff]  ;;  %v5082_v53 = vsel %vm1920_vm2, %v7745_v12, 0 }
 0x40b   : > { %8723 = vmatprep.mubr.msk.bf16.mxu0 %vm10554_vm0, %v12715_v30  ;;  %9015 = vmatprep.mubr.msk.bf16.mxu1 %vm10554_vm0, %v12715_v30  ;;  %v4850_v13 = vld [vmem:[#allocation3 + $0x44] sm:$0xff] }
 0x40c   : > { %v4862_v12 = vld [vmem:[#allocation3 + $0xa4] sm:$0xff] }
 0x412   : > { %8724 = vmatmul.mubr.msk.bf16.gmra.mrb[216].mxu0 %vm1892_vm3, %v3079_v44  ;;  %9016 = vmatmul.mubr.msk.bf16.gmra.mrb[12].mxu1 %vm1892_vm3, %v11694_v18  ;;  %v10480_v44 = vld [vmem:[#allocation3 + $0x41] sm:$0xff] }
 0x413   : > { %8727 = vmatprep.mubr.msk.bf16.mxu0 %vm10554_vm0, %v12715_v30  ;;  %9019 = vmatprep.mubr.msk.bf16.mxu1 %vm10554_vm0, %v12715_v30  ;;  %v3256_v21 = vpack.c.bf16 %v10481_v36, %v10480_v44  ;;  %v4679_v44 = vld [vmem:[#allocation3 + $0x83] sm:$0xff]  ;;  %v4678_v36 = vld [vmem:[#allocation3 + $0x7b] sm:$0xff] }
 0x41a   : > { %8728 = vmatmul.mubr.msk.bf16.gmra.mrb[220].mxu0 %vm1892_vm3, %v3080_v6  ;;  %9020 = vmatmul.mubr.msk.bf16.gmra.mrb[16].mxu1 %vm1892_vm3, %v11704_v7  ;;  %v4903_v6 = vsel %vm1920_vm2, %v7735_v47, 0  ;;  %v3260_v47 = vpack.c.bf16 %v11800_v46, %v10488_v5  ;;  %v4853_v5 = vld [vmem:[#allocation3 + $0x5c] sm:$0xff] }
 0x41b   : > { %8731 = vmatprep.mubr.msk.bf16.mxu0 %vm10554_vm0, %v12715_v30  ;;  %9023 = vmatprep.mubr.msk.bf16.mxu1 %vm10554_vm0, %v12715_v30 }
 0x422   : > { %8732 = vmatmul.mubr.msk.bf16.gmra.mrb[224].mxu0 %vm1892_vm3, %v3081_v35  ;;  %9024 = vmatmul.mubr.msk.bf16.gmra.mrb[20].mxu1 %vm1892_vm3, %v11714_v27  ;;  %v10483_v35 = vld [vmem:[#allocation3 + $0x59] sm:$0xff] }
 0x423   : > { %8735 = vmatprep.mubr.msk.bf16.mxu0 %vm10554_vm0, %v12715_v30  ;;  %9027 = vmatprep.mubr.msk.bf16.mxu1 %vm10554_vm0, %v12715_v30  ;;  %v3257_v45 = vpack.c.bf16 %v10483_v35, %v10482_v16  ;;  %v4682_v16 = vld [vmem:[#allocation3 + $0x9b] sm:$0xff] }
 0x424   : > { %v11822_v35 = vpack.c.bf16 %v4683_v51, %v4682_v16  ;;  %v4860_v16 = vld [vmem:[#allocation3 + $0x94] sm:$0xff] }
 0x42a   : > { %8736 = vmatmul.mubr.msk.bf16.gmra.mrb[228].mxu0 %vm1892_vm3, %v3082_v10  ;;  %9028 = vmatmul.mubr.msk.bf16.gmra.mrb[24].mxu1 %vm1892_vm3, %v11725_v55  ;;  %v4673_v10 = vld [vmem:[#allocation3 + $0x53] sm:$0xff] }
 0x42b   : > { %8741 = vmatprep.mubr.msk.bf16.mxu0 %vm10554_vm0, %v12715_v30  ;;  %9031 = vmatprep.mubr.msk.bf16.mxu1 %vm10554_vm0, %v12715_v30 }
 0x432   : > { %8742 = vmatmul.mubr.msk.bf16.vlgmr.msra.gmra.mrb[196].mxu0 %vm1892_vm3, %v3253_v9  ;;  %9032 = vmatmul.mubr.msk.bf16.gmra.mrb[28].mxu1 %vm1892_vm3, %v11734_v28  ;;  %v11782_v9 = vpack.c.bf16 %v4673_v10, %v4672_v3  ;;  %v4848_v3 = vld [vmem:[#allocation3 + $0x34] sm:$0xff] }
 0x433   : > { %8745 = vmatprep.mubr.msk.bf16.mxu0 %vm10554_vm0, %v12715_v30  ;;  %9035 = vmatprep.mubr.msk.bf16.mxu1 %vm10554_vm0, %v12715_v30 }
 0x43a   : > { %8746 = vmatmul.mubr.msk.bf16.gmra.mrb[200].mxu0 %vm1892_vm3, %v3254_v48  ;;  %9036 = vmatmul.mubr.msk.bf16.gmra.mrb[32].mxu1 %vm1892_vm3, %v11743_v17  ;;  %v3259_v48 = vpack.c.bf16 %v10487_v50, %v10486_v20  ;;  %v4849_v20 = vld [vmem:[#allocation3 + $0x3c] sm:$0xff] }
 0x43b   : > { %8749 = vmatprep.mubr.msk.bf16.mxu0 %vm10554_vm0, %v12715_v30  ;;  %9039 = vmatprep.mubr.msk.bf16.mxu1 %vm10554_vm0, %v12715_v30  ;;  %v11843_v50 = vpack.c.bf16 %v4850_v13, %v4849_v20  ;;  %v5027_v20 = vld [vmem:[#allocation3 + $0x35] sm:$0xff] }
 0x442   : > { %8750 = vmatmul.mubr.msk.bf16.gmra.mrb[204].mxu0 %vm1892_vm3, %v3255_v22  ;;  %9040 = vmatmul.mubr.msk.bf16.gmra.mrb[0].mxu1 %vm1892_vm3, %v4514_v23  ;;  %v4677_v22 = vld [vmem:[#allocation3 + $0x73] sm:$0xff]  ;;  %v4676_v23 = vld [vmem:[#allocation3 + $0x6b] sm:$0xff] }
 0x443   : > { %8753 = vmatprep.mubr.msk.bf16.mxu0 %vm10554_vm0, %v12715_v30  ;;  %9045 = vmatprep.mubr.msk.bf16.mxu1 %vm10554_vm0, %v12715_v30  ;;  %v11803_v4 = vpack.c.bf16 %v4677_v22, %v4676_v23  ;;  %v4854_v23 = vld [vmem:[#allocation3 + $0x64] sm:$0xff] }
 0x44a   : > { %8754 = vmatmul.mubr.msk.bf16.gmra.mrb[208].mxu0 %vm1892_vm3, %v3256_v21  ;;  %9046 = vmatmul.mubr.msk.bf16.vlgmr.msra.gmra.mrb[4].mxu1 %vm1892_vm3, %v4685_v2  ;;  %v11810_v21 = vpack.c.bf16 %v4679_v44, %v4678_v36  ;;  %v4681_v2 = vld [vmem:[#allocation3 + $0x93] sm:$0xff] }
 0x44b   : > { %9082 = vmatpush3.bf16.msra.mxu1 %v4903_v6  ;;  %8757 = vmatprep.mubr.msk.bf16.mxu0 %vm10554_vm0, %v12715_v30  ;;  %v4680_v6 = vld [vmem:[#allocation3 + $0x8b] sm:$0xff]  ;;  %v4856_v44 = vld [vmem:[#allocation3 + $0x74] sm:$0xff] }
 0x44c   : > { %9049 = vmatprep.mubr.msk.bf16.mxu1 %vm10554_vm0, %v12715_v30  ;;  %9119 = vmatprep.subr.bf16.mxu1 %v12715_v30  ;;  %v11816_v34 = vpack.c.bf16 %v4681_v2, %v4680_v6  ;;  %v4855_v36 = vld [vmem:[#allocation3 + $0x6c] sm:$0xff]  ;;  %v4857_v6 = vld [vmem:[#allocation3 + $0x7c] sm:$0xff] }
 0x44d   : > { %v11862_v2 = vpack.c.bf16 %v4856_v44, %v4855_v36  ;;  %v5029_v36 = vld [vmem:[#allocation3 + $0x45] sm:$0xff] }
 0x452   : > { %8758 = vmatmul.mubr.msk.bf16.gmra.mrb[212].mxu0 %vm1892_vm3, %v3257_v45  ;;  %9050 = vmatmul.mubr.msk.bf16.gmra.mrb[8].mxu1 %vm1892_vm3, %v11773_v19  ;;  %v11828_v45 = vld [vmem:[#allocation3 + $0xab] sm:$0xff] }
 0x453   : > { %8761 = vmatprep.mubr.msk.bf16.mxu0 %vm10554_vm0, %v12715_v30  ;;  %9053 = vmatprep.mubr.msk.bf16.mxu1 %vm10554_vm0, %v12715_v30  ;;  %v4693_v10 = vpack.c.bf16 %v11828_v45, %v11828_v45 }
 0x45a   : > { %8762 = vmatmul.mubr.msk.bf16.gmra.mrb[216].mxu0 %vm1892_vm3, %v3258_v60  ;;  %9054 = vmatmul.mubr.msk.bf16.gmra.mrb[12].mxu1 %vm1892_vm3, %v11782_v9  ;;  %v4864_v60 = vpack.c.bf16 %v4848_v3, %v4847_v39  ;;  %v4861_v39 = vld [vmem:[#allocation3 + $0x9c] sm:$0xff] }
 0x45b   : > { %8765 = vmatprep.mubr.msk.bf16.mxu0 %vm10554_vm0, %v12715_v30  ;;  %9057 = vmatprep.mubr.msk.bf16.mxu1 %vm10554_vm0, %v12715_v30 }
 0x462   : > { %8766 = vmatmul.mubr.msk.bf16.gmra.mrb[220].mxu0 %vm1892_vm3, %v3259_v48  ;;  %9058 = vmatmul.mubr.msk.bf16.gmra.mrb[16].mxu1 %vm1892_vm3, %v11791_v11  ;;  %v11849_v48 = vld [vmem:[#allocation3 + $0x4c] sm:$0xff] }
 0x463   : > { %8769 = vmatprep.mubr.msk.bf16.mxu0 %vm10554_vm0, %v12715_v30  ;;  %9061 = vmatprep.mubr.msk.bf16.mxu1 %vm10554_vm0, %v12715_v30  ;;  %v4866_v22 = vpack.c.bf16 %v11420_v29, %v11849_v48  ;;  %v4858_v29 = vld [vmem:[#allocation3 + $0x84] sm:$0xff] }
 0x464   : > { %v11868_v51 = vpack.c.bf16 %v4858_v29, %v4857_v6  ;;  %v5028_v29 = vld [vmem:[#allocation3 + $0x3d] sm:$0xff] }
 0x465   : > { %v5044_v6 = vpack.c.bf16 %v5029_v36, %v5028_v29  ;;  %v5037_v36 = vld [vmem:[#allocation3 + $0x85] sm:$0xff] }
 0x46a   : > { %8770 = vmatmul.mubr.msk.bf16.gmra.mrb[224].mxu0 %vm1892_vm3, %v3260_v47  ;;  %9062 = vmatmul.mubr.msk.bf16.gmra.mrb[20].mxu1 %vm1892_vm3, %v11803_v4  ;;  %v11856_v47 = vpack.c.bf16 %v4854_v23, %v4853_v5  ;;  %v5026_v23 = vld [vmem:[#allocation3 + $0x2d] sm:$0xff] }
 0x46b   : > { %9065 = vmatprep.mubr.msk.bf16.mxu1 %vm10554_vm0, %v12715_v30  ;;  %v5043_v5 = vpack.c.bf16 %v5027_v20, %v5026_v23  ;;  %v5034_v23 = vld [vmem:[#allocation3 + $0x6d] sm:$0xff] }
 0x472   : > { %9066 = vmatmul.mubr.msk.bf16.gmra.mrb[24].mxu1 %vm1892_vm3, %v11810_v21 }
 0x473   : > { %9069 = vmatprep.mubr.msk.bf16.mxu1 %vm10554_vm0, %v12715_v30 }
 0x47a   : > { %9070 = vmatmul.mubr.msk.bf16.gmra.mrb[28].mxu1 %vm1892_vm3, %v11816_v34 }
 0x47b   : > { %9073 = vmatprep.mubr.msk.bf16.mxu1 %vm10554_vm0, %v12715_v30 }
 0x482   : > { %9074 = vmatmul.mubr.msk.bf16.gmra.mrb[32].mxu1 %vm1892_vm3, %v11822_v35 }
 0x483   : > { %9077 = vmatprep.mubr.msk.bf16.mxu1 %vm10554_vm0, %v12715_v30 }
 0x48a   : > { %9078 = vmatmul.mubr.msk.bf16.gmra.mrb[0].mxu1 %vm1892_vm3, %v4693_v10  ;;  %v4859_v10 = vld [vmem:[#allocation3 + $0x8c] sm:$0xff] }
 0x48b   : > { %9083 = vmatprep.mubr.msk.bf16.mxu1 %vm10554_vm0, %v12715_v30  ;;  %v11874_v3 = vpack.c.bf16 %v4860_v16, %v4859_v10  ;;  %v5031_v16 = vld [vmem:[#allocation3 + $0x55] sm:$0xff]  ;;  %v5030_v10 = vld [vmem:[#allocation3 + $0x4d] sm:$0xff] }
 0x492   : > { %9084 = vmatmul.mubr.msk.bf16.vlgmr.msra.gmra.mrb[4].mxu1 %vm1892_vm3, %v4864_v60  ;;  %v11880_v60 = vpack.c.bf16 %v4862_v12, %v4861_v39  ;;  %v5045_v12 = vpack.c.bf16 %v5031_v16, %v5030_v10  ;;  %v5033_v39 = vld [vmem:[#allocation3 + $0x65] sm:$0xff]  ;;  %v5036_v16 = vld [vmem:[#allocation3 + $0x7d] sm:$0xff] }
 0x493   : > { %9120 = vmatpush3.bf16.msra.mxu1 %v5082_v53  ;;  %9087 = vmatprep.mubr.msk.bf16.mxu1 %vm10554_vm0, %v12715_v30  ;;  %v11886_v53 = vld [vmem:[#allocation3 + $0xac] sm:$0xff] }
 0x494   : > { %9157 = vmatprep.subr.bf16.mxu1 %v12715_v30  ;;  %v4872_v13 = vpack.c.bf16 %v11886_v53, %v11886_v53 }
 0x49a   : > { %9088 = vmatmul.mubr.msk.bf16.gmra.mrb[8].mxu1 %vm1892_vm3, %v11843_v50 }
 0x49b   : > { %9091 = vmatprep.mubr.msk.bf16.mxu1 %vm10554_vm0, %v12715_v30 }
 0x4a2   : > { %9092 = vmatmul.mubr.msk.bf16.gmra.mrb[12].mxu1 %vm1892_vm3, %v4866_v22  ;;  %v7755_v22 = vld [vmem:[%s12683_s3 + $0x4c] sm:$0xf] }
 0x4a3   : > { %9095 = vmatprep.mubr.msk.bf16.mxu1 %vm10554_vm0, %v12715_v30  ;;  %v5261_v44 = vsel %vm1920_vm2, %v7755_v22, 0  ;;  %v5035_v22 = vld [vmem:[#allocation3 + $0x75] sm:$0xff] }
 0x4aa   : > { %9096 = vmatmul.mubr.msk.bf16.gmra.mrb[16].mxu1 %vm1892_vm3, %v11856_v47 }
 0x4ab   : > { %9099 = vmatprep.mubr.msk.bf16.mxu1 %vm10554_vm0, %v12715_v30 }
 0x4b2   : > { %9100 = vmatmul.mubr.msk.bf16.gmra.mrb[20].mxu1 %vm1892_vm3, %v11862_v2 }
 0x4b3   : > { %9103 = vmatprep.mubr.msk.bf16.mxu1 %vm10554_vm0, %v12715_v30 }
 0x4ba   : > { %9104 = vmatmul.mubr.msk.bf16.gmra.mrb[24].mxu1 %vm1892_vm3, %v11868_v51 }
 0x4bb   : > { %9107 = vmatprep.mubr.msk.bf16.mxu1 %vm10554_vm0, %v12715_v30 }
 0x4c2   : > { %9108 = vmatmul.mubr.msk.bf16.gmra.mrb[28].mxu1 %vm1892_vm3, %v11874_v3 }
 0x4c3   : > { %9111 = vmatprep.mubr.msk.bf16.mxu1 %vm10554_vm0, %v12715_v30 }
 0x4ca   : > { %9112 = vmatmul.mubr.msk.bf16.gmra.mrb[32].mxu1 %vm1892_vm3, %v11880_v60 }
 0x4cb   : > { %9115 = vmatprep.mubr.msk.bf16.mxu1 %vm10554_vm0, %v12715_v30 }
 0x4d2   : > { %9116 = vmatmul.mubr.msk.bf16.gmra.mrb[0].mxu1 %vm1892_vm3, %v4872_v13  ;;  %v5032_v13 = vld [vmem:[#allocation3 + $0x5d] sm:$0xff] }
 0x4d3   : > { %9121 = vmatprep.mubr.msk.bf16.mxu1 %vm10554_vm0, %v12715_v30  ;;  %v5046_v20 = vpack.c.bf16 %v5033_v39, %v5032_v13  ;;  %v5039_v13 = vld [vmem:[#allocation3 + $0x95] sm:$0xff] }
 0x4da   : > { %9122 = vmatmul.mubr.msk.bf16.vlgmr.msra.gmra.mrb[4].mxu1 %vm1892_vm3, %v5043_v5  ;;  %v5047_v5 = vpack.c.bf16 %v5035_v22, %v5034_v23  ;;  %v5038_v23 = vld [vmem:[#allocation3 + $0x8d] sm:$0xff] }
 0x4db   : > { %9158 = vmatpush3.bf16.msra.mxu1 %v5261_v44  ;;  %9125 = vmatprep.mubr.msk.bf16.mxu1 %vm10554_vm0, %v12715_v30  ;;  %v5049_v14 = vpack.c.bf16 %v5039_v13, %v5038_v23 }
 0x4dc   : > { %9195 = vmatprep.subr.bf16.mxu1 %v12715_v30 }
 0x4e2   : > { %9126 = vmatmul.mubr.msk.bf16.gmra.mrb[8].mxu1 %vm1892_vm3, %v5044_v6 }
 0x4e3   : > { %9129 = vmatprep.mubr.msk.bf16.mxu1 %vm10554_vm0, %v12715_v30 }
 0x4ea   : > { %9130 = vmatmul.mubr.msk.bf16.gmra.mrb[12].mxu1 %vm1892_vm3, %v5045_v12  ;;  %v5048_v12 = vpack.c.bf16 %v5037_v36, %v5036_v16 }
 0x4eb   : > { %9133 = vmatprep.mubr.msk.bf16.mxu1 %vm10554_vm0, %v12715_v30 }
 0x4f2   : > { %9134 = vmatmul.mubr.msk.bf16.gmra.mrb[16].mxu1 %vm1892_vm3, %v5046_v20 }
 0x4f3   : > { %9137 = vmatprep.mubr.msk.bf16.mxu1 %vm10554_vm0, %v12715_v30 }
 0x4fa   : > { %9138 = vmatmul.mubr.msk.bf16.gmra.mrb[20].mxu1 %vm1892_vm3, %v5047_v5 }
 0x4fb   : > { %9141 = vmatprep.mubr.msk.bf16.mxu1 %vm10554_vm0, %v12715_v30 }
 0x4fd   : > { %v11913_v44 = vpop.f32.mrb[228].mxu0 }
 0x4fe   : > { %12726 = vst [vmem:[#allocation9_spill] sm:$0xff] %v11913_v44  ;;  %v8737_v29 = vpop.f32.mrb[229].mxu0 }
 0x4ff   : > { %v3216_v6 = vpop.f32.mrb[230].mxu0  ;;  %v5041_v29 = vld [vmem:[#allocation3 + $0xa5] sm:$0xff] }
 0x500   : > { %v8738_v10 = vpop.f32.mrb[231].mxu0 }
 0x501   : > { %v5040_v10 = vld [vmem:[#allocation3 + $0x9d] sm:$0xff] }
 0x502   : > { %9142 = vmatmul.mubr.msk.bf16.gmra.mrb[24].mxu1 %vm1892_vm3, %v5048_v12  ;;  %v5050_v44 = vpack.c.bf16 %v5041_v29, %v5040_v10  ;;  %v5206_v29 = vld [vmem:[#allocation3 + $0x36] sm:$0xff] }
 0x503   : > { %9145 = vmatprep.mubr.msk.bf16.mxu1 %vm10554_vm0, %v12715_v30 }
 0x505   : > { %v11918_v39 = vpop.f32.mrb[196].mxu0 }
 0x506   : > { %v8743_v20 = vpop.f32.mrb[197].mxu0 }
 0x507   : > { %v11920_v22 = vpop.f32.mrb[198].mxu0 }
 0x508   : > { %12727 = vst [vmem:[#allocation10_spill] sm:$0xff] %v11920_v22  ;;  %v8744_v5 = vpop.f32.mrb[199].mxu0 }
 0x50a   : > { %9146 = vmatmul.mubr.msk.bf16.gmra.mrb[28].mxu1 %vm1892_vm3, %v5049_v14  ;;  %v5042_v14 = vld [vmem:[#allocation3 + $0xad] sm:$0xff] }
 0x50b   : > { %9149 = vmatprep.mubr.msk.bf16.mxu1 %vm10554_vm0, %v12715_v30 }
 0x50d   : > { %v11925_v36 = vpop.f32.mrb[200].mxu0 }
 0x50e   : > { %12728 = vst [vmem:[#allocation11_spill] sm:$0xff] %v11925_v36  ;;  %v8747_v6 = vpop.f32.mrb[201].mxu0  ;;  %v5051_v36 = vpack.c.bf16 %v5042_v14, %v5042_v14 }
 0x50f   : > { %v11927_v16 = vpop.f32.mrb[202].mxu0 }
 0x510   : > { %12729 = vst [vmem:[#allocation12_spill] sm:$0xff] %v11927_v16  ;;  %v8748_v12 = vpop.f32.mrb[203].mxu0 }
 0x512   : > { %9150 = vmatmul.mubr.msk.bf16.gmra.mrb[32].mxu1 %vm1892_vm3, %v5050_v44  ;;  %v7765_v44 = vld [vmem:[%s12683_s3 + $0x50] sm:$0xf] }
 0x513   : > { %9153 = vmatprep.mubr.msk.bf16.mxu1 %vm10554_vm0, %v12715_v30  ;;  %v5440_v14 = vsel %vm1920_vm2, %v7765_v44, 0 }
 0x515   : > { %v11932_v13 = vpop.f32.mrb[204].mxu0 }
 0x516   : > { %12730 = vst [vmem:[#allocation13_spill] sm:$0xff] %v11932_v13  ;;  %v8751_v20 = vpop.f32.mrb[205].mxu0 }
 0x517   : > { %v11934_v23 = vpop.f32.mrb[206].mxu0  ;;  %v5205_v20 = vld [vmem:[#allocation3 + $0x2e] sm:$0xff] }
 0x518   : > { %12731 = vst [vmem:[#allocation14_spill] sm:$0xff] %v11934_v23  ;;  %v8752_v5 = vpop.f32.mrb[207].mxu0  ;;  %v5222_v23 = vpack.c.bf16 %v5206_v29, %v5205_v20  ;;  %v5210_v29 = vld [vmem:[#allocation3 + $0x56] sm:$0xff] }
 0x519   : > { %v5208_v5 = vld [vmem:[#allocation3 + $0x46] sm:$0xff] }
 0x51a   : > { %9154 = vmatmul.mubr.msk.bf16.gmra.mrb[0].mxu1 %vm1892_vm3, %v5051_v36 }
 0x51b   : > { %9159 = vmatprep.mubr.msk.bf16.mxu1 %vm10554_vm0, %v12715_v30 }
 0x51d   : > { %v11939_v6 = vpop.f32.mrb[208].mxu0 }
 0x51e   : > { %12732 = vst [vmem:[#allocation15_spill] sm:$0xff] %v11939_v6  ;;  %v8755_v10 = vpop.f32.mrb[209].mxu0 }
 0x51f   : > { %v11944_v12 = vpop.f32.mrb[210].mxu0 }
 0x520   : > { %12733 = vst [vmem:[#allocation16_spill] sm:$0xff] %v11944_v12  ;;  %v8756_v13 = vpop.f32.mrb[211].mxu0  ;;  %v5207_v12 = vld [vmem:[#allocation3 + $0x3e] sm:$0xff] }
 0x521   : > { %v5223_v13 = vpack.c.bf16 %v5208_v5, %v5207_v12 }
 0x522   : > { %9160 = vmatmul.mubr.msk.bf16.vlgmr.msra.gmra.mrb[4].mxu1 %vm1892_vm3, %v5222_v23 }
 0x523   : > { %9196 = vmatpush3.bf16.msra.mxu1 %v5440_v14  ;;  %9163 = vmatprep.mubr.msk.bf16.mxu1 %vm10554_vm0, %v12715_v30  ;;  %v5209_v14 = vld [vmem:[#allocation3 + $0x4e] sm:$0xff] }
 0x524   : > { %9233 = vmatprep.subr.bf16.mxu1 %v12715_v30  ;;  %v5224_v22 = vpack.c.bf16 %v5210_v29, %v5209_v14  ;;  %v5213_v14 = vld [vmem:[#allocation3 + $0x6e] sm:$0xff] }
 0x525   : > { %v11951_v36 = vpop.f32.mrb[212].mxu0 }
 0x526   : > { %12734 = vst [vmem:[#allocation17_spill] sm:$0xff] %v11951_v36  ;;  %v8759_v6 = vpop.f32.mrb[213].mxu0 }
 0x527   : > { %v11953_v10 = vpop.f32.mrb[214].mxu0  ;;  %v5212_v6 = vld [vmem:[#allocation3 + $0x66] sm:$0xff] }
 0x528   : > { %12735 = vst [vmem:[#allocation18_spill] sm:$0xff] %v11953_v10  ;;  %v8760_v16 = vpop.f32.mrb[215].mxu0 }
 0x52a   : > { %9164 = vmatmul.mubr.msk.bf16.gmra.mrb[8].mxu1 %vm1892_vm3, %v5223_v13  ;;  %v5211_v13 = vld [vmem:[#allocation3 + $0x5e] sm:$0xff] }
 0x52b   : > { %9167 = vmatprep.mubr.msk.bf16.mxu1 %vm10554_vm0, %v12715_v30  ;;  %v5225_v10 = vpack.c.bf16 %v5212_v6, %v5211_v13  ;;  %v5215_v6 = vld [vmem:[#allocation3 + $0x7e] sm:$0xff]  ;;  %v5217_v13 = vld [vmem:[#allocation3 + $0x8e] sm:$0xff] }
 0x52d   : > { %v11958_v23 = vpop.f32.mrb[216].mxu0 }
 0x52e   : > { %12736 = vst [vmem:[#allocation19_spill] sm:$0xff] %v11958_v23  ;;  %v8763_v44 = vpop.f32.mrb[217].mxu0 }
 0x52f   : > { %v11960_v20 = vpop.f32.mrb[218].mxu0 }
 0x530   : > { %12737 = vst [vmem:[#allocation20_spill] sm:$0xff] %v11960_v20  ;;  %v8764_v36 = vpop.f32.mrb[219].mxu0 }
 0x532   : > { %9168 = vmatmul.mubr.msk.bf16.gmra.mrb[12].mxu1 %vm1892_vm3, %v5224_v22  ;;  %v5214_v22 = vld [vmem:[#allocation3 + $0x76] sm:$0xff] }
 0x533   : > { %9171 = vmatprep.mubr.msk.bf16.mxu1 %vm10554_vm0, %v12715_v30  ;;  %v5226_v20 = vpack.c.bf16 %v5214_v22, %v5213_v14  ;;  %v5221_v14 = vld [vmem:[#allocation3 + $0xae] sm:$0xff] }
 0x535   : > { %v11965_v16 = vpop.f32.mrb[220].mxu0 }
 0x536   : > { %12738 = vst [vmem:[#allocation21_spill] sm:$0xff] %v11965_v16  ;;  %v8767_v12 = vpop.f32.mrb[221].mxu0 }
 0x537   : > { %v11967_v5 = vpop.f32.mrb[222].mxu0  ;;  %v5218_v12 = vld [vmem:[#allocation3 + $0x96] sm:$0xff] }
 0x538   : > { %v8768_v23 = vpop.f32.mrb[223].mxu0 }
 0x539   : > { %v5216_v23 = vld [vmem:[#allocation3 + $0x86] sm:$0xff] }
 0x53a   : > { %9172 = vmatmul.mubr.msk.bf16.gmra.mrb[16].mxu1 %vm1892_vm3, %v5225_v10  ;;  %v5227_v10 = vpack.c.bf16 %v5216_v23, %v5215_v6  ;;  %v5230_v23 = vpack.c.bf16 %v5221_v14, %v5221_v14  ;;  %v7775_v6 = vld [vmem:[%s12683_s3 + $0x54] sm:$0xf] }
 0x53b   : > { %9175 = vmatprep.mubr.msk.bf16.mxu1 %vm10554_vm0, %v12715_v30  ;;  %v12752_v14 = vld [vmem:[#allocation11_spill] sm:$0xff] }
 0x53d   : > { %v11972_v36 = vpop.f32.mrb[224].mxu0 }
 0x53e   : > { %v8771_v29 = vpop.f32.mrb[225].mxu0 }
 0x53f   : > { %v11974_v44 = vpop.f32.mrb[226].mxu0  ;;  %v5228_v29 = vpack.c.bf16 %v5218_v12, %v5217_v13  ;;  %v12739_v12 = vpack.c.bf16 %v10964_v38, %v10962_v37  ;;  %v12740_v13 = vpack.c.bf16 %v10998_v33, %v10996_v32  ;;  %v12742_v37 = vpack.c.bf16 %v11045_v15, %v11047_v59  ;;  %v5400_v59 = vld [vmem:[#allocation3 + $0xb8] sm:$0xff] }
 0x540   : > { %v8772_v16 = vpop.f32.mrb[227].mxu0  ;;  %v12743_v38 = vpack.c.bf16 %v11078_v52, %v11076_v26  ;;  %v12744_v32 = vpack.c.bf16 %v11115_v0, %v11113_v63  ;;  %v12745_v33 = vpack.c.bf16 %v11169_v8, %v11167_v49  ;;  %v5409_v26 = vpack.c.bf16 %v5400_v59, %v5400_v59  ;;  %v7785_v52 = vld [vmem:[%s12683_s3 + $0x58] sm:$0xf] }
 0x541   : > { %v5219_v16 = vld [vmem:[#allocation3 + $0x9e] sm:$0xff]  ;;  %v5798_v63 = vsel %vm1920_vm2, %v7785_v52, 0  ;;  %v12746_v0 = vpack.c.bf16 %v10970_v43, %v10968_v42  ;;  %v12747_v49 = vpack.c.bf16 %v11004_v41, %v11002_v40  ;;  %v12748_v8 = vpack.c.bf16 %v11026_v58, %v11024_v57  ;;  %v5574_v40 = vld [vmem:[#allocation3 + $0x91] sm:$0xff] }
 0x542   : > { %9176 = vmatmul.mubr.msk.bf16.gmra.mrb[20].mxu1 %vm1892_vm3, %v5226_v20  ;;  %v5220_v20 = vld [vmem:[#allocation3 + $0xa6] sm:$0xff]  ;;  %v12749_v42 = vpack.c.bf16 %v11056_v25, %v11054_v24  ;;  %v12750_v43 = vpack.c.bf16 %v11082_v61, %v11080_v31  ;;  %v5585_v41 = vpack.c.bf16 %v5574_v40, %v11800_v46  ;;  %v5575_v58 = vld [vmem:[#allocation3 + $0x99] sm:$0xff]  ;;  %v5578_v31 = vld [vmem:[#allocation3 + $0xb1] sm:$0xff] }
 0x543   : > { %9179 = vmatprep.mubr.msk.bf16.mxu1 %vm10554_vm0, %v12715_v30  ;;  %v5229_v22 = vpack.c.bf16 %v5220_v20, %v5219_v16  ;;  %v5576_v57 = vld [vmem:[#allocation3 + $0xa1] sm:$0xff]  ;;  %v5577_v25 = vld [vmem:[#allocation3 + $0xa9] sm:$0xff]  ;;  %v5579_v46 = vld [vmem:[#allocation3 + $0xb9] sm:$0xff] }
 0x544   : > { %v5586_v24 = vpack.c.bf16 %v5576_v57, %v5575_v58  ;;  %v5587_v61 = vpack.c.bf16 %v5578_v31, %v5577_v25  ;;  %v5588_v20 = vpack.c.bf16 %v5579_v46, %v5579_v46  ;;  %v7795_v16 = vld [vmem:[%s12683_s3 + $0x5c] sm:$0xf]  ;;  %v12216_v57 = vld [vmem:[%s12684_s4] ss:$0 sm:$0xff] }
 0x54a   : > { %9180 = vmatmul.mubr.msk.bf16.gmra.mrb[24].mxu1 %vm1892_vm3, %v5227_v10  ;;  %v5619_v10 = vsel %vm1920_vm2, %v7775_v6, 0 }
 0x54b   : > { %9183 = vmatprep.mubr.msk.bf16.mxu1 %vm10554_vm0, %v12715_v30 }
 0x552   : > { %9184 = vmatmul.mubr.msk.bf16.gmra.mrb[28].mxu1 %vm1892_vm3, %v5228_v29  ;;  %v12741_v29 = vpack.c.bf16 %v11022_v56, %v11020_v54  ;;  %v5398_v54 = vld [vmem:[#allocation3 + $0xa8] sm:$0xff]  ;;  %v5399_v56 = vld [vmem:[#allocation3 + $0xb0] sm:$0xff] }
 0x553   : > { %9187 = vmatprep.mubr.msk.bf16.mxu1 %vm10554_vm0, %v12715_v30  ;;  %v5408_v15 = vpack.c.bf16 %v5399_v56, %v5398_v54  ;;  %v12754_v54 = vld [vmem:[#allocation13_spill] sm:$0xff] }
 0x55a   : > { %9188 = vmatmul.mubr.msk.bf16.gmra.mrb[32].mxu1 %vm1892_vm3, %v5229_v22  ;;  %v5977_v22 = vsel %vm1920_vm2, %v7795_v16, 0  ;;  %v10412_v16 = vld [vmem:[%s12685_s5 + $0x104] ss:$8 sps:$4 sm:$0xff]  }
 0x55b   : > { %9191 = vmatprep.mubr.msk.bf16.mxu1 %vm10554_vm0, %v12715_v30 }
 0x562   : > { %9192 = vmatmul.mubr.msk.bf16.gmra.mrb[0].mxu1 %vm1892_vm3, %v5230_v23 }
 0x563   : > { %9197 = vmatprep.mubr.msk.bf16.mxu1 %vm10554_vm0, %v12715_v30 }
 0x56a   : > { %9198 = vmatmul.mubr.msk.bf16.vlgmr.msra.gmra.mrb[4].mxu1 %vm1892_vm3, %v12739_v12  ;;  %v12753_v12 = vld [vmem:[#allocation12_spill] sm:$0xff] }
 0x56b   : > { %9234 = vmatpush3.bf16.msra.mxu1 %v5619_v10  ;;  %9201 = vmatprep.mubr.msk.bf16.mxu1 %vm10554_vm0, %v12715_v30 }
 0x56c   : > { %9271 = vmatprep.subr.bf16.mxu1 %v12715_v30 }
 0x572   : > { %9202 = vmatmul.mubr.msk.bf16.gmra.mrb[8].mxu1 %vm1892_vm3, %v12740_v13 }
 0x573   : > { %9205 = vmatprep.mubr.msk.bf16.mxu1 %vm10554_vm0, %v12715_v30 }
 0x57a   : > { %9206 = vmatmul.mubr.msk.bf16.gmra.mrb[12].mxu1 %vm1892_vm3, %v12741_v29 }
 0x57b   : > { %9209 = vmatprep.mubr.msk.bf16.mxu1 %vm10554_vm0, %v12715_v30 }
 0x582   : > { %9210 = vmatmul.mubr.msk.bf16.gmra.mrb[16].mxu1 %vm1892_vm3, %v12742_v37 }
 0x583   : > { %9213 = vmatprep.mubr.msk.bf16.mxu1 %vm10554_vm0, %v12715_v30 }
 0x58a   : > { %9214 = vmatmul.mubr.msk.bf16.gmra.mrb[20].mxu1 %vm1892_vm3, %v12743_v38 }
 0x58b   : > { %9217 = vmatprep.mubr.msk.bf16.mxu1 %vm10554_vm0, %v12715_v30 }
 0x592   : > { %9218 = vmatmul.mubr.msk.bf16.gmra.mrb[24].mxu1 %vm1892_vm3, %v12744_v32  ;;  %v10555_v32 = vmov 1966171168  }
 0x593   : > { %9221 = vmatprep.mubr.msk.bf16.mxu1 %vm10554_vm0, %v12715_v30 }
 0x59a   : > { %9222 = vmatmul.mubr.msk.bf16.gmra.mrb[28].mxu1 %vm1892_vm3, %v12745_v33  ;;  %v6322_v33 = vunpack.c.l.s4 %v10555_v32 }
 0x59b   : > { %9225 = vmatprep.mubr.msk.bf16.mxu1 %vm10554_vm0, %v12715_v30 }
 0x59c   : > { %v6323_v40 = vunpack.c.0.s8 %v6322_v33 }
 0x5a2   : > { %9226 = vmatmul.mubr.msk.bf16.gmra.mrb[32].mxu1 %vm1892_vm3, %v5408_v15 }
 0x5a3   : > { %9229 = vmatprep.mubr.msk.bf16.mxu1 %vm10554_vm0, %v12715_v30 }
 0x5aa   : > { %9230 = vmatmul.mubr.msk.bf16.gmra.mrb[0].mxu1 %vm1892_vm3, %v5409_v26 }
 0x5ab   : > { %9235 = vmatprep.mubr.msk.bf16.mxu1 %vm10554_vm0, %v12715_v30 }
 0x5b2   : > { %9236 = vmatmul.mubr.msk.bf16.vlgmr.msra.gmra.mrb[4].mxu1 %vm1892_vm3, %v12746_v0 }
 0x5b3   : > { %9272 = vmatpush3.bf16.msra.mxu1 %v5798_v63  ;;  %9239 = vmatprep.mubr.msk.bf16.mxu1 %vm10554_vm0, %v12715_v30  ;;  %v12755_v63 = vld [vmem:[#allocation14_spill] sm:$0xff] }
 0x5b4   : > { %9309 = vmatprep.subr.bf16.mxu1 %v12715_v30 }
 0x5ba   : > { %9240 = vmatmul.mubr.msk.bf16.gmra.mrb[8].mxu1 %vm1892_vm3, %v12747_v49 }
 0x5bb   : > { %9243 = vmatprep.mubr.msk.bf16.mxu1 %vm10554_vm0, %v12715_v30 }
 0x5c2   : > { %9244 = vmatmul.mubr.msk.bf16.gmra.mrb[12].mxu1 %vm1892_vm3, %v12748_v8 }
 0x5c3   : > { %9247 = vmatprep.mubr.msk.bf16.mxu1 %vm10554_vm0, %v12715_v30 }
 0x5ca   : > { %9248 = vmatmul.mubr.msk.bf16.gmra.mrb[16].mxu1 %vm1892_vm3, %v12749_v42 }
 0x5cb   : > { %9251 = vmatprep.mubr.msk.bf16.mxu1 %vm10554_vm0, %v12715_v30 }
 0x5d2   : > { %9252 = vmatmul.mubr.msk.bf16.gmra.mrb[20].mxu1 %vm1892_vm3, %v12750_v43 }
 0x5d3   : > { %9255 = vmatprep.mubr.msk.bf16.mxu1 %vm10554_vm0, %v12715_v30 }
 0x5da   : > { %9256 = vmatmul.mubr.msk.bf16.gmra.mrb[24].mxu1 %vm1892_vm3, %v5585_v41 }
 0x5db   : > { %9259 = vmatprep.mubr.msk.bf16.mxu1 %vm10554_vm0, %v12715_v30 }
 0x5e2   : > { %9260 = vmatmul.mubr.msk.bf16.gmra.mrb[28].mxu1 %vm1892_vm3, %v5586_v24 }
 0x5e3   : > { %9263 = vmatprep.mubr.msk.bf16.mxu1 %vm10554_vm0, %v12715_v30 }
 0x5ea   : > { %9264 = vmatmul.mubr.msk.bf16.gmra.mrb[32].mxu1 %vm1892_vm3, %v5587_v61  ;;  %v12756_v61 = vld [vmem:[#allocation15_spill] sm:$0xff] }
 0x5eb   : > { %9267 = vmatprep.mubr.msk.bf16.mxu1 %vm10554_vm0, %v12715_v30 }
 0x5f2   : > { %9268 = vmatmul.mubr.msk.bf16.gmra.mrb[0].mxu1 %vm1892_vm3, %v5588_v20 }
 0x5f3   : > { %9273 = vmatprep.mubr.msk.bf16.mxu1 %vm10554_vm0, %v12715_v30 }
 0x5fa   : > { %9274 = vmatmul.mubr.msk.bf16.vlgmr.msra.gmra.mrb[4].mxu1 %vm1892_vm3, %v11685_v1  ;;  %v5757_v1 = vld [vmem:[#allocation3 + $0xb2] sm:$0xff] }
 0x5fb   : > { %9310 = vmatpush3.bf16.msra.mxu1 %v5977_v22  ;;  %9277 = vmatprep.mubr.msk.bf16.mxu1 %vm10554_vm0, %v12715_v30  ;;  %v10362_v22 = vld [vmem:[%s12685_s5] ss:$8 sps:$4 sm:$0xff]  }
 0x5fc   : > { %9347 = vmatprep.subr.bf16.mxu1 %v12715_v30 }
 0x602   : > { %9278 = vmatmul.mubr.msk.bf16.gmra.mrb[8].mxu1 %vm1892_vm3, %v11694_v18  ;;  %v5766_v18 = vpack.c.bf16 %v5757_v1, %v11752_v62  ;;  %v10364_v1 = vld [vmem:[%s12685_s5 + $0x4] ss:$8 sps:$4 sm:$0xff]  }
 0x603   : > { %9281 = vmatprep.mubr.msk.bf16.mxu1 %vm10554_vm0, %v12715_v30  ;;  %7025 = vmatprep.subr.bf16.mxu0 %v10364_v1 }
 0x604   : > { %7026 = vmatpush1.bf16.msra.mxu0 %v10362_v22 }
 0x60a   : > { %9282 = vmatmul.mubr.msk.bf16.gmra.mrb[12].mxu1 %vm1892_vm3, %v11704_v7  ;;  %v5758_v7 = vld [vmem:[#allocation3 + $0xba] sm:$0xff] }
 0x60b   : > { %9285 = vmatprep.mubr.msk.bf16.mxu1 %vm10554_vm0, %v12715_v30 }
 0x612   : > { %9286 = vmatmul.mubr.msk.bf16.gmra.mrb[16].mxu1 %vm1892_vm3, %v11714_v27  ;;  %v5767_v27 = vpack.c.bf16 %v5758_v7, %v5758_v7 }
 0x613   : > { %9289 = vmatprep.mubr.msk.bf16.mxu1 %vm10554_vm0, %v12715_v30 }
 0x61a   : > { %9290 = vmatmul.mubr.msk.bf16.gmra.mrb[20].mxu1 %vm1892_vm3, %v11725_v55  ;;  %v7805_v55 = vld [vmem:[%s12683_s3 + $0x60] sm:$0xf] }
 0x61b   : > { %9293 = vmatprep.mubr.msk.bf16.mxu1 %vm10554_vm0, %v12715_v30 }
 0x622   : > { %9294 = vmatmul.mubr.msk.bf16.gmra.mrb[24].mxu1 %vm1892_vm3, %v11734_v28  ;;  %v6156_v28 = vsel %vm1920_vm2, %v7805_v55, 0 }
 0x623   : > { %9297 = vmatprep.mubr.msk.bf16.mxu1 %vm10554_vm0, %v12715_v30 }
 0x62a   : > { %9298 = vmatmul.mubr.msk.bf16.gmra.mrb[28].mxu1 %vm1892_vm3, %v11743_v17  ;;  %v5936_v17 = vld [vmem:[#allocation3 + $0xb3] sm:$0xff] }
 0x62b   : > { %9301 = vmatprep.mubr.msk.bf16.mxu1 %vm10554_vm0, %v12715_v30  ;;  %v5945_v62 = vpack.c.bf16 %v5936_v17, %v11828_v45 }
 0x632   : > { %9302 = vmatmul.mubr.msk.bf16.gmra.mrb[32].mxu1 %vm1892_vm3, %v5766_v18 }
 0x633   : > { %9305 = vmatprep.mubr.msk.bf16.mxu1 %vm10554_vm0, %v12715_v30 }
 0x63a   : > { %9306 = vmatmul.mubr.msk.bf16.gmra.mrb[0].mxu1 %vm1892_vm3, %v5767_v27  ;;  %v12759_v27 = vld [vmem:[#allocation16_spill] sm:$0xff] }
 0x63b   : > { %9311 = vmatprep.mubr.msk.bf16.mxu1 %vm10554_vm0, %v12715_v30 }
 0x642   : > { %9312 = vmatmul.mubr.msk.bf16.vlgmr.msra.gmra.mrb[4].mxu1 %vm1892_vm3, %v11773_v19  ;;  %v5937_v19 = vld [vmem:[#allocation3 + $0xbb] sm:$0xff] }
 0x643   : > { %9348 = vmatpush3.bf16.msra.mxu1 %v6156_v28  ;;  %9315 = vmatprep.mubr.msk.bf16.mxu1 %vm10554_vm0, %v12715_v30 }
 0x64a   : > { %9316 = vmatmul.mubr.msk.bf16.gmra.mrb[8].mxu1 %vm1892_vm3, %v11782_v9  ;;  %v5946_v9 = vpack.c.bf16 %v5937_v19, %v5937_v19 }
 0x64b   : > { %9319 = vmatprep.mubr.msk.bf16.mxu1 %vm10554_vm0, %v12715_v30 }
 0x652   : > { %9320 = vmatmul.mubr.msk.bf16.gmra.mrb[12].mxu1 %vm1892_vm3, %v11791_v11  ;;  %v6103_v11 = vld [vmem:[#allocation3 + $0x54] sm:$0xff] }
 0x653   : > { %9323 = vmatprep.mubr.msk.bf16.mxu1 %vm10554_vm0, %v12715_v30 }
 0x65a   : > { %9324 = vmatmul.mubr.msk.bf16.gmra.mrb[16].mxu1 %vm1892_vm3, %v11803_v4  ;;  %v6118_v4 = vpack.c.bf16 %v6103_v11, %v11849_v48 }
 0x65b   : > { %9327 = vmatprep.mubr.msk.bf16.mxu1 %vm10554_vm0, %v12715_v30 }
 0x662   : > { %9328 = vmatmul.mubr.msk.bf16.gmra.mrb[20].mxu1 %vm1892_vm3, %v11810_v21  ;;  %v6115_v21 = vld [vmem:[#allocation3 + $0xb4] sm:$0xff] }
 0x663   : > { %9331 = vmatprep.mubr.msk.bf16.mxu1 %vm10554_vm0, %v12715_v30 }
 0x66a   : > { %9332 = vmatmul.mubr.msk.bf16.gmra.mrb[24].mxu1 %vm1892_vm3, %v11816_v34  ;;  %v6124_v34 = vpack.c.bf16 %v6115_v21, %v11886_v53 }
 0x66b   : > { %9335 = vmatprep.mubr.msk.bf16.mxu1 %vm10554_vm0, %v12715_v30 }
 0x672   : > { %9336 = vmatmul.mubr.msk.bf16.gmra.mrb[28].mxu1 %vm1892_vm3, %v11822_v35  ;;  %v6116_v35 = vld [vmem:[#allocation3 + $0xbc] sm:$0xff] }
 0x673   : > { %9339 = vmatprep.mubr.msk.bf16.mxu1 %vm10554_vm0, %v12715_v30  ;;  %v6125_v45 = vpack.c.bf16 %v6116_v35, %v6116_v35 }
 0x67a   : > { %9340 = vmatmul.mubr.msk.bf16.gmra.mrb[32].mxu1 %vm1892_vm3, %v5945_v62 }
 0x67b   : > { %9343 = vmatprep.mubr.msk.bf16.mxu1 %vm10554_vm0, %v12715_v30 }
 0x682   : > { %9344 = vmatmul.mubr.msk.bf16.gmra.mrb[0].mxu1 %vm1892_vm3, %v5946_v9 }
 0x683   : > { %9349 = vmatprep.mubr.msk.bf16.mxu1 %vm10554_vm0, %v12715_v30 }
 0x68a   : > { %9350 = vmatmul.mubr.msk.bf16.vlgmr.msra.gmra.mrb[4].mxu1 %vm1892_vm3, %v11843_v50 }
 0x68b   : > { %9353 = vmatprep.mubr.msk.bf16.mxu1 %vm10554_vm0, %v12715_v30 }
 0x692   : > { %9354 = vmatmul.mubr.msk.bf16.gmra.mrb[8].mxu1 %vm1892_vm3, %v6118_v4 }
 0x693   : > { %9357 = vmatprep.mubr.msk.bf16.mxu1 %vm10554_vm0, %v12715_v30 }
 0x69a   : > { %9358 = vmatmul.mubr.msk.bf16.gmra.mrb[12].mxu1 %vm1892_vm3, %v11856_v47 }
 0x69b   : > { %9361 = vmatprep.mubr.msk.bf16.mxu1 %vm10554_vm0, %v12715_v30 }
 0x6a2   : > { %9362 = vmatmul.mubr.msk.bf16.gmra.mrb[16].mxu1 %vm1892_vm3, %v11862_v2 }
 0x6a3   : > { %9365 = vmatprep.mubr.msk.bf16.mxu1 %vm10554_vm0, %v12715_v30 }
 0x6aa   : > { %9366 = vmatmul.mubr.msk.bf16.gmra.mrb[20].mxu1 %vm1892_vm3, %v11868_v51  ;;  %v12751_v51 = vld [vmem:[#allocation10_spill] sm:$0xff] }
 0x6ab   : > { %9369 = vmatprep.mubr.msk.bf16.mxu1 %vm10554_vm0, %v12715_v30 }
 0x6b2   : > { %9370 = vmatmul.mubr.msk.bf16.gmra.mrb[24].mxu1 %vm1892_vm3, %v11874_v3 }
 0x6b3   : > { %9373 = vmatprep.mubr.msk.bf16.mxu1 %vm10554_vm0, %v12715_v30 }
 0x6ba   : > { %9374 = vmatmul.mubr.msk.bf16.gmra.mrb[28].mxu1 %vm1892_vm3, %v11880_v60 }
 0x6bb   : > { %9377 = vmatprep.mubr.msk.bf16.mxu1 %vm10554_vm0, %v12715_v30 }
 0x6c2   : > { %9378 = vmatmul.mubr.msk.bf16.gmra.mrb[32].mxu1 %vm1892_vm3, %v6124_v34 }
 0x6c3   : > { %9381 = vmatprep.mubr.msk.bf16.mxu1 %vm10554_vm0, %v12715_v30 }
 0x6ca   : > { %9382 = vmatmul.mubr.msk.bf16.gmra.mrb[0].mxu1 %vm1892_vm3, %v6125_v45  ;;  %v12760_v45 = vld [vmem:[#allocation17_spill] sm:$0xff] }
 0x75d   : > { %v6192_v50 = vpop.f32.mrb[4].mxu1 }
 0x75e   : > { %v9407_v48 = vadd.f32 %v6192_v50, %v11918_v39  ;;  %v9351_v47 = vpop.f32.mrb[5].mxu1  ;;  %v6315_v39 = vlaneseq }
 0x75f   : > { %v6195_v2 = vpop.f32.mrb[6].mxu1 }
 0x760   : > { %6279 = vst [vmem:[#allocation4] sm:$0xff] %v9407_v48  ;;  %v9408_v3 = vadd.f32 %v6195_v2, %v12751_v51  ;;  %v9352_v60 = vpop.f32.mrb[7].mxu1  ;;  %v12211_v41 = vshrl.u32 %v6315_v39, 7  ;;  %vm12224_vm4 = vcmp.lt.s32.totalorder %v6315_v39, 16  ;;  %vm6346_vm5 = vcmp.ge.s32.totalorder %v6315_v39, 16 }
 0x761   : > { %vm6347_vm6 = vcmp.lt.s32.totalorder %v6315_v39, 32  ;;  %vm6354_vm7 = vcmp.ge.s32.totalorder %v6315_v39, 32  ;;  %vm6355_vm8 = vcmp.lt.s32.totalorder %v6315_v39, 48  ;;  %vm6362_vm11 = vcmp.ge.s32.totalorder %v6315_v39, 48 }
 0x762   : > { %6280 = vst [vmem:[#allocation4 + $0x8] sm:$0xff] %v9408_v3  ;;  %v12220_v31 = vsub.s32 %v6323_v40, %v12211_v41  ;;  %v12761_v3 = vld [vmem:[#allocation18_spill] sm:$0xff]  ;;  %vm12399_vm9 = vmand %vm6346_vm5, %vm6347_vm6  ;;  %vm6363_vm12 = vcmp.lt.s32.totalorder %v6315_v39, 64  ;;  %vm6384_vm13 = vcmp.ge.s32.totalorder %v6315_v39, 64  ;;  %vm6385_vm14 = vcmp.lt.s32.totalorder %v6315_v39, 80 }
 0x763   : > { %vm12403_vm10 = vmand %vm6354_vm7, %vm6355_vm8  ;;  %vm6419_vm2 = vcmp.ge.s32.totalorder %v6315_v39, 80  ;;  %vm6420_vm3 = vcmp.lt.s32.totalorder %v6315_v39, 96  ;;  %vm6435_vm5 = vcmp.lt.s32.totalorder %v6315_v39, 112  ;;  %vm6442_vm8 = vcmp.ge.s32.totalorder %v6315_v39, 112 }
 0x764   : > { %vm12413_vm15 = vmand %vm6362_vm11, %vm6363_vm12  ;;  %vm6443_vm11 = vcmp.lt.s32.totalorder %v6315_v39, 128 }
 0x765   : > { %v6200_v53 = vpop.f32.mrb[8].mxu1  ;;  %vm12419_vm1 = vmand %vm6384_vm13, %vm6385_vm14 }
 0x766   : > { %v9409_v23 = vadd.f32 %v6200_v53, %v12752_v14  ;;  %v9355_v6 = vpop.f32.mrb[9].mxu1  ;;  %vm12431_vm6 = vmand %vm6419_vm2, %vm6420_vm3 }
 0x767   : > { %v6203_v10 = vpop.f32.mrb[10].mxu1  ;;  %vm12447_vm12 = vmand %vm6442_vm8, %vm6443_vm11 }
 0x768   : > { %6281 = vst [vmem:[#allocation4 + $0x10] sm:$0xff] %v9409_v23  ;;  %v9410_v13 = vadd.f32 %v6203_v10, %v12753_v12  ;;  %v9356_v29 = vpop.f32.mrb[11].mxu1 }
 0x769   : > { %v6297_v38 = vld [vmem:[#allocation4] ss:$2 sm:$0x1f]  ;;  %v6299_v59 = vld [vmem:[#allocation4 + $0x1] ss:$2 sm:$0x1f] }
 0x76a   : > { %6282 = vst [vmem:[#allocation4 + $0x18] sm:$0xff] %v9410_v13  ;;  %v6304_v42 = vmax.f32 %v6297_v38, %v6299_v59  ;;  %v10365_v13 = vld [vmem:[%s12685_s5 + $0x10] ss:$8 sps:$4 sm:$0xff]   ;;  %v10367_v29 = vld [vmem:[%s12685_s5 + $0x14] ss:$8 sps:$4 sm:$0xff]  }
 0x76b   : > { %7027 = vmatprep.subr.bf16.mxu0 %v10367_v29  ;;  %v10370_v38 = vld [vmem:[%s12685_s5 + $0x24] ss:$8 sps:$4 sm:$0xff]  }
 0x76c   : > { %7028 = vmatpush1.bf16.msra.mxu0 %v10365_v13 }
 0x76d   : > { %v6208_v37 = vpop.f32.mrb[12].mxu1  ;;  %7029 = vmatprep.subr.bf16.mxu0 %v10370_v38 }
 0x76e   : > { %v9411_v56 = vadd.f32 %v6208_v37, %v12754_v54  ;;  %v9359_v15 = vpop.f32.mrb[13].mxu1  ;;  %v10368_v54 = vld [vmem:[%s12685_s5 + $0x20] ss:$8 sps:$4 sm:$0xff]  }
 0x76f   : > { %v6211_v26 = vpop.f32.mrb[14].mxu1  ;;  %v6301_v52 = vld [vmem:[#allocation4 + $0xe] ss:$2 sm:$0x1f] }
 0x770   : > { %6283 = vst [vmem:[#allocation4 + $0x20] sm:$0xff] %v9411_v56  ;;  %v9412_v0 = vadd.f32 %v6211_v26, %v12755_v63  ;;  %v9360_v49 = vpop.f32.mrb[15].mxu1  ;;  %v6303_v8 = vld [vmem:[#allocation4 + $0xf] ss:$2 sm:$0x1f]  ;;  %v12762_v56 = vld [vmem:[#allocation19_spill] sm:$0xff]  ;;  %7030 = vmatpush1.bf16.msra.mxu0 %v10368_v54 }
 0x771   : > { %v6305_v43 = vmax.f32 %v6301_v52, %v6303_v8 }
 0x772   : > { %6284 = vst [vmem:[#allocation4 + $0x28] sm:$0xff] %v9412_v0  ;;  %v12763_v0 = vld [vmem:[#allocation20_spill] sm:$0xff] }
 0x773   : > { %v6306_v58 = vmax.f32 %v6304_v42, %v6305_v43  ;;  %v10371_v43 = vld [vmem:[%s12685_s5 + $0x30] ss:$8 sps:$4 sm:$0xff]  }
 0x775   : > { %v6216_v24 = vpop.f32.mrb[16].mxu1  ;;  %v6313_v25 = vadd.f32 %v12216_v57, %v6306_v58 }
 0x776   : > { %v9413_v46 = vadd.f32 %v6216_v24, %v12756_v61  ;;  %v9363_v20 = vpop.f32.mrb[17].mxu1 }
 0x777   : > { %v6219_v18 = vpop.f32.mrb[18].mxu1  ;;  %v6314_v7 = vmax.f32 %v6313_v25, 0.0  ;;  %v6389_v35 = vld [vmem:[#allocation4 + $0x1c] ss:$2 sm:$0x1f] }
 0x778   : > { %6285 = vst [vmem:[#allocation4 + $0x30] sm:$0xff] %v9413_v46  ;;  %v9414_v55 = vadd.f32 %v6219_v18, %v12759_v27  ;;  %v9364_v28 = vpop.f32.mrb[19].mxu1  ;;  %v6391_v47 = vld [vmem:[#allocation4 + $0x1d] ss:$2 sm:$0x1f] }
 0x779   : > { %v6327_v17 = vrot.slane %v6314_v7, %v12220_v31  ;;  %v6366_v62 = vcombine.high %v6314_v7, %v6314_v7  ;;  %6319 = vst.msk [vmem:[#allocation5] sm:$0x1] %vm12224_vm4, %v6314_v7  ;;  %v6396_v10 = vmax.f32 %v6389_v35, %v6391_v47  ;;  %v10373_v20 = vld [vmem:[%s12685_s5 + $0x34] ss:$8 sps:$4 sm:$0xff]   ;;  %v10374_v28 = vld [vmem:[%s12685_s5 + $0x40] ss:$8 sps:$4 sm:$0xff]  }
 0x77a   : > { %6286 = vst [vmem:[#allocation4 + $0x38] sm:$0xff] %v9414_v55  ;;  %7031 = vmatprep.subr.bf16.mxu0 %v10373_v20  ;;  %v10377_v47 = vld [vmem:[%s12685_s5 + $0x50] ss:$8 sps:$4 sm:$0xff]   ;;  %v10391_v20 = vld [vmem:[%s12685_s5 + $0x94] ss:$8 sps:$4 sm:$0xff]  }
 0x77b   : > { %v6335_v19 = vrot.slane %v6327_v17, %v12220_v31  ;;  %v6328_v9 = vcombine.high %v6327_v17, %v6327_v17  ;;  %v6373_v34 = vrot.slane %v6366_v62, %v12220_v31  ;;  %7032 = vmatpush1.bf16.msra.mxu0 %v10371_v43  ;;  %v10376_v17 = vld [vmem:[%s12685_s5 + $0x44] ss:$8 sps:$4 sm:$0xff]  }
 0x77c   : > { %v12764_v62 = vld [vmem:[#allocation21_spill] sm:$0xff]  ;;  %7033 = vmatprep.subr.bf16.mxu0 %v10376_v17 }
 0x77d   : > { %v6224_v11 = vpop.f32.mrb[20].mxu1  ;;  %v6350_v4 = vcombine.high %v6335_v19, %v6335_v19  ;;  %v6342_v21 = vrot.slane %v6328_v9, %v12220_v31  ;;  %v6380_v6 = vrot.slane %v6373_v34, %v12220_v31 }
 0x77e   : > { %v9415_v50 = vadd.f32 %v6224_v11, %v12760_v45  ;;  %v9367_v48 = vpop.f32.mrb[21].mxu1 }
 0x77f   : > { %6351 = vrot.lane.b32.xlu1 %v6350_v4, %s12706_s22  ;;  %6343 = vrot.lane.b32.xlu0 %v6342_v21, %s12701_s24  ;;  %v6227_v2 = vpop.f32.mrb[22].mxu1  ;;  %v6393_v51 = vld [vmem:[#allocation4 + $0x2a] ss:$2 sm:$0x1f]  ;;  %v6358_v23 = vcombine.high %v6342_v21, %v6342_v21 }
 0x780   : > { %6287 = vst [vmem:[#allocation4 + $0x40] sm:$0xff] %v9415_v50  ;;  %v9416_v60 = vadd.f32 %v6227_v2, %v12761_v3  ;;  %v9368_v53 = vpop.f32.mrb[23].mxu1  ;;  %v6395_v14 = vld [vmem:[#allocation4 + $0x2b] ss:$2 sm:$0x1f]  ;;  %7034 = vmatpush1.bf16.msra.mxu0 %v10374_v28 }
 0x781   : > { %v6397_v12 = vmax.f32 %v6393_v51, %v6395_v14  ;;  %v10379_v2 = vld [vmem:[%s12685_s5 + $0x54] ss:$8 sps:$4 sm:$0xff]   ;;  %v10382_v3 = vld [vmem:[%s12685_s5 + $0x64] ss:$8 sps:$4 sm:$0xff]   ;;  %v10380_v53 = vld [vmem:[%s12685_s5 + $0x60] ss:$8 sps:$4 sm:$0xff]  }
 0x782   : > { %6288 = vst [vmem:[#allocation4 + $0x48] sm:$0xff] %v9416_v60  ;;  %7035 = vmatprep.subr.bf16.mxu0 %v10379_v2 }
 0x783   : > { %6381 = vrot.lane.b32.xlu1 %v6380_v6, %s12702_s13  ;;  %6359 = vrot.lane.b32.xlu0 %v6358_v23, %s12710_s14  ;;  %v6398_v37 = vmax.f32 %v6396_v10, %v6397_v12  ;;  %s12708_s13 = smov 112   ;;  %v10385_v12 = vld [vmem:[%s12685_s5 + $0x74] ss:$8 sps:$4 sm:$0xff]  }
 0x784   : > { %7036 = vmatpush1.bf16.msra.mxu0 %v10377_v47 }
 0x785   : > { %v6232_v32 = vpop.f32.mrb[24].mxu1  ;;  %v6399_v33 = vadd.f32 %v12216_v57, %v6398_v37  ;;  %7037 = vmatprep.subr.bf16.mxu0 %v10382_v3  ;;  %v10398_v3 = vld [vmem:[%s12685_s5 + $0xc0] ss:$8 sps:$4 sm:$0xff]  }
 0x786   : > { %v9417_v15 = vadd.f32 %v6232_v32, %v12762_v56  ;;  %v9371_v59 = vpop.f32.mrb[25].mxu1 }
 0x787   : > { %v6235_v26 = vpop.f32.mrb[26].mxu1  ;;  %v6400_v52 = vmax.f32 %v6399_v33, 0.0  ;;  %v6469_v63 = vld [vmem:[#allocation4 + $0x38] ss:$2 sm:$0x1f] }
 0x788   : > { %6289 = vst [vmem:[#allocation4 + $0x50] sm:$0xff] %v9417_v15  ;;  %v9418_v49 = vadd.f32 %v6235_v26, %v12763_v0  ;;  %v9372_v8 = vpop.f32.mrb[27].mxu1  ;;  %v6471_v42 = vld [vmem:[#allocation4 + $0x39] ss:$2 sm:$0x1f]  ;;  %7038 = vmatpush1.bf16.msra.mxu0 %v10380_v53 }
 0x789   : > { %v6408_v40 = vrot.slane %v6400_v52, %v12220_v31  ;;  %v6449_v58 = vcombine.high %v6400_v52, %v6400_v52  ;;  %v6473_v24 = vld [vmem:[#allocation4 + $0x46] ss:$2 sm:$0x1f]  ;;  %v6475_v25 = vld [vmem:[#allocation4 + $0x47] ss:$2 sm:$0x1f]  ;;  %v6476_v61 = vmax.f32 %v6469_v63, %v6471_v42  ;;  %7039 = vmatprep.subr.bf16.mxu0 %v10385_v12 }
 0x78a   : > { %6290 = vst [vmem:[#allocation4 + $0x58] sm:$0xff] %v9418_v49  ;;  %v6477_v46 = vmax.f32 %v6473_v24, %v6475_v25  ;;  %v10388_v63 = vld [vmem:[%s12685_s5 + $0x84] ss:$8 sps:$4 sm:$0xff]   ;;  %v10386_v8 = vld [vmem:[%s12685_s5 + $0x80] ss:$8 sps:$4 sm:$0xff]  }
 0x78b   : > { %v6415_v22 = vrot.slane %v6408_v40, %v12220_v31  ;;  %v6423_v1 = vcombine.high %v6408_v40, %v6408_v40  ;;  %v6456_v18 = vrot.slane %v6449_v58, %v12220_v31  ;;  %v12768_v42 = vld [vmem:[#allocation9_spill] sm:$0xff]  ;;  %v10403_v53 = vld [vmem:[%s12685_s5 + $0xd4] ss:$8 sps:$4 sm:$0xff]  }
 0x78c   : > { %v6478_v7 = vmax.f32 %v6476_v61, %v6477_v46 }
 0x78d   : > { %6416 = vrot.lane.b32.xlu0 %v6415_v22, %s12704_s25  ;;  %v6240_v27 = vpop.f32.mrb[28].mxu1  ;;  %v6430_v55 = vrot.slane %v6423_v1, %v12220_v31  ;;  %v6463_v21 = vrot.slane %v6456_v18, %v12220_v31  ;;  %s12765_s25 = smov 32  }
 0x78e   : > { %v9419_v19 = vadd.f32 %v6240_v27, %v12764_v62  ;;  %v9375_v9 = vpop.f32.mrb[29].mxu1  ;;  %v6479_v11 = vadd.f32 %v12216_v57, %v6478_v7  ;;  %v10394_v7 = vld [vmem:[%s12685_s5 + $0xa4] ss:$8 sps:$4 sm:$0xff]  }
 0x78f   : > { %6431 = vrot.lane.b32.xlu1 %v6430_v55, %s12699_s16  ;;  %v6243_v4 = vpop.f32.mrb[30].mxu1  ;;  %v6446_v34 = vcombine.high %v6430_v55, %v6430_v55  ;;  %s12772_s16 = smov 112  }
 0x790   : > { %6291 = vst [vmem:[#allocation4 + $0x60] sm:$0xff] %v9419_v19  ;;  %v9420_v35 = vadd.f32 %v6243_v4, %v11967_v5  ;;  %v9376_v45 = vpop.f32.mrb[31].mxu1  ;;  %v6480_v50 = vmax.f32 %v6479_v11, 0.0  ;;  %v6438_v5 = vcombine.high %v6415_v22, %v6415_v22  ;;  %v10389_v22 = vld [vmem:[%s12685_s5 + $0x90] ss:$8 sps:$4 sm:$0xff]  }
 0x791   : > { %6464 = vrot.lane.b32.xlu0 %v6463_v21, %s12701_s24  ;;  %6448 = vst.msk [vmem:[#allocation5 + $0x1] sm:$0x1] %vm12224_vm4, %v6446_v34  ;;  %v6542_v10 = vld [vmem:[#allocation4 + $0x54] ss:$2 sm:$0x1f] }
 0x792   : > { %6292 = vst [vmem:[#allocation4 + $0x68] sm:$0xff] %v9420_v35  ;;  %v6488_v48 = vrot.slane %v6480_v50, %v12220_v31  ;;  %v6522_v37 = vcombine.high %v6480_v50, %v6480_v50  ;;  %v6544_v38 = vld [vmem:[#allocation4 + $0x55] ss:$2 sm:$0x1f]  ;;  %v10392_v19 = vld [vmem:[%s12685_s5 + $0xa0] ss:$8 sps:$4 sm:$0xff]  }
 0x793   : > { %v6549_v59 = vmax.f32 %v6542_v10, %v6544_v38  ;;  %v10397_v50 = vld [vmem:[%s12685_s5 + $0xb4] ss:$8 sps:$4 sm:$0xff]   ;;  %v10404_v38 = vld [vmem:[%s12685_s5 + $0xe0] ss:$8 sps:$4 sm:$0xff]  }
 0x794   : > { %v6500_v51 = vcombine.high %v6488_v48, %v6488_v48  ;;  %v6495_v29 = vrot.slane %v6488_v48, %v12220_v31  ;;  %v10395_v48 = vld [vmem:[%s12685_s5 + $0xb0] ss:$8 sps:$4 sm:$0xff]  }
 0x795   : > { %6439 = vrot.lane.b32.xlu0 %v6438_v5, %s12708_s13  ;;  %v6248_v60 = vpop.f32.mrb[32].mxu1  ;;  %s12770_s13 = smov 48   ;;  %v10400_v5 = vld [vmem:[%s12685_s5 + $0xc4] ss:$8 sps:$4 sm:$0xff]  }
 0x796   : > { %v9421_v14 = vadd.f32 %v6248_v60, %v11972_v36  ;;  %v9379_v23 = vpop.f32.mrb[33].mxu1  ;;  %v6507_v6 = vrot.slane %v6500_v51, %v12220_v31  ;;  %v10383_v36 = vld [vmem:[%s12685_s5 + $0x70] ss:$8 sps:$4 sm:$0xff]   ;;  %v6512_v52 = vcombine.high %v6495_v29, %v6495_v29 }
 0x797   : > { %v6251_v13 = vpop.f32.mrb[34].mxu1  ;;  %7040 = vmatpush1.bf16.msra.mxu0 %v10383_v36 }
 0x798   : > { %6293 = vst [vmem:[#allocation4 + $0x70] sm:$0xff] %v9421_v14  ;;  %v9422_v32 = vadd.f32 %v6251_v13, %v11974_v44  ;;  %v9380_v33 = vpop.f32.mrb[35].mxu1  ;;  %6508 = vrot.lane.b32.xlu1 %v6507_v6, %s12710_s14  ;;  %v6517_v15 = vcombine.high %v6507_v6, %v6507_v6  ;;  %v6529_v44 = vrot.slane %v6522_v37, %v12220_v31  ;;  %s12771_s14 = smov 16   ;;  %v10401_v6 = vld [vmem:[%s12685_s5 + $0xd0] ss:$8 sps:$4 sm:$0xff]  }
 0x799   : > { %6496 = vrot.lane.b32.xlu0 %v6495_v29, %s12765_s25  ;;  %v6546_v54 = vld [vmem:[#allocation4 + $0x62] ss:$2 sm:$0x1f]  ;;  %v6548_v56 = vld [vmem:[#allocation4 + $0x63] ss:$2 sm:$0x1f]  ;;  %7041 = vmatprep.subr.bf16.mxu0 %v10388_v63 }
 0x79a   : > { %6294 = vst [vmem:[#allocation4 + $0x78] sm:$0xff] %v9422_v32  ;;  %v6550_v26 = vmax.f32 %v6546_v54, %v6548_v56  ;;  %v6536_v25 = vrot.slane %v6529_v44, %v12220_v31  ;;  %v10406_v13 = vld [vmem:[%s12685_s5 + $0xe4] ss:$8 sps:$4 sm:$0xff]   ;;  %v10409_v33 = vld [vmem:[%s12685_s5 + $0xf4] ss:$8 sps:$4 sm:$0xff]  }
 0x79b   : > { %7042 = vmatpush1.bf16.msra.mxu0 %v10386_v8  ;;  %v10441_v54 = vld [vmem:[%s12687_s7 + $0x50] sm:$0xff]   ;;  %v10451_v8 = vld [vmem:[%s12687_s7 + $0x78] sm:$0xff]  }
 0x79c   : > { %6518 = vrot.lane.b32.xlu1 %v6517_v15, %s12766_s15  ;;  %v6551_v0 = vmax.f32 %v6549_v59, %v6550_v26  ;;  %7043 = vmatprep.subr.bf16.mxu0 %v10391_v20  ;;  %v10442_v56 = vld [vmem:[%s12687_s7 + $0x10] sm:$0xff]   ;;  %v10445_v26 = vld [vmem:[%s12687_s7 + $0x60] sm:$0xff]  }
 0x79d   : > { %6513 = vrot.lane.b32.xlu0 %v6512_v52, %s12767_s29  ;;  %v6256_v49 = vpop.f32.mrb[0].mxu1  ;;  %v10446_v52 = vld [vmem:[%s12687_s7 + $0x20] sm:$0xff]  }
 0x79e   : > { %v9423_v43 = vadd.f32 %v6256_v49, %v12768_v42  ;;  %v9383_v40 = vpop.f32.mrb[1].mxu1  ;;  %v6552_v58 = vadd.f32 %v12216_v57, %v6551_v0  ;;  %v10449_v0 = vld [vmem:[%s12687_s7 + $0x70] sm:$0xff]  }
 0x79f   : > { %v6259_v24 = vpop.f32.mrb[2].mxu1  ;;  %7044 = vmatpush1.bf16.msra.mxu0 %v10389_v22 }
 0x7a0   : > { %6295 = vst [vmem:[#allocation4 + $0x80] sm:$0xff] %v9423_v43  ;;  %v9384_v61 = vpop.f32.mrb[3].mxu1  ;;  %v6553_v46 = vmax.f32 %v6552_v58, 0.0  ;;  %7045 = vmatprep.subr.bf16.mxu0 %v10394_v7 }
 0x7a1   : > { %6537 = vrot.lane.b32.xlu0 %v6536_v25, %s12769_s12  ;;  %v6613_v17 = vld [vmem:[#allocation4 + $0x70] ss:$2 sm:$0x1f]  ;;  %v6615_v62 = vld [vmem:[#allocation4 + $0x71] ss:$2 sm:$0x1f] }
 0x7a2   : > { %v6593_v1 = vcombine.high %v6553_v46, %v6553_v46  ;;  %v6561_v18 = vrot.slane %v6553_v46, %v12220_v31  ;;  %v6620_v35 = vmax.f32 %v6613_v17, %v6615_v62  ;;  %v6691_v17 = vsub.s32 1, %v12211_v41 }
 0x7a3   : > { %7046 = vmatpush1.bf16.msra.mxu0 %v10392_v19  ;;  %v6687_v62 = vsub.s32 0, %v12211_v41  ;;  %v6699_v19 = vsub.s32 3, %v12211_v41 }
 0x7a4   : > { %v6600_v27 = vrot.slane %v6593_v1, %v12220_v31  ;;  %v6568_v55 = vrot.slane %v6561_v18, %v12220_v31  ;;  %v6573_v28 = vcombine.high %v6561_v18, %v6561_v18  ;;  %7047 = vmatprep.subr.bf16.mxu0 %v10397_v50  ;;  %v10415_v50 = vld [vmem:[%s12685_s5 + $0x114] ss:$8 sps:$4 sm:$0xff]  }
 0x7a6   : > { %v6607_v9 = vrot.slane %v6600_v27, %v12220_v31  ;;  %v6583_v11 = vcombine.high %v6568_v55, %v6568_v55  ;;  %v6580_v4 = vrot.slane %v6573_v28, %v12220_v31 }
 0x7a7   : > { %v6617_v21 = vld [vmem:[#allocation4 + $0x7e] ss:$2 sm:$0x1f]  ;;  %v6619_v34 = vld [vmem:[#allocation4 + $0x7f] ss:$2 sm:$0x1f]  ;;  %7048 = vmatpush1.bf16.msra.mxu0 %v10395_v48 }
 0x7a8   : > { %6608 = vrot.lane.b32.xlu0 %v6607_v9, %s12770_s13  ;;  %6584 = vrot.lane.b32.xlu1 %v6583_v11, %s12771_s14  ;;  %v6621_v45 = vmax.f32 %v6617_v21, %v6619_v34  ;;  %6582 = vst.msk [vmem:[#allocation5 + $0x2] sm:$0x1] %vm12224_vm4, %v6580_v4  ;;  %v6588_v47 = vcombine.high %v6580_v4, %v6580_v4  ;;  %s7891_s13 = sshll.u32 %s10645_s21, 4 }
 0x7a9   : > { %7049 = vmatprep.subr.bf16.mxu0 %v10400_v5  ;;  %v10416_v5 = vld [vmem:[%s12685_s5 + $0x120] ss:$8 sps:$4 sm:$0xff]  }
 0x7aa   : > { %v6622_v2 = vmax.f32 %v6620_v35, %v6621_v45  ;;  %v10410_v35 = vld [vmem:[%s12685_s5 + $0x100] ss:$8 sps:$4 sm:$0xff]  }
 0x7ab   : > { %7050 = vmatpush1.bf16.msra.mxu0 %v10398_v3  ;;  %v10419_v3 = vld [vmem:[%s12685_s5 + $0x130] ss:$8 sps:$4 sm:$0xff]  }
 0x7ac   : > { %6589 = vrot.lane.b32.xlu1 %v6588_v47, %s12765_s25  ;;  %v6623_v51 = vadd.f32 %v12216_v57, %v6622_v2  ;;  %7051 = vmatprep.subr.bf16.mxu0 %v10403_v53  ;;  %v10413_v47 = vld [vmem:[%s12685_s5 + $0x110] ss:$8 sps:$4 sm:$0xff]   ;;  %v10418_v2 = vld [vmem:[%s12685_s5 + $0x124] ss:$8 sps:$4 sm:$0xff]   ;;  %v10422_v53 = vld [vmem:[%s12685_s5 + $0x140] ss:$8 sps:$4 sm:$0xff]  }
 0x7ae   : > { %v6624_v60 = vmax.f32 %v6623_v51, 0.0  ;;  %v10421_v51 = vld [vmem:[%s12685_s5 + $0x134] ss:$8 sps:$4 sm:$0xff]  }
 0x7af   : > { %7052 = vmatpush1.bf16.msra.mxu0 %v10401_v6  ;;  %v10430_v6 = vld [vmem:[%s12685_s5 + $0x164] ss:$8 sps:$4 sm:$0xff]  }
 0x7b0   : > { %v6632_v14 = vrot.slane %v6624_v60, %v12220_v31  ;;  %v6666_v23 = vcombine.high %v6624_v60, %v6624_v60  ;;  %7053 = vmatprep.subr.bf16.mxu0 %v10406_v13  ;;  %v10424_v60 = vld [vmem:[%s12685_s5 + $0x144] ss:$8 sps:$4 sm:$0xff]  }
 0x7b1   : > { %v10436_v13 = vld [vmem:[%s12685_s5 + $0x184] ss:$8 sps:$4 sm:$0xff]  }
 0x7b2   : > { %v6639_v57 = vrot.slane %v6632_v14, %v12220_v31  ;;  %v6673_v10 = vrot.slane %v6666_v23, %v12220_v31  ;;  %v6644_v12 = vcombine.high %v6632_v14, %v6632_v14  ;;  %v10427_v14 = vld [vmem:[%s12685_s5 + $0x154] ss:$8 sps:$4 sm:$0xff]   ;;  %v10425_v23 = vld [vmem:[%s12685_s5 + $0x150] ss:$8 sps:$4 sm:$0xff]  }
 0x7b3   : > { %7054 = vmatpush1.bf16.msra.mxu0 %v10404_v38 }
 0x7b4   : > { %6640 = vrot.lane.b32.xlu1 %v6639_v57, %s12767_s29  ;;  %v6651_v29 = vrot.slane %v6644_v12, %v12220_v31  ;;  %v6680_v37 = vrot.slane %v6673_v10, %v12220_v31  ;;  %v6656_v32 = vcombine.high %v6639_v57, %v6639_v57  ;;  %v10407_v31 = vld [vmem:[%s12685_s5 + $0xf0] ss:$8 sps:$4 sm:$0xff]   ;;  %7055 = vmatprep.subr.bf16.mxu0 %v10409_v33  ;;  %v10428_v57 = vld [vmem:[%s12685_s5 + $0x160] ss:$8 sps:$4 sm:$0xff]   ;;  %v10433_v10 = vld [vmem:[%s12685_s5 + $0x174] ss:$8 sps:$4 sm:$0xff]   ;;  %s12638_s29 = scalar_lea.hbm %s12691_s11, %s7891_s13 }
 0x7b5   : > { %v10431_v12 = vld [vmem:[%s12685_s5 + $0x170] ss:$8 sps:$4 sm:$0xff]   ;;  %v10438_v33 = vld [vmem:[%s12687_s7] sm:$0xff]  }
 0x7b6   : > { %6652 = vrot.lane.b32.xlu0 %v6651_v29, %s12766_s15  ;;  %6682 = vst.msk [vmem:[#allocation5 + $0x3] sm:$0x1] %vm12224_vm4, %v6680_v37  ;;  %v6661_v36 = vcombine.high %v6651_v29, %v6651_v29  ;;  %vm6434_vm4 = vcmp.ge.s32.totalorder %v6315_v39, 96  ;;  %v6695_v29 = vsub.s32 2, %v12211_v41  ;;  %v10434_v37 = vld [vmem:[%s12685_s5 + $0x180] ss:$8 sps:$4 sm:$0xff]  }
 0x7b7   : > { %7056 = vmatpush1.bf16.msra.mxu0 %v10407_v31  ;;  %vm12435_vm7 = vmand %vm6434_vm4, %vm6435_vm5  ;;  %v10439_v31 = vld [vmem:[%s12687_s7 + $0x48] sm:$0xff]   ;;  %s377_s15 = sand.u32 1, %s10543_s18  }
 0x7b8   : > { %6657 = vrot.lane.b32.xlu1 %v6656_v32, %s12769_s12  ;;  %7066 = vmatprep.subr.bf16.mxu0 %v10412_v16  ;;  %v10437_v32 = vld [vmem:[%s12687_s7 + $0x40] sm:$0xff]   ;;  %v10440_v16 = vld [vmem:[%s12687_s7 + $0x8] sm:$0xff]   ;;  %s378_s14 = scalar_lea.vmem [#allocation6], %s377_s15  ;;  %s7390_s21 = scalar_lea.sflag [#allocation7], %s377_s15 }
 0x7b9   : > { %v10454_v41 = vld [vmem:[%s12689_s9 + $0x8] sm:$0xff]   ;;  %s7402_s30 = sshll.u32 %s378_s14, 4  ;;  %s12640_s30 = int_to_ptr.vmem [resolvable:$true] %s7402_s30 }
 0x7ba   : > { %6662 = vrot.lane.b32.xlu0 %v6661_v36, %s12772_s16  ;;  %s10489_s0 = scalar_lea.vmem %s12640_s30, 16 }
 0x7bb   : > { %p10490_p11 = scmp.ne.s32.totalorder %s12640_s30, %s10489_s0 }
 0x7bc   : > { %6569 = vrot.lane.b32.xlu1 %v6568_v55, %s12772_s16  ;;  %s10563_s16 = smov [#allocation6]  }
 0x7bd   : > { %p10491_p12 = pnand %p10490_p11, %p10662_p5  ;;  %s10493_s25 = sshll.u32 %s10563_s16, 4  ;;  %s10494_s25 = int_to_ptr.vmem [resolvable:$false] %s10493_s25 }
 0x7be   : > { %s10495_s12 = scalar_lea.vmem %s10494_s25, 32  ;;  %p10496_p0 = scmp.lt.s32.totalorder %s12640_s30, %s10494_s25 }
 0x7bf   : > { %p10492_p13 = pneg %p10491_p12  ;;  %p10497_p1 = scmp.lt.s32.totalorder %s10495_s12, %s10489_s0 }
 0x7c1   : > { %p10498_p2 = por %p10497_p1, %p10496_p0 }
 0x7c3   : > { %p10499_p3 = pnand %p10498_p2, %p10492_p13 }
 0x7f1   : > { %v6352_v15 = vpop.permute.xlu1 %6351  ;;  %v6344_v59 = vpop.permute.xlu0 %6343 }
 0x7f2   : > { %6349 = vst.msk [vmem:[#allocation5] sm:$0x1] %vm12399_vm9, %v6344_v59  ;;  %v10444_v59 = vld [vmem:[%s12687_s7 + $0x18] sm:$0xff]  }
 0x7f3   : > { %6357 = vst.msk [vmem:[#allocation5] sm:$0x1] %vm12403_vm10, %v6352_v15  ;;  %v10443_v15 = vld [vmem:[%s12687_s7 + $0x58] sm:$0xff]  }
 0x7f5   : > { %v6382_v44 = vpop.permute.xlu1 %6381  ;;  %v6360_v63 = vpop.permute.xlu0 %6359 }
 0x7f6   : > { %6365 = vst.msk [vmem:[#allocation5] sm:$0x1] %vm12413_vm15, %v6360_v63  ;;  %v10448_v63 = vld [vmem:[%s12687_s7 + $0x28] sm:$0xff]  }
 0x7f7   : > { %6387 = vst.msk [vmem:[#allocation5] sm:$0x1] %vm12419_vm1, %v6382_v44  ;;  %v10447_v44 = vld [vmem:[%s12687_s7 + $0x68] sm:$0xff]  }
 0x7ff   : > { %v6417_v49 = vpop.permute.xlu0 %6416 }
 0x800   : > { %6422 = vst.msk [vmem:[#allocation5] sm:$0x1] %vm12431_vm6, %v6417_v49  ;;  %v10450_v49 = vld [vmem:[%s12687_s7 + $0x30] sm:$0xff]  }
 0x801   : > { %v6432_v42 = vpop.permute.xlu1 %6431 }
 0x802   : > { %6437 = vst.msk [vmem:[#allocation5] sm:$0x1] %vm12435_vm7, %v6432_v42  ;;  %v10452_v42 = vld [vmem:[%s12687_s7 + $0x38] sm:$0xff]  }
 0x803   : > { %v6465_v43 = vpop.permute.xlu0 %6464 }
 0x804   : > { %6467 = vst.msk [vmem:[#allocation5 + $0x1] sm:$0x1] %vm12399_vm9, %v6465_v43  ;;  %v6759_v43 = vld [vmem:[%s12686_s6] sm:$0x3] }
 0x805   : > { %v7014_v40 = vrot.slane %v6759_v43, %v6687_v62 }
 0x807   : > { %v6440_v58 = vpop.permute.xlu0 %6439 }
 0x808   : > { %6445 = vst.msk [vmem:[#allocation5] sm:$0x1] %vm12447_vm12, %v6440_v58  ;;  %v7018_v58 = vrot.slane %v6759_v43, %v6691_v17 }
 0x80a   : > { %v6509_v24 = vpop.permute.xlu1 %6508 }
 0x80b   : > { %v6497_v25 = vpop.permute.xlu0 %6496 }
 0x80c   : > { %6499 = vst.msk [vmem:[#allocation5 + $0x1] sm:$0x1] %vm12403_vm10, %v6497_v25 }
 0x80d   : > { %6511 = vst.msk [vmem:[#allocation5 + $0x1] sm:$0x1] %vm12413_vm15, %v6509_v24 }
 0x80e   : > { %v6519_v39 = vpop.permute.xlu1 %6518 }
 0x80f   : > { %v6514_v61 = vpop.permute.xlu0 %6513 }
 0x810   : > { %6516 = vst.msk [vmem:[#allocation5 + $0x1] sm:$0x1] %vm12419_vm1, %v6514_v61 }
 0x811   : > { %6521 = vst.msk [vmem:[#allocation5 + $0x1] sm:$0x1] %vm12431_vm6, %v6519_v39 }
 0x813   : > { %v6538_v46 = vpop.permute.xlu0 %6537 }
 0x814   : > { %6540 = vst.msk [vmem:[#allocation5 + $0x1] sm:$0x1] %vm12435_vm7, %v6538_v46 }
 0x81a   : > { %v6585_v20 = vpop.permute.xlu1 %6584  ;;  %v6609_v1 = vpop.permute.xlu0 %6608 }
 0x81b   : > { %6587 = vst.msk [vmem:[#allocation5 + $0x2] sm:$0x1] %vm12399_vm9, %v6585_v20  ;;  %vm7021_vm9 = vcmask 130048  }
 0x81e   : > { %v6590_v22 = vpop.permute.xlu1 %6589 }
 0x81f   : > { %6592 = vst.msk [vmem:[#allocation5 + $0x2] sm:$0x1] %vm12403_vm10, %v6590_v22 }
 0x820   : > { %6611 = vst.msk [vmem:[#allocation5 + $0x2] sm:$0x1] %vm12413_vm15, %v6609_v1 }
 0x826   : > { %v6641_v18 = vpop.permute.xlu1 %6640 }
 0x827   : > { %6643 = vst.msk [vmem:[#allocation5 + $0x2] sm:$0x1] %vm12419_vm1, %v6641_v18 }
 0x828   : > { %v6653_v7 = vpop.permute.xlu0 %6652 }
 0x829   : > { %6655 = vst.msk [vmem:[#allocation5 + $0x2] sm:$0x1] %vm12431_vm6, %v6653_v7  ;;  %v10453_v7 = vld [vmem:[%s12689_s9] sm:$0xff]  }
 0x82a   : > { %v6658_v27 = vpop.permute.xlu1 %6657 }
 0x82b   : > { %6660 = vst.msk [vmem:[#allocation5 + $0x2] sm:$0x1] %vm12435_vm7, %v6658_v27 }
 0x82c   : > { %v6663_v55 = vpop.permute.xlu0 %6662 }
 0x82d   : > { %6665 = vst.msk [vmem:[#allocation5 + $0x2] sm:$0x1] %vm12447_vm12, %v6663_v55  ;;  %v10455_v55 = vld [vmem:[%s12689_s9 + $0x10] sm:$0xff]  }
 0x82e   : > { %v6570_v28 = vpop.permute.xlu1 %6569 }
 0x82f   : > { %6572 = vst.msk [vmem:[#allocation5 + $0x1] sm:$0x1] %vm12447_vm12, %v6570_v28  ;;  %v10456_v28 = vld [vmem:[%s12689_s9 + $0x18] sm:$0xff]  }
 0x836   : > { %v6683_v9 = vld [vmem:[#allocation5] sm:$0xf] }
 0x837   : > { %v6692_v11 = vrot.slane %v6683_v9, %v6691_v17  ;;  %v6688_v4 = vrot.slane %v6683_v9, %v6687_v62  ;;  %v6700_v21 = vrot.slane %v6683_v9, %v6699_v19  ;;  %v6696_v38 = vrot.slane %v6683_v9, %v6695_v29  ;;  %v10457_v17 = vld [vmem:[%s12689_s9 + $0x20] sm:$0xff]   ;;  %v10458_v62 = vld [vmem:[%s12689_s9 + $0x28] sm:$0xff]   ;;  %v10459_v19 = vld [vmem:[%s12689_s9 + $0x30] sm:$0xff]  }
 0x838   : > { %v10460_v9 = vld [vmem:[%s12689_s9 + $0x38] sm:$0xff]  }
 0x839   : > { %v6706_v34 = vpack.c.bf16 %v6692_v11, %v6692_v11  ;;  %v6705_v45 = vpack.c.bf16 %v6688_v4, %v6688_v4  ;;  %v6708_v48 = vpack.c.bf16 %v6700_v21, %v6700_v21  ;;  %v6707_v36 = vpack.c.bf16 %v6696_v38, %v6696_v38  ;;  %v7143_v4 = vld [vmem:[%s12688_s8] sm:$0x1] }
 0x83b   : > { %7057 = vmatprep.mubr.bf16.mxu0 %v6706_v34 }
 0x83c   : > { %7058 = vmatmul.mubr.bf16.vlgmr.msra.gmra.mrb[232].mxu0 %v6705_v45 }
 0x83d   : > { %7067 = vmatpush1.bf16.msra.mxu0 %v10410_v35  ;;  %7866 = vmatprep.mubr.msk.bf16.mxu0 %vm7021_vm9, %v6708_v48 }
 0x83e   : > { %7068 = vmatprep.subr.bf16.mxu0 %v10415_v50 }
 0x841   : > { %7069 = vmatpush1.bf16.msra.mxu0 %v10413_v47 }
 0x842   : > { %7070 = vmatprep.subr.bf16.mxu0 %v10418_v2  ;;  %v7298_v2 = vld [vmem:[%s12690_s10] sm:$0x1] }
 0x845   : > { %7071 = vmatpush1.bf16.msra.mxu0 %v10416_v5 }
 0x846   : > { %7072 = vmatprep.subr.bf16.mxu0 %v10421_v51 }
 0x849   : > { %7073 = vmatpush1.bf16.msra.mxu0 %v10419_v3 }
 0x84a   : > { %7074 = vmatprep.subr.bf16.mxu0 %v10424_v60 }
 0x84d   : > { %7075 = vmatpush1.bf16.msra.mxu0 %v10422_v53 }
 0x84e   : > { %7076 = vmatprep.subr.bf16.mxu0 %v10427_v14 }
 0x851   : > { %7077 = vmatpush1.bf16.msra.mxu0 %v10425_v23 }
 0x852   : > { %7078 = vmatprep.subr.bf16.mxu0 %v10430_v6 }
 0x855   : > { %7079 = vmatpush1.bf16.msra.mxu0 %v10428_v57 }
 0x856   : > { %7080 = vmatprep.subr.bf16.mxu0 %v10433_v10 }
 0x859   : > { %7081 = vmatpush1.bf16.msra.mxu0 %v10431_v12 }
 0x85a   : > { %7082 = vmatprep.subr.bf16.mxu0 %v10436_v13 }
 0x85d   : > { %7083 = vmatpush1.bf16.msra.mxu0 %v10434_v37 }
 0x85e   : > { %8198 = vmatprep.subr.bf16.mxu0 %v10437_v32 }
 0x860   : > { %7099 = vmatmul.mubr.bf16.vlgmr.msra.gmra.mrb[232].mxu0 %v6707_v36 }
 0x861   : > { %8199 = vmatpush3.bf16.msra.mxu0 %v10438_v33 }
 0x862   : > { %8200 = vmatprep.subr.bf16.mxu0 %v10439_v31 }
 0x865   : > { %8201 = vmatpush3.bf16.msra.mxu0 %v10440_v16 }
 0x866   : > { %8202 = vmatprep.subr.bf16.mxu0 %v10441_v54 }
 0x869   : > { %8203 = vmatpush3.bf16.msra.mxu0 %v10442_v56 }
 0x86a   : > { %8204 = vmatprep.subr.bf16.mxu0 %v10443_v15 }
 0x86d   : > { %8205 = vmatpush3.bf16.msra.mxu0 %v10444_v59 }
 0x86e   : > { %8206 = vmatprep.subr.bf16.mxu0 %v10445_v26 }
 0x871   : > { %8207 = vmatpush3.bf16.msra.mxu0 %v10446_v52 }
 0x872   : > { %8208 = vmatprep.subr.bf16.mxu0 %v10447_v44 }
 0x875   : > { %8209 = vmatpush3.bf16.msra.mxu0 %v10448_v63 }
 0x876   : > { %8210 = vmatprep.subr.bf16.mxu0 %v10449_v0 }
 0x879   : > { %8211 = vmatpush3.bf16.msra.mxu0 %v10450_v49 }
 0x87a   : > { %8212 = vmatprep.subr.bf16.mxu0 %v10451_v8 }
 0x87d   : > { %8213 = vmatpush3.bf16.msra.mxu0 %v10452_v42 }
 0x87e   : > { %9385 = vmatprep.subr.bf16.mxu0 %v12715_v30 }
 0x933   : > { %v7100_v24 = vpop.f32.mrb[232].mxu0 }
 0x934   : > { %v9424_v25 = vadd.f32 %v7100_v24, %v7014_v40  ;;  %v7102_v39 = vpop.f32.mrb[233].mxu0 }
 0x935   : > { %v9425_v61 = vadd.f32 %v7102_v39, %v7018_v58  ;;  %v7104_v46 = vpop.f32.mrb[234].mxu0 }
 0x936   : > { %v7107_v20 = vmax.f32 %v9424_v25, 0.0  ;;  %v7105_v22 = vpop.f32.mrb[235].mxu0 }
 0x937   : > { %v7108_v1 = vmax.f32 %v9425_v61, 0.0 }
 0x938   : > { %v7109_v27 = vpack.c.bf16 %v7107_v20, %v7107_v20 }
 0x939   : > { %v7110_v18 = vpack.c.bf16 %v7108_v1, %v7108_v1 }
 0x93b   : > { %7272 = vmatprep.mubr.bf16.mxu0 %v7110_v18 }
 0x93c   : > { %7273 = vmatmul.mubr.bf16.vlgmr.msra.gmra.mrb[236].mxu0 %v7109_v27 }
 0x93d   : > { %9386 = vmatpush3.bf16.msra.mxu0 %v10453_v7  ;;  %9401 = vmatprep.mubr.msk.bf16.mxu0 %vm10554_vm0, %v12715_v30  ;;  %vm7387_vm0 = vcmask 811008  }
 0x93e   : > { %9387 = vmatprep.subr.bf16.mxu0 %v12715_v30 }
 0x941   : > { %9388 = vmatpush3.bf16.msra.mxu0 %v10454_v41 }
 0x942   : > { %9389 = vmatprep.subr.bf16.mxu0 %v12715_v30 }
 0x945   : > { %9390 = vmatpush3.bf16.msra.mxu0 %v10455_v55 }
 0x946   : > { %9391 = vmatprep.subr.bf16.mxu0 %v12715_v30 }
 0x949   : > { %9392 = vmatpush3.bf16.msra.mxu0 %v10456_v28 }
 0x94a   : > { %9393 = vmatprep.subr.bf16.mxu0 %v12715_v30 }
 0x94d   : > { %9394 = vmatpush3.bf16.msra.mxu0 %v10457_v17 }
 0x94e   : > { %9395 = vmatprep.subr.bf16.mxu0 %v12715_v30 }
 0x951   : > { %9396 = vmatpush3.bf16.msra.mxu0 %v10458_v62 }
 0x952   : > { %9397 = vmatprep.subr.bf16.mxu0 %v12715_v30 }
 0x955   : > { %9398 = vmatpush3.bf16.msra.mxu0 %v10459_v19 }
 0x956   : > { %9399 = vmatprep.subr.bf16.mxu0 %v12715_v30 }
 0x959   : > { %9400 = vmatpush3.bf16.msra.mxu0 %v10460_v9 }
 0xa0f   : > { %v8214_v11 = vpop.f32.mrb[236].mxu0 }
 0xa10   : > { %v8215_v21 = vpop.f32.mrb[237].mxu0 }
 0xa11   : > { %v8216_v34 = vadd.f32 %v8215_v21, %v8214_v11  ;;  %v8217_v35 = vpop.f32.mrb[238].mxu0 }
 0xa12   : > { %v8218_v45 = vpop.f32.mrb[239].mxu0 }
 0xa13   : > { %v7275_v50 = vadd.f32 %v8216_v34, %v7143_v4 }
 0xa15   : > { %v7280_v48 = vmax.f32 %v7275_v50, 0.0 }
 0xa17   : > { %v7281_v47 = vpack.c.bf16 %v7280_v48, %v7280_v48 }
 0xa19   : > { %9402 = vmatmul.mubr.bf16.vlgmr.msra.gmra.mrb[240].mxu0 %v7281_v47 }
 0xaec   : > { %v7381_v30 = vpop.f32.mrb[240].mxu0 }
 0xaed   : > { %v7382_v5 = vadd.f32 %v7381_v30, %v7298_v2  ;;  %v9403_v51 = vpop.f32.mrb[241].mxu0 }
 0xaee   : > { %v7384_v3 = vpop.f32.mrb[242].mxu0 }
 0xaef   : > { %v9404_v60 = vpop.f32.mrb[243].mxu0  ;;  %7388 = vst.msk [vmem:[%s378_s14] sm:$0x1] %vm7387_vm0, %v7382_v5 }
 0xaf0   : > { %10502 = shalt.err (!%p10499_p3)
}
 0xaf1   : > { %s10503_s15 = scalar_lea.hbm %s12638_s29, 16  ;;  %s10507_s22 = scalar_lea.hbm %s12691_s11, 32 }
 0xaf2   : > { %p10504_p4 = scmp.ne.s32.totalorder %s12638_s29, %s10503_s15  ;;  %p10508_p9 = scmp.lt.u32.totalorder %s12638_s29, %s12691_s11 }
 0xaf3   : > { %p10509_p10 = scmp.lt.u32.totalorder %s10507_s22, %s10503_s15  ;;  %p10511_p12 = scmp.lt.u32.totalorder %s10503_s15, %s12638_s29 }
 0xaf4   : > { %p10505_p7 = pnand %p10504_p4, %p10662_p5 }
 0xaf5   : > { %p10510_p11 = por %p10509_p10, %p10508_p9 }
 0xaf6   : > { %p10506_p8 = pneg %p10505_p7 }
 0xaf7   : > { %p10512_p13 = por %p10511_p12, %p10510_p11 }
 0xaf9   : > { %p10513_p0 = pnand %p10512_p13, %p10506_p8 }
 0xafb   : > { %10516 = shalt.err (!%p10513_p0)
}
 0xafc   : > { %10259 = dma.vmem_to_hbm [thread:$0]  (%p10662_p5), %s12640_s30, 16, %s12638_s29, %s7390_s21  }
 0xafd PF: > { %p10265_p1 = scmp.ge.s32.totalorder %s10551_s20, 2  ;;  %s7414_s0 = sand.u32 1, %s10539_s17  }
 0xafe   : > { %s7415_s25 = scalar_lea.sflag [#allocation7], %s7414_s0 }
 0xaff   : > { %p10262_p2 = pnand %p10265_p1, %p10666_p6 }
 0xb01   : > { %10534 = dma.done.wait (!%p10262_p2), %s7415_s25, 16  }
 0xb02   : > { %10536 = vsyncadd (!%p10262_p2), %s7415_s25, 4294967280  ;;  %p21_p3 = scmp.ge.s32.totalorder %s10649_s23, 4   ;;  %s12787_s17 = smov %s10543_s18 }
 0xb03   : > { %s12788_s18 = smov %s10547_s19  ;;  %s12789_s19 = smov %s10660_s26 }
 0xb04   : > { %s12790_s20 = smov %s10649_s23  ;;  %23 = sbr.rel (!%p21_p3) target bundleno = 5 (0x5), region = 253 }
 0xb0b   :  { %7419 = vsyncpa [#allocation7], 1 }
 0xb0c   :  { %7421 = vsyncpa [#allocation7 + $0x1], 1 }

</bundles_post_ra>
